<compile_context>
chip_gen: v5e
topology: v5e:2x2
jax: 0.10.0
libtpu: 0.0.40
codegen_flags: <defaults>
</compile_context>

<pallas_src>
import functools

import jax
import jax.numpy as jnp
from jax import lax
from jax.experimental import pallas as pl
from jax.experimental.pallas import tpu as pltpu

EPS = 1e-5  # nn.LayerNorm default


def _layernorm(x, gamma, beta):
    mu = jnp.mean(x, axis=-1, keepdims=True)
    xc = x - mu
    var = jnp.mean(xc * xc, axis=-1, keepdims=True)
    return xc * lax.rsqrt(var + EPS) * gamma + beta


def _gelu_exact(x):
    # nn.GELU() default = exact (erf-based) GELU
    return 0.5 * x * (1.0 + lax.erf(x * 0.7071067811865476))


def _state_space_kernel(
    x_ref, state_ref,
    wsu_ref, bsu_ref,                    # state_update Linear (E, E)
    g1_ref, b1_ref,                      # norm1
    wq_ref, bq_ref,                      # per-head q projection (H, E, Dh)
    wk_ref, bk_ref,                      # per-head k projection (H, E, Dh)
    wv_ref, bv_ref,                      # per-head v projection (H, E, Dh)
    wo_ref, bo_ref,                      # per-head out projection (H, Dh, E)
    convw_ref, convb_ref,                # depthwise Conv1d (k=3, pad=1)
    g2_ref, b2_ref,                      # norm2
    w1_ref, bm1_ref,                     # mlp Linear(E -> M)
    w2_ref, bm2_ref,                     # mlp Linear(M -> E)
    x_out_ref, state_out_ref,
    *, seq_len, num_heads, mm_dtype,
):
    f32 = jnp.float32
    x = x_ref[...]                       # (R, E), R = batch_tile * seq_len
    st = state_ref[...]
    R, E = x.shape
    S = seq_len
    bt = R // S
    H = num_heads
    Dh = E // H
    scale = 1.0 / (Dh ** 0.5)

    def mxu(a, w):                       # bf16 (or f32) matmul, f32 accumulation
        return jnp.dot(a.astype(mm_dtype), w, preferred_element_type=f32)

    # ---- state = state_update(state) + x -------------------------------------
    st_new = mxu(st, wsu_ref[...]) + bsu_ref[...] + x
    state_out_ref[...] = st_new

    # ---- normed_x = norm1(x) --------------------------------------------------
    nx = _layernorm(x, g1_ref[...], b1_ref[...])
    nx_mm = nx.astype(mm_dtype)

    # ---- multi-head self-attention over the sequence axis (dropout = id) -----
    attn = jnp.zeros((R, E), f32)
    for h in range(H):                   # static unroll over heads
        q = jnp.dot(nx_mm, wq_ref[h], preferred_element_type=f32) + bq_ref[h]
        k = jnp.dot(nx_mm, wk_ref[h], preferred_element_type=f32) + bk_ref[h]
        v = jnp.dot(nx_mm, wv_ref[h], preferred_element_type=f32) + bv_ref[h]
        q3 = (q * scale).reshape(bt, S, Dh).astype(mm_dtype)
        k3 = k.reshape(bt, S, Dh).astype(mm_dtype)
        v3 = v.reshape(bt, S, Dh).astype(mm_dtype)
        s = jnp.einsum('bqd,bkd->bqk', q3, k3, preferred_element_type=f32)
        s = s - jnp.max(s, axis=-1, keepdims=True)
        p = jnp.exp(s)
        p = p * pl.reciprocal(jnp.sum(p, axis=-1, keepdims=True), approx=True)
        ctx = jnp.einsum('bqk,bkd->bqd', p.astype(mm_dtype), v3,
                         preferred_element_type=f32)           # (bt, S, Dh)
        attn = attn + jnp.dot(ctx.reshape(R, Dh).astype(mm_dtype), wo_ref[h],
                              preferred_element_type=f32)
    attn = attn + bo_ref[...]

    x1 = x + attn                        # residual (this is `res` in PyTorch)

    # ---- depthwise Conv1d over the sequence axis (k=3, pad=1) + SiLU ---------
    row = lax.broadcasted_iota(jnp.int32, (R, E), 0)
    pos = row % S                        # position within each sequence
    x_prev = jnp.where(pos > 0, pltpu.roll(x1, shift=1, axis=0), 0.0)      # x1[s-1]
    x_next = jnp.where(pos < S - 1, pltpu.roll(x1, shift=R - 1, axis=0), 0.0)  # x1[s+1]
    cw = convw_ref[...]                  # (3, E) taps
    y = (x_prev * cw[0:1, :] + x1 * cw[1:2, :] + x_next * cw[2:3, :]
         + convb_ref[...])
    y = y * jax.nn.sigmoid(y)            # SiLU
    x2 = x1 + y + st_new

    # ---- MLP branch: x + mlp(norm2(x)) (dropouts = identity) -----------------
    nx2 = _layernorm(x2, g2_ref[...], b2_ref[...])
    h1 = mxu(nx2, w1_ref[...]) + bm1_ref[...]
    h1 = _gelu_exact(h1)
    h2 = mxu(h1, w2_ref[...]) + bm2_ref[...]
    x_out_ref[...] = x2 + h2


def _pick_batch_tile(B, S, E, M, H):
    """How many batches each grid step processes.

    Largest divisor of B whose f32 working set stays well inside VMEM, keeping
    the row block sublane/lane aligned, and preferring >= 2 grid steps so both
    v7x TensorCores get work (no-op on v5e/v6e, which have 1 TC).
    """
    budget = 8 * 1024 * 1024             # conservative f32 working-set budget
    Dh = E // H

    def work_bytes(bt):
        rows = bt * S
        return 4 * (6 * rows * E + rows * M + bt * S * S + 3 * rows * Dh)

    divisors = [d for d in range(1, B + 1) if B % d == 0]
    legal = [d for d in divisors
             if d == B or ((d * S) % 8 == 0 and E % 128 == 0)]
    fitting = [d for d in legal if work_bytes(d) <= budget] or [legal[0]]
    bt = fitting[-1]
    if bt == B and len(fitting) > 1:
        bt = fitting[-2]                 # leave >= 2 grid steps for megacore
    return bt


def state_space_block(x, state, params, *, num_heads, batch_tile=None,
                      matmul_dtype=jnp.bfloat16):
    """x, state: (B, S, E) float32.  Returns (x_out, state_out), each (B, S, E).

    matmul_dtype=jnp.float32 gives bit-level parity with the f32 reference;
    the default bfloat16 feeds the MXU at native rate (f32 accumulation).
    """
    B, S, E = x.shape
    H = num_heads
    assert E % H == 0, "emb_size must be divisible by num_heads"
    Dh = E // H
    M = params["w1"].shape[0]

    bt = batch_tile if batch_tile is not None else _pick_batch_tile(B, S, E, M, H)
    assert B % bt == 0
    R = bt * S
    grid = (B // bt,)

    f32 = jnp.float32
    mm = matmul_dtype

    # ------------------- parameter plumbing (wrapper-side glue) ---------------
    def per_head_in(w):                  # (E_out, E_in) -> (H, E_in, Dh)
        return jnp.transpose(w.T.reshape(E, H, Dh), (1, 0, 2)).astype(mm)

    win = params["win"]                                       # (3E, E)
    wq_t = per_head_in(win[:E])
    wk_t = per_head_in(win[E:2 * E])
    wv_t = per_head_in(win[2 * E:])
    b_in = params["bin"]
    bq = b_in[:E].reshape(H, 1, Dh).astype(f32)
    bk = b_in[E:2 * E].reshape(H, 1, Dh).astype(f32)
    bv = b_in[2 * E:].reshape(H, 1, Dh).astype(f32)
    wo_t = params["wout"].T.reshape(H, Dh, E).astype(mm)      # per-head out proj
    bo = params["bout"].reshape(1, E).astype(f32)

    weights = (
        params["wsu"].T.astype(mm), params["bsu"].reshape(1, E).astype(f32),
        params["g1"].reshape(1, E).astype(f32), params["b1"].reshape(1, E).astype(f32),
        wq_t, bq, wk_t, bk, wv_t, bv, wo_t, bo,
        params["convw"].reshape(E, 3).T.astype(f32),          # (3, E) taps k=0,1,2
        params["convb"].reshape(1, E).astype(f32),
        params["g2"].reshape(1, E).astype(f32), params["b2"].reshape(1, E).astype(f32),
        params["w1"].T.astype(mm), params["bm1"].reshape(1, M).astype(f32),
        params["w2"].T.astype(mm), params["bm2"].reshape(1, E).astype(f32),
    )

    # Batch folded into rows: lane-dense 2-D blocks of bt*S rows x E lanes.
    x2d = x.reshape(B * S, E)
    st2d = state.reshape(B * S, E)
    act_spec = pl.BlockSpec((R, E), lambda i: (i, 0))
    w_specs = [pl.BlockSpec(w.shape, lambda i, nd=w.ndim: (0,) * nd)
               for w in weights]

    kernel = functools.partial(_state_space_kernel, seq_len=S,
                               num_heads=H, mm_dtype=mm)

    x_out, state_out = pl.pallas_call(
        kernel,
        grid=grid,
        in_specs=[act_spec, act_spec] + w_specs,
        out_specs=[act_spec, act_spec],
        out_shape=(
            jax.ShapeDtypeStruct((B * S, E), f32),            # x_out
            jax.ShapeDtypeStruct((B * S, E), f32),            # state_out
        ),
        input_output_aliases={1: 1},                          # state buf -> state_out
        compiler_params=pltpu.CompilerParams(
            dimension_semantics=("parallel",),
            vmem_limit_bytes=32 * 1024 * 1024),
    )(x2d, st2d, *weights)

    return x_out.reshape(B, S, E), state_out.reshape(B, S, E)


if __name__ == "__main__":
    # Small but lane-dense shapes (E multiple of 128, S multiple of 8).
    B, S, E, H, M = 4, 16, 128, 4, 256   # batch, seq, emb_size, num_heads, mlp_dim

    key = jax.random.PRNGKey(0)
    keys = jax.random.split(key, 16)

    def nrm(k, shape, scale=0.05):
        return (scale * jax.random.normal(k, shape)).astype(jnp.float32)

    params = {
        # state_update: Linear(E, E)
        "wsu": nrm(keys[0], (E, E)), "bsu": nrm(keys[1], (E,)),
        # norm1 / norm2 (LayerNorm affine)
        "g1": jnp.ones((E,), jnp.float32), "b1": jnp.zeros((E,), jnp.float32),
        "g2": jnp.ones((E,), jnp.float32), "b2": jnp.zeros((E,), jnp.float32),
        # MultiheadAttention: in_proj (3E, E), out_proj (E, E)
        "win": nrm(keys[2], (3 * E, E)), "bin": nrm(keys[3], (3 * E,)),
        "wout": nrm(keys[4], (E, E)), "bout": nrm(keys[5], (E,)),
        # depthwise Conv1d(E, E, k=3, padding=1, groups=E): weight (E, 1, 3)
        "convw": nrm(keys[6], (E, 1, 3)), "convb": nrm(keys[7], (E,)),
        # MLP: Linear(E, M), Linear(M, E)
        "w1": nrm(keys[8], (M, E)), "bm1": nrm(keys[9], (M,)),
        "w2": nrm(keys[10], (E, M)), "bm2": nrm(keys[11], (E,)),
    }

    x = nrm(keys[12], (B, S, E), 1.0)
    state = nrm(keys[13], (B, S, E), 1.0)

    x_out, state_out = state_space_block(x, state, params, num_heads=H)
    jax.block_until_ready((x_out, state_out))
    assert x_out.shape == (B, S, E) and state_out.shape == (B, S, E)
    print("KERNEL_OK")
</pallas_src>

<mosaic_0001>
module attributes {stable_mosaic.version = 11 : i64} {
  func.func @_state_space_kernel(%arg0: i32, %arg1: memref<32x128xf32, #tpu.memory_space<vmem>>, %arg2: memref<32x128xf32, #tpu.memory_space<vmem>>, %arg3: memref<128x128xbf16, #tpu.memory_space<vmem>>, %arg4: memref<1x128xf32, #tpu.memory_space<vmem>>, %arg5: memref<1x128xf32, #tpu.memory_space<vmem>>, %arg6: memref<1x128xf32, #tpu.memory_space<vmem>>, %arg7: memref<4x128x32xbf16, #tpu.memory_space<vmem>>, %arg8: memref<4x1x32xf32, #tpu.memory_space<vmem>>, %arg9: memref<4x128x32xbf16, #tpu.memory_space<vmem>>, %arg10: memref<4x1x32xf32, #tpu.memory_space<vmem>>, %arg11: memref<4x128x32xbf16, #tpu.memory_space<vmem>>, %arg12: memref<4x1x32xf32, #tpu.memory_space<vmem>>, %arg13: memref<4x32x128xbf16, #tpu.memory_space<vmem>>, %arg14: memref<1x128xf32, #tpu.memory_space<vmem>>, %arg15: memref<3x128xf32, #tpu.memory_space<vmem>>, %arg16: memref<1x128xf32, #tpu.memory_space<vmem>>, %arg17: memref<1x128xf32, #tpu.memory_space<vmem>>, %arg18: memref<1x128xf32, #tpu.memory_space<vmem>>, %arg19: memref<128x256xbf16, #tpu.memory_space<vmem>>, %arg20: memref<1x256xf32, #tpu.memory_space<vmem>>, %arg21: memref<256x128xbf16, #tpu.memory_space<vmem>>, %arg22: memref<1x128xf32, #tpu.memory_space<vmem>>, %arg23: memref<32x128xf32, #tpu.memory_space<vmem>>, %arg24: memref<32x128xf32, #tpu.memory_space<vmem>>) attributes {dimension_semantics = [#tpu.dimension_semantics<parallel>], iteration_bounds = array<i64: 2>, scalar_prefetch = 0 : i64, scratch_operands = 0 : i64, tpu.core_type = #tpu.core_type<tc>, window_params = [{transform_indices = @transform_0, window_bounds = array<i64: 32, 128>}, {transform_indices = @transform_1, window_bounds = array<i64: 32, 128>}, {pipeline_mode = #tpu.pipeline_mode<synchronous>, transform_indices = @transform_2, window_bounds = array<i64: 128, 128>}, {pipeline_mode = #tpu.pipeline_mode<synchronous>, transform_indices = @transform_3, window_bounds = array<i64: 1, 128>}, {pipeline_mode = #tpu.pipeline_mode<synchronous>, transform_indices = @transform_4, window_bounds = array<i64: 1, 128>}, {pipeline_mode = #tpu.pipeline_mode<synchronous>, transform_indices = @transform_5, window_bounds = array<i64: 1, 128>}, {pipeline_mode = #tpu.pipeline_mode<synchronous>, transform_indices = @transform_6, window_bounds = array<i64: 4, 128, 32>}, {pipeline_mode = #tpu.pipeline_mode<synchronous>, transform_indices = @transform_7, window_bounds = array<i64: 4, 1, 32>}, {pipeline_mode = #tpu.pipeline_mode<synchronous>, transform_indices = @transform_8, window_bounds = array<i64: 4, 128, 32>}, {pipeline_mode = #tpu.pipeline_mode<synchronous>, transform_indices = @transform_9, window_bounds = array<i64: 4, 1, 32>}, {pipeline_mode = #tpu.pipeline_mode<synchronous>, transform_indices = @transform_10, window_bounds = array<i64: 4, 128, 32>}, {pipeline_mode = #tpu.pipeline_mode<synchronous>, transform_indices = @transform_11, window_bounds = array<i64: 4, 1, 32>}, {pipeline_mode = #tpu.pipeline_mode<synchronous>, transform_indices = @transform_12, window_bounds = array<i64: 4, 32, 128>}, {pipeline_mode = #tpu.pipeline_mode<synchronous>, transform_indices = @transform_13, window_bounds = array<i64: 1, 128>}, {pipeline_mode = #tpu.pipeline_mode<synchronous>, transform_indices = @transform_14, window_bounds = array<i64: 3, 128>}, {pipeline_mode = #tpu.pipeline_mode<synchronous>, transform_indices = @transform_15, window_bounds = array<i64: 1, 128>}, {pipeline_mode = #tpu.pipeline_mode<synchronous>, transform_indices = @transform_16, window_bounds = array<i64: 1, 128>}, {pipeline_mode = #tpu.pipeline_mode<synchronous>, transform_indices = @transform_17, window_bounds = array<i64: 1, 128>}, {pipeline_mode = #tpu.pipeline_mode<synchronous>, transform_indices = @transform_18, window_bounds = array<i64: 128, 256>}, {pipeline_mode = #tpu.pipeline_mode<synchronous>, transform_indices = @transform_19, window_bounds = array<i64: 1, 256>}, {pipeline_mode = #tpu.pipeline_mode<synchronous>, transform_indices = @transform_20, window_bounds = array<i64: 256, 128>}, {pipeline_mode = #tpu.pipeline_mode<synchronous>, transform_indices = @transform_21, window_bounds = array<i64: 1, 128>}, {transform_indices = @transform_22, window_bounds = array<i64: 32, 128>}, {transform_indices = @transform_23, window_bounds = array<i64: 32, 128>}]} {
    %c0 = arith.constant 0 : index
    %c0_0 = arith.constant 0 : index
    %0 = vector.load %arg1[%c0, %c0_0] : memref<32x128xf32, #tpu.memory_space<vmem>>, vector<32x128xf32>
    %c0_1 = arith.constant 0 : index
    %c0_2 = arith.constant 0 : index
    %1 = vector.load %arg2[%c0_1, %c0_2] : memref<32x128xf32, #tpu.memory_space<vmem>>, vector<32x128xf32>
    %c0_3 = arith.constant 0 : index
    %c0_4 = arith.constant 0 : index
    %2 = vector.load %arg3[%c0_3, %c0_4] : memref<128x128xbf16, #tpu.memory_space<vmem>>, vector<128x128xbf16>
    %3 = arith.truncf %1 : vector<32x128xf32> to vector<32x128xbf16>
    %cst = arith.constant dense<0.000000e+00> : vector<32x128xf32>
    %4 = tpu.matmul %3, %2, %cst {dimension_numbers = #tpu.dot_dimension_numbers<[1], [0], [0], [1], [0, 0, 1, 1], [], []>} : vector<32x128xbf16>, vector<128x128xbf16>, vector<32x128xf32> -> vector<32x128xf32>
    %c0_5 = arith.constant 0 : index
    %c0_6 = arith.constant 0 : index
    %5 = vector.load %arg4[%c0_5, %c0_6] : memref<1x128xf32, #tpu.memory_space<vmem>>, vector<1x128xf32>
    %6 = vector.broadcast %5 : vector<1x128xf32> to vector<32x128xf32>
    %7 = arith.addf %4, %6 : vector<32x128xf32>
    %8 = arith.addf %7, %0 : vector<32x128xf32>
    %c0_7 = arith.constant 0 : index
    %c0_8 = arith.constant 0 : index
    %9 = vector.load %arg24[%c0_7, %c0_8] : memref<32x128xf32, #tpu.memory_space<vmem>>, vector<32x128xf32>
    tpu.vector_store %arg24[%c0_7, %c0_8], %8 {strides = array<i32>} : memref<32x128xf32, #tpu.memory_space<vmem>>, vector<32x128xf32>,
    %c0_9 = arith.constant 0 : index
    %c0_10 = arith.constant 0 : index
    %10 = vector.load %arg5[%c0_9, %c0_10] : memref<1x128xf32, #tpu.memory_space<vmem>>, vector<1x128xf32>
    %c0_11 = arith.constant 0 : index
    %c0_12 = arith.constant 0 : index
    %11 = vector.load %arg6[%c0_11, %c0_12] : memref<1x128xf32, #tpu.memory_space<vmem>>, vector<1x128xf32>
    %cst_13 = arith.constant dense<0.000000e+00> : vector<32xf32>
    %12 = vector.multi_reduction <add>, %0, %cst_13 [1] : vector<32x128xf32> to vector<32xf32>
    %13 = vector.shape_cast %12 : vector<32xf32> to vector<32x1xf32>
    %cst_14 = arith.constant 1.280000e+02 : f32
    %14 = vector.broadcast %cst_14 : f32 to vector<32x1xf32>
    %15 = arith.divf %13, %14 : vector<32x1xf32>
    %16 = vector.broadcast %15 : vector<32x1xf32> to vector<32x128xf32>
    %17 = arith.subf %0, %16 : vector<32x128xf32>
    %18 = arith.mulf %17, %17 : vector<32x128xf32>
    %cst_15 = arith.constant dense<0.000000e+00> : vector<32xf32>
    %19 = vector.multi_reduction <add>, %18, %cst_15 [1] : vector<32x128xf32> to vector<32xf32>
    %20 = vector.shape_cast %19 : vector<32xf32> to vector<32x1xf32>
    %cst_16 = arith.constant 1.280000e+02 : f32
    %21 = vector.broadcast %cst_16 : f32 to vector<32x1xf32>
    %22 = arith.divf %20, %21 : vector<32x1xf32>
    %cst_17 = arith.constant 9.99999974E-6 : f32
    %23 = vector.broadcast %cst_17 : f32 to vector<32x1xf32>
    %24 = arith.addf %22, %23 : vector<32x1xf32>
    %25 = math.rsqrt %24 : vector<32x1xf32>
    %26 = vector.broadcast %25 : vector<32x1xf32> to vector<32x128xf32>
    %27 = arith.mulf %17, %26 : vector<32x128xf32>
    %28 = vector.broadcast %10 : vector<1x128xf32> to vector<32x128xf32>
    %29 = arith.mulf %27, %28 : vector<32x128xf32>
    %30 = vector.broadcast %11 : vector<1x128xf32> to vector<32x128xf32>
    %31 = arith.addf %29, %30 : vector<32x128xf32>
    %32 = arith.truncf %31 : vector<32x128xf32> to vector<32x128xbf16>
    %cst_18 = arith.constant 0.000000e+00 : f32
    %33 = vector.broadcast %cst_18 : f32 to vector<32x128xf32>
    %c0_19 = arith.constant 0 : index
    %c0_20 = arith.constant 0 : index
    %c0_21 = arith.constant 0 : index
    %34 = vector.load %arg7[%c0_19, %c0_20, %c0_21] : memref<4x128x32xbf16, #tpu.memory_space<vmem>>, vector<1x128x32xbf16>
    %35 = vector.shape_cast %34 : vector<1x128x32xbf16> to vector<128x32xbf16>
    %cst_22 = arith.constant dense<0.000000e+00> : vector<32x32xf32>
    %36 = tpu.matmul %32, %35, %cst_22 {dimension_numbers = #tpu.dot_dimension_numbers<[1], [0], [0], [1], [0, 0, 1, 1], [], []>} : vector<32x128xbf16>, vector<128x32xbf16>, vector<32x32xf32> -> vector<32x32xf32>
    %c0_23 = arith.constant 0 : index
    %c0_24 = arith.constant 0 : index
    %c0_25 = arith.constant 0 : index
    %37 = vector.load %arg8[%c0_23, %c0_24, %c0_25] : memref<4x1x32xf32, #tpu.memory_space<vmem>>, vector<1x1x32xf32>
    %38 = vector.shape_cast %37 : vector<1x1x32xf32> to vector<1x32xf32>
    %39 = vector.broadcast %38 : vector<1x32xf32> to vector<32x32xf32>
    %40 = arith.addf %36, %39 : vector<32x32xf32>
    %c0_26 = arith.constant 0 : index
    %c0_27 = arith.constant 0 : index
    %c0_28 = arith.constant 0 : index
    %41 = vector.load %arg9[%c0_26, %c0_27, %c0_28] : memref<4x128x32xbf16, #tpu.memory_space<vmem>>, vector<1x128x32xbf16>
    %42 = vector.shape_cast %41 : vector<1x128x32xbf16> to vector<128x32xbf16>
    %cst_29 = arith.constant dense<0.000000e+00> : vector<32x32xf32>
    %43 = tpu.matmul %32, %42, %cst_29 {dimension_numbers = #tpu.dot_dimension_numbers<[1], [0], [0], [1], [0, 0, 1, 1], [], []>} : vector<32x128xbf16>, vector<128x32xbf16>, vector<32x32xf32> -> vector<32x32xf32>
    %c0_30 = arith.constant 0 : index
    %c0_31 = arith.constant 0 : index
    %c0_32 = arith.constant 0 : index
    %44 = vector.load %arg10[%c0_30, %c0_31, %c0_32] : memref<4x1x32xf32, #tpu.memory_space<vmem>>, vector<1x1x32xf32>
    %45 = vector.shape_cast %44 : vector<1x1x32xf32> to vector<1x32xf32>
    %46 = vector.broadcast %45 : vector<1x32xf32> to vector<32x32xf32>
    %47 = arith.addf %43, %46 : vector<32x32xf32>
    %c0_33 = arith.constant 0 : index
    %c0_34 = arith.constant 0 : index
    %c0_35 = arith.constant 0 : index
    %48 = vector.load %arg11[%c0_33, %c0_34, %c0_35] : memref<4x128x32xbf16, #tpu.memory_space<vmem>>, vector<1x128x32xbf16>
    %49 = vector.shape_cast %48 : vector<1x128x32xbf16> to vector<128x32xbf16>
    %cst_36 = arith.constant dense<0.000000e+00> : vector<32x32xf32>
    %50 = tpu.matmul %32, %49, %cst_36 {dimension_numbers = #tpu.dot_dimension_numbers<[1], [0], [0], [1], [0, 0, 1, 1], [], []>} : vector<32x128xbf16>, vector<128x32xbf16>, vector<32x32xf32> -> vector<32x32xf32>
    %c0_37 = arith.constant 0 : index
    %c0_38 = arith.constant 0 : index
    %c0_39 = arith.constant 0 : index
    %51 = vector.load %arg12[%c0_37, %c0_38, %c0_39] : memref<4x1x32xf32, #tpu.memory_space<vmem>>, vector<1x1x32xf32>
    %52 = vector.shape_cast %51 : vector<1x1x32xf32> to vector<1x32xf32>
    %53 = vector.broadcast %52 : vector<1x32xf32> to vector<32x32xf32>
    %54 = arith.addf %50, %53 : vector<32x32xf32>
    %cst_40 = arith.constant 0.176776692 : f32
    %55 = vector.broadcast %cst_40 : f32 to vector<32x32xf32>
    %56 = arith.mulf %40, %55 : vector<32x32xf32>
    %57 = vector.shape_cast %56 : vector<32x32xf32> to vector<2x16x32xf32>
    %58 = arith.truncf %57 : vector<2x16x32xf32> to vector<2x16x32xbf16>
    %59 = vector.shape_cast %47 : vector<32x32xf32> to vector<2x16x32xf32>
    %60 = arith.truncf %59 : vector<2x16x32xf32> to vector<2x16x32xbf16>
    %61 = vector.shape_cast %54 : vector<32x32xf32> to vector<2x16x32xf32>
    %62 = arith.truncf %61 : vector<2x16x32xf32> to vector<2x16x32xbf16>
    "tpu.trace_start"() <{level = 10 : i32, message = "bqd,bkd->bqk"}> : () -> ()
    %cst_41 = arith.constant dense<0.000000e+00> : vector<2x16x16xf32>
    %63 = tpu.matmul %58, %60, %cst_41 {dimension_numbers = #tpu.dot_dimension_numbers<[2], [2], [1], [1], [0, 0, 0, 1, 1, 1], [0], [0]>} : vector<2x16x32xbf16>, vector<2x16x32xbf16>, vector<2x16x16xf32> -> vector<2x16x16xf32>
    "tpu.trace_stop"() : () -> ()
    %cst_42 = arith.constant dense<0xFF800000> : vector<2x16xf32>
    %64 = vector.multi_reduction <maximumf>, %63, %cst_42 [2] : vector<2x16x16xf32> to vector<2x16xf32>
    %65 = vector.shape_cast %64 : vector<2x16xf32> to vector<2x16x1xf32>
    %66 = vector.broadcast %65 : vector<2x16x1xf32> to vector<2x16x16xf32>
    %67 = arith.subf %63, %66 : vector<2x16x16xf32>
    %68 = math.exp %67 : vector<2x16x16xf32>
    %cst_43 = arith.constant dense<0.000000e+00> : vector<2x16xf32>
    %69 = vector.multi_reduction <add>, %68, %cst_43 [2] : vector<2x16x16xf32> to vector<2x16xf32>
    %70 = vector.shape_cast %69 : vector<2x16xf32> to vector<2x16x1xf32>
    %71 = tpu.reciprocal %70 {approx = true} : vector<2x16x1xf32> -> vector<2x16x1xf32>
    %72 = vector.broadcast %71 : vector<2x16x1xf32> to vector<2x16x16xf32>
    %73 = arith.mulf %68, %72 : vector<2x16x16xf32>
    %74 = arith.truncf %73 : vector<2x16x16xf32> to vector<2x16x16xbf16>
    "tpu.trace_start"() <{level = 10 : i32, message = "bqk,bkd->bqd"}> : () -> ()
    %cst_44 = arith.constant dense<0.000000e+00> : vector<2x16x32xf32>
    %75 = tpu.matmul %74, %62, %cst_44 {dimension_numbers = #tpu.dot_dimension_numbers<[2], [1], [1], [2], [0, 0, 0, 1, 1, 2], [0], [0]>} : vector<2x16x16xbf16>, vector<2x16x32xbf16>, vector<2x16x32xf32> -> vector<2x16x32xf32>
    "tpu.trace_stop"() : () -> ()
    %76 = vector.shape_cast %75 : vector<2x16x32xf32> to vector<32x32xf32>
    %77 = arith.truncf %76 : vector<32x32xf32> to vector<32x32xbf16>
    %c0_45 = arith.constant 0 : index
    %c0_46 = arith.constant 0 : index
    %c0_47 = arith.constant 0 : index
    %78 = vector.load %arg13[%c0_45, %c0_46, %c0_47] : memref<4x32x128xbf16, #tpu.memory_space<vmem>>, vector<1x32x128xbf16>
    %79 = vector.shape_cast %78 : vector<1x32x128xbf16> to vector<32x128xbf16>
    %cst_48 = arith.constant dense<0.000000e+00> : vector<32x128xf32>
    %80 = tpu.matmul %77, %79, %cst_48 {dimension_numbers = #tpu.dot_dimension_numbers<[1], [0], [0], [1], [0, 0, 1, 1], [], []>} : vector<32x32xbf16>, vector<32x128xbf16>, vector<32x128xf32> -> vector<32x128xf32>
    %81 = arith.addf %33, %80 : vector<32x128xf32>
    %c1 = arith.constant 1 : index
    %c0_49 = arith.constant 0 : index
    %c0_50 = arith.constant 0 : index
    %82 = vector.load %arg7[%c1, %c0_49, %c0_50] : memref<4x128x32xbf16, #tpu.memory_space<vmem>>, vector<1x128x32xbf16>
    %83 = vector.shape_cast %82 : vector<1x128x32xbf16> to vector<128x32xbf16>
    %cst_51 = arith.constant dense<0.000000e+00> : vector<32x32xf32>
    %84 = tpu.matmul %32, %83, %cst_51 {dimension_numbers = #tpu.dot_dimension_numbers<[1], [0], [0], [1], [0, 0, 1, 1], [], []>} : vector<32x128xbf16>, vector<128x32xbf16>, vector<32x32xf32> -> vector<32x32xf32>
    %c1_52 = arith.constant 1 : index
    %c0_53 = arith.constant 0 : index
    %c0_54 = arith.constant 0 : index
    %85 = vector.load %arg8[%c1_52, %c0_53, %c0_54] : memref<4x1x32xf32, #tpu.memory_space<vmem>>, vector<1x1x32xf32>
    %86 = vector.shape_cast %85 : vector<1x1x32xf32> to vector<1x32xf32>
    %87 = vector.broadcast %86 : vector<1x32xf32> to vector<32x32xf32>
    %88 = arith.addf %84, %87 : vector<32x32xf32>
    %c1_55 = arith.constant 1 : index
    %c0_56 = arith.constant 0 : index
    %c0_57 = arith.constant 0 : index
    %89 = vector.load %arg9[%c1_55, %c0_56, %c0_57] : memref<4x128x32xbf16, #tpu.memory_space<vmem>>, vector<1x128x32xbf16>
    %90 = vector.shape_cast %89 : vector<1x128x32xbf16> to vector<128x32xbf16>
    %cst_58 = arith.constant dense<0.000000e+00> : vector<32x32xf32>
    %91 = tpu.matmul %32, %90, %cst_58 {dimension_numbers = #tpu.dot_dimension_numbers<[1], [0], [0], [1], [0, 0, 1, 1], [], []>} : vector<32x128xbf16>, vector<128x32xbf16>, vector<32x32xf32> -> vector<32x32xf32>
    %c1_59 = arith.constant 1 : index
    %c0_60 = arith.constant 0 : index
    %c0_61 = arith.constant 0 : index
    %92 = vector.load %arg10[%c1_59, %c0_60, %c0_61] : memref<4x1x32xf32, #tpu.memory_space<vmem>>, vector<1x1x32xf32>
    %93 = vector.shape_cast %92 : vector<1x1x32xf32> to vector<1x32xf32>
    %94 = vector.broadcast %93 : vector<1x32xf32> to vector<32x32xf32>
    %95 = arith.addf %91, %94 : vector<32x32xf32>
    %c1_62 = arith.constant 1 : index
    %c0_63 = arith.constant 0 : index
    %c0_64 = arith.constant 0 : index
    %96 = vector.load %arg11[%c1_62, %c0_63, %c0_64] : memref<4x128x32xbf16, #tpu.memory_space<vmem>>, vector<1x128x32xbf16>
    %97 = vector.shape_cast %96 : vector<1x128x32xbf16> to vector<128x32xbf16>
    %cst_65 = arith.constant dense<0.000000e+00> : vector<32x32xf32>
    %98 = tpu.matmul %32, %97, %cst_65 {dimension_numbers = #tpu.dot_dimension_numbers<[1], [0], [0], [1], [0, 0, 1, 1], [], []>} : vector<32x128xbf16>, vector<128x32xbf16>, vector<32x32xf32> -> vector<32x32xf32>
    %c1_66 = arith.constant 1 : index
    %c0_67 = arith.constant 0 : index
    %c0_68 = arith.constant 0 : index
    %99 = vector.load %arg12[%c1_66, %c0_67, %c0_68] : memref<4x1x32xf32, #tpu.memory_space<vmem>>, vector<1x1x32xf32>
    %100 = vector.shape_cast %99 : vector<1x1x32xf32> to vector<1x32xf32>
    %101 = vector.broadcast %100 : vector<1x32xf32> to vector<32x32xf32>
    %102 = arith.addf %98, %101 : vector<32x32xf32>
    %cst_69 = arith.constant 0.176776692 : f32
    %103 = vector.broadcast %cst_69 : f32 to vector<32x32xf32>
    %104 = arith.mulf %88, %103 : vector<32x32xf32>
    %105 = vector.shape_cast %104 : vector<32x32xf32> to vector<2x16x32xf32>
    %106 = arith.truncf %105 : vector<2x16x32xf32> to vector<2x16x32xbf16>
    %107 = vector.shape_cast %95 : vector<32x32xf32> to vector<2x16x32xf32>
    %108 = arith.truncf %107 : vector<2x16x32xf32> to vector<2x16x32xbf16>
    %109 = vector.shape_cast %102 : vector<32x32xf32> to vector<2x16x32xf32>
    %110 = arith.truncf %109 : vector<2x16x32xf32> to vector<2x16x32xbf16>
    "tpu.trace_start"() <{level = 10 : i32, message = "bqd,bkd->bqk"}> : () -> ()
    %cst_70 = arith.constant dense<0.000000e+00> : vector<2x16x16xf32>
    %111 = tpu.matmul %106, %108, %cst_70 {dimension_numbers = #tpu.dot_dimension_numbers<[2], [2], [1], [1], [0, 0, 0, 1, 1, 1], [0], [0]>} : vector<2x16x32xbf16>, vector<2x16x32xbf16>, vector<2x16x16xf32> -> vector<2x16x16xf32>
    "tpu.trace_stop"() : () -> ()
    %cst_71 = arith.constant dense<0xFF800000> : vector<2x16xf32>
    %112 = vector.multi_reduction <maximumf>, %111, %cst_71 [2] : vector<2x16x16xf32> to vector<2x16xf32>
    %113 = vector.shape_cast %112 : vector<2x16xf32> to vector<2x16x1xf32>
    %114 = vector.broadcast %113 : vector<2x16x1xf32> to vector<2x16x16xf32>
    %115 = arith.subf %111, %114 : vector<2x16x16xf32>
    %116 = math.exp %115 : vector<2x16x16xf32>
    %cst_72 = arith.constant dense<0.000000e+00> : vector<2x16xf32>
    %117 = vector.multi_reduction <add>, %116, %cst_72 [2] : vector<2x16x16xf32> to vector<2x16xf32>
    %118 = vector.shape_cast %117 : vector<2x16xf32> to vector<2x16x1xf32>
    %119 = tpu.reciprocal %118 {approx = true} : vector<2x16x1xf32> -> vector<2x16x1xf32>
    %120 = vector.broadcast %119 : vector<2x16x1xf32> to vector<2x16x16xf32>
    %121 = arith.mulf %116, %120 : vector<2x16x16xf32>
    %122 = arith.truncf %121 : vector<2x16x16xf32> to vector<2x16x16xbf16>
    "tpu.trace_start"() <{level = 10 : i32, message = "bqk,bkd->bqd"}> : () -> ()
    %cst_73 = arith.constant dense<0.000000e+00> : vector<2x16x32xf32>
    %123 = tpu.matmul %122, %110, %cst_73 {dimension_numbers = #tpu.dot_dimension_numbers<[2], [1], [1], [2], [0, 0, 0, 1, 1, 2], [0], [0]>} : vector<2x16x16xbf16>, vector<2x16x32xbf16>, vector<2x16x32xf32> -> vector<2x16x32xf32>
    "tpu.trace_stop"() : () -> ()
    %124 = vector.shape_cast %123 : vector<2x16x32xf32> to vector<32x32xf32>
    %125 = arith.truncf %124 : vector<32x32xf32> to vector<32x32xbf16>
    %c1_74 = arith.constant 1 : index
    %c0_75 = arith.constant 0 : index
    %c0_76 = arith.constant 0 : index
    %126 = vector.load %arg13[%c1_74, %c0_75, %c0_76] : memref<4x32x128xbf16, #tpu.memory_space<vmem>>, vector<1x32x128xbf16>
    %127 = vector.shape_cast %126 : vector<1x32x128xbf16> to vector<32x128xbf16>
    %cst_77 = arith.constant dense<0.000000e+00> : vector<32x128xf32>
    %128 = tpu.matmul %125, %127, %cst_77 {dimension_numbers = #tpu.dot_dimension_numbers<[1], [0], [0], [1], [0, 0, 1, 1], [], []>} : vector<32x32xbf16>, vector<32x128xbf16>, vector<32x128xf32> -> vector<32x128xf32>
    %129 = arith.addf %81, %128 : vector<32x128xf32>
    %c2 = arith.constant 2 : index
    %c0_78 = arith.constant 0 : index
    %c0_79 = arith.constant 0 : index
    %130 = vector.load %arg7[%c2, %c0_78, %c0_79] : memref<4x128x32xbf16, #tpu.memory_space<vmem>>, vector<1x128x32xbf16>
    %131 = vector.shape_cast %130 : vector<1x128x32xbf16> to vector<128x32xbf16>
    %cst_80 = arith.constant dense<0.000000e+00> : vector<32x32xf32>
    %132 = tpu.matmul %32, %131, %cst_80 {dimension_numbers = #tpu.dot_dimension_numbers<[1], [0], [0], [1], [0, 0, 1, 1], [], []>} : vector<32x128xbf16>, vector<128x32xbf16>, vector<32x32xf32> -> vector<32x32xf32>
    %c2_81 = arith.constant 2 : index
    %c0_82 = arith.constant 0 : index
    %c0_83 = arith.constant 0 : index
    %133 = vector.load %arg8[%c2_81, %c0_82, %c0_83] : memref<4x1x32xf32, #tpu.memory_space<vmem>>, vector<1x1x32xf32>
    %134 = vector.shape_cast %133 : vector<1x1x32xf32> to vector<1x32xf32>
    %135 = vector.broadcast %134 : vector<1x32xf32> to vector<32x32xf32>
    %136 = arith.addf %132, %135 : vector<32x32xf32>
    %c2_84 = arith.constant 2 : index
    %c0_85 = arith.constant 0 : index
    %c0_86 = arith.constant 0 : index
    %137 = vector.load %arg9[%c2_84, %c0_85, %c0_86] : memref<4x128x32xbf16, #tpu.memory_space<vmem>>, vector<1x128x32xbf16>
    %138 = vector.shape_cast %137 : vector<1x128x32xbf16> to vector<128x32xbf16>
    %cst_87 = arith.constant dense<0.000000e+00> : vector<32x32xf32>
    %139 = tpu.matmul %32, %138, %cst_87 {dimension_numbers = #tpu.dot_dimension_numbers<[1], [0], [0], [1], [0, 0, 1, 1], [], []>} : vector<32x128xbf16>, vector<128x32xbf16>, vector<32x32xf32> -> vector<32x32xf32>
    %c2_88 = arith.constant 2 : index
    %c0_89 = arith.constant 0 : index
    %c0_90 = arith.constant 0 : index
    %140 = vector.load %arg10[%c2_88, %c0_89, %c0_90] : memref<4x1x32xf32, #tpu.memory_space<vmem>>, vector<1x1x32xf32>
    %141 = vector.shape_cast %140 : vector<1x1x32xf32> to vector<1x32xf32>
    %142 = vector.broadcast %141 : vector<1x32xf32> to vector<32x32xf32>
    %143 = arith.addf %139, %142 : vector<32x32xf32>
    %c2_91 = arith.constant 2 : index
    %c0_92 = arith.constant 0 : index
    %c0_93 = arith.constant 0 : index
    %144 = vector.load %arg11[%c2_91, %c0_92, %c0_93] : memref<4x128x32xbf16, #tpu.memory_space<vmem>>, vector<1x128x32xbf16>
    %145 = vector.shape_cast %144 : vector<1x128x32xbf16> to vector<128x32xbf16>
    %cst_94 = arith.constant dense<0.000000e+00> : vector<32x32xf32>
    %146 = tpu.matmul %32, %145, %cst_94 {dimension_numbers = #tpu.dot_dimension_numbers<[1], [0], [0], [1], [0, 0, 1, 1], [], []>} : vector<32x128xbf16>, vector<128x32xbf16>, vector<32x32xf32> -> vector<32x32xf32>
    %c2_95 = arith.constant 2 : index
    %c0_96 = arith.constant 0 : index
    %c0_97 = arith.constant 0 : index
    %147 = vector.load %arg12[%c2_95, %c0_96, %c0_97] : memref<4x1x32xf32, #tpu.memory_space<vmem>>, vector<1x1x32xf32>
    %148 = vector.shape_cast %147 : vector<1x1x32xf32> to vector<1x32xf32>
    %149 = vector.broadcast %148 : vector<1x32xf32> to vector<32x32xf32>
    %150 = arith.addf %146, %149 : vector<32x32xf32>
    %cst_98 = arith.constant 0.176776692 : f32
    %151 = vector.broadcast %cst_98 : f32 to vector<32x32xf32>
    %152 = arith.mulf %136, %151 : vector<32x32xf32>
    %153 = vector.shape_cast %152 : vector<32x32xf32> to vector<2x16x32xf32>
    %154 = arith.truncf %153 : vector<2x16x32xf32> to vector<2x16x32xbf16>
    %155 = vector.shape_cast %143 : vector<32x32xf32> to vector<2x16x32xf32>
    %156 = arith.truncf %155 : vector<2x16x32xf32> to vector<2x16x32xbf16>
    %157 = vector.shape_cast %150 : vector<32x32xf32> to vector<2x16x32xf32>
    %158 = arith.truncf %157 : vector<2x16x32xf32> to vector<2x16x32xbf16>
    "tpu.trace_start"() <{level = 10 : i32, message = "bqd,bkd->bqk"}> : () -> ()
    %cst_99 = arith.constant dense<0.000000e+00> : vector<2x16x16xf32>
    %159 = tpu.matmul %154, %156, %cst_99 {dimension_numbers = #tpu.dot_dimension_numbers<[2], [2], [1], [1], [0, 0, 0, 1, 1, 1], [0], [0]>} : vector<2x16x32xbf16>, vector<2x16x32xbf16>, vector<2x16x16xf32> -> vector<2x16x16xf32>
    "tpu.trace_stop"() : () -> ()
    %cst_100 = arith.constant dense<0xFF800000> : vector<2x16xf32>
    %160 = vector.multi_reduction <maximumf>, %159, %cst_100 [2] : vector<2x16x16xf32> to vector<2x16xf32>
    %161 = vector.shape_cast %160 : vector<2x16xf32> to vector<2x16x1xf32>
    %162 = vector.broadcast %161 : vector<2x16x1xf32> to vector<2x16x16xf32>
    %163 = arith.subf %159, %162 : vector<2x16x16xf32>
    %164 = math.exp %163 : vector<2x16x16xf32>
    %cst_101 = arith.constant dense<0.000000e+00> : vector<2x16xf32>
    %165 = vector.multi_reduction <add>, %164, %cst_101 [2] : vector<2x16x16xf32> to vector<2x16xf32>
    %166 = vector.shape_cast %165 : vector<2x16xf32> to vector<2x16x1xf32>
    %167 = tpu.reciprocal %166 {approx = true} : vector<2x16x1xf32> -> vector<2x16x1xf32>
    %168 = vector.broadcast %167 : vector<2x16x1xf32> to vector<2x16x16xf32>
    %169 = arith.mulf %164, %168 : vector<2x16x16xf32>
    %170 = arith.truncf %169 : vector<2x16x16xf32> to vector<2x16x16xbf16>
    "tpu.trace_start"() <{level = 10 : i32, message = "bqk,bkd->bqd"}> : () -> ()
    %cst_102 = arith.constant dense<0.000000e+00> : vector<2x16x32xf32>
    %171 = tpu.matmul %170, %158, %cst_102 {dimension_numbers = #tpu.dot_dimension_numbers<[2], [1], [1], [2], [0, 0, 0, 1, 1, 2], [0], [0]>} : vector<2x16x16xbf16>, vector<2x16x32xbf16>, vector<2x16x32xf32> -> vector<2x16x32xf32>
    "tpu.trace_stop"() : () -> ()
    %172 = vector.shape_cast %171 : vector<2x16x32xf32> to vector<32x32xf32>
    %173 = arith.truncf %172 : vector<32x32xf32> to vector<32x32xbf16>
    %c2_103 = arith.constant 2 : index
    %c0_104 = arith.constant 0 : index
    %c0_105 = arith.constant 0 : index
    %174 = vector.load %arg13[%c2_103, %c0_104, %c0_105] : memref<4x32x128xbf16, #tpu.memory_space<vmem>>, vector<1x32x128xbf16>
    %175 = vector.shape_cast %174 : vector<1x32x128xbf16> to vector<32x128xbf16>
    %cst_106 = arith.constant dense<0.000000e+00> : vector<32x128xf32>
    %176 = tpu.matmul %173, %175, %cst_106 {dimension_numbers = #tpu.dot_dimension_numbers<[1], [0], [0], [1], [0, 0, 1, 1], [], []>} : vector<32x32xbf16>, vector<32x128xbf16>, vector<32x128xf32> -> vector<32x128xf32>
    %177 = arith.addf %129, %176 : vector<32x128xf32>
    %c3 = arith.constant 3 : index
    %c0_107 = arith.constant 0 : index
    %c0_108 = arith.constant 0 : index
    %178 = vector.load %arg7[%c3, %c0_107, %c0_108] : memref<4x128x32xbf16, #tpu.memory_space<vmem>>, vector<1x128x32xbf16>
    %179 = vector.shape_cast %178 : vector<1x128x32xbf16> to vector<128x32xbf16>
    %cst_109 = arith.constant dense<0.000000e+00> : vector<32x32xf32>
    %180 = tpu.matmul %32, %179, %cst_109 {dimension_numbers = #tpu.dot_dimension_numbers<[1], [0], [0], [1], [0, 0, 1, 1], [], []>} : vector<32x128xbf16>, vector<128x32xbf16>, vector<32x32xf32> -> vector<32x32xf32>
    %c3_110 = arith.constant 3 : index
    %c0_111 = arith.constant 0 : index
    %c0_112 = arith.constant 0 : index
    %181 = vector.load %arg8[%c3_110, %c0_111, %c0_112] : memref<4x1x32xf32, #tpu.memory_space<vmem>>, vector<1x1x32xf32>
    %182 = vector.shape_cast %181 : vector<1x1x32xf32> to vector<1x32xf32>
    %183 = vector.broadcast %182 : vector<1x32xf32> to vector<32x32xf32>
    %184 = arith.addf %180, %183 : vector<32x32xf32>
    %c3_113 = arith.constant 3 : index
    %c0_114 = arith.constant 0 : index
    %c0_115 = arith.constant 0 : index
    %185 = vector.load %arg9[%c3_113, %c0_114, %c0_115] : memref<4x128x32xbf16, #tpu.memory_space<vmem>>, vector<1x128x32xbf16>
    %186 = vector.shape_cast %185 : vector<1x128x32xbf16> to vector<128x32xbf16>
    %cst_116 = arith.constant dense<0.000000e+00> : vector<32x32xf32>
    %187 = tpu.matmul %32, %186, %cst_116 {dimension_numbers = #tpu.dot_dimension_numbers<[1], [0], [0], [1], [0, 0, 1, 1], [], []>} : vector<32x128xbf16>, vector<128x32xbf16>, vector<32x32xf32> -> vector<32x32xf32>
    %c3_117 = arith.constant 3 : index
    %c0_118 = arith.constant 0 : index
    %c0_119 = arith.constant 0 : index
    %188 = vector.load %arg10[%c3_117, %c0_118, %c0_119] : memref<4x1x32xf32, #tpu.memory_space<vmem>>, vector<1x1x32xf32>
    %189 = vector.shape_cast %188 : vector<1x1x32xf32> to vector<1x32xf32>
    %190 = vector.broadcast %189 : vector<1x32xf32> to vector<32x32xf32>
    %191 = arith.addf %187, %190 : vector<32x32xf32>
    %c3_120 = arith.constant 3 : index
    %c0_121 = arith.constant 0 : index
    %c0_122 = arith.constant 0 : index
    %192 = vector.load %arg11[%c3_120, %c0_121, %c0_122] : memref<4x128x32xbf16, #tpu.memory_space<vmem>>, vector<1x128x32xbf16>
    %193 = vector.shape_cast %192 : vector<1x128x32xbf16> to vector<128x32xbf16>
    %cst_123 = arith.constant dense<0.000000e+00> : vector<32x32xf32>
    %194 = tpu.matmul %32, %193, %cst_123 {dimension_numbers = #tpu.dot_dimension_numbers<[1], [0], [0], [1], [0, 0, 1, 1], [], []>} : vector<32x128xbf16>, vector<128x32xbf16>, vector<32x32xf32> -> vector<32x32xf32>
    %c3_124 = arith.constant 3 : index
    %c0_125 = arith.constant 0 : index
    %c0_126 = arith.constant 0 : index
    %195 = vector.load %arg12[%c3_124, %c0_125, %c0_126] : memref<4x1x32xf32, #tpu.memory_space<vmem>>, vector<1x1x32xf32>
    %196 = vector.shape_cast %195 : vector<1x1x32xf32> to vector<1x32xf32>
    %197 = vector.broadcast %196 : vector<1x32xf32> to vector<32x32xf32>
    %198 = arith.addf %194, %197 : vector<32x32xf32>
    %cst_127 = arith.constant 0.176776692 : f32
    %199 = vector.broadcast %cst_127 : f32 to vector<32x32xf32>
    %200 = arith.mulf %184, %199 : vector<32x32xf32>
    %201 = vector.shape_cast %200 : vector<32x32xf32> to vector<2x16x32xf32>
    %202 = arith.truncf %201 : vector<2x16x32xf32> to vector<2x16x32xbf16>
    %203 = vector.shape_cast %191 : vector<32x32xf32> to vector<2x16x32xf32>
    %204 = arith.truncf %203 : vector<2x16x32xf32> to vector<2x16x32xbf16>
    %205 = vector.shape_cast %198 : vector<32x32xf32> to vector<2x16x32xf32>
    %206 = arith.truncf %205 : vector<2x16x32xf32> to vector<2x16x32xbf16>
    "tpu.trace_start"() <{level = 10 : i32, message = "bqd,bkd->bqk"}> : () -> ()
    %cst_128 = arith.constant dense<0.000000e+00> : vector<2x16x16xf32>
    %207 = tpu.matmul %202, %204, %cst_128 {dimension_numbers = #tpu.dot_dimension_numbers<[2], [2], [1], [1], [0, 0, 0, 1, 1, 1], [0], [0]>} : vector<2x16x32xbf16>, vector<2x16x32xbf16>, vector<2x16x16xf32> -> vector<2x16x16xf32>
    "tpu.trace_stop"() : () -> ()
    %cst_129 = arith.constant dense<0xFF800000> : vector<2x16xf32>
    %208 = vector.multi_reduction <maximumf>, %207, %cst_129 [2] : vector<2x16x16xf32> to vector<2x16xf32>
    %209 = vector.shape_cast %208 : vector<2x16xf32> to vector<2x16x1xf32>
    %210 = vector.broadcast %209 : vector<2x16x1xf32> to vector<2x16x16xf32>
    %211 = arith.subf %207, %210 : vector<2x16x16xf32>
    %212 = math.exp %211 : vector<2x16x16xf32>
    %cst_130 = arith.constant dense<0.000000e+00> : vector<2x16xf32>
    %213 = vector.multi_reduction <add>, %212, %cst_130 [2] : vector<2x16x16xf32> to vector<2x16xf32>
    %214 = vector.shape_cast %213 : vector<2x16xf32> to vector<2x16x1xf32>
    %215 = tpu.reciprocal %214 {approx = true} : vector<2x16x1xf32> -> vector<2x16x1xf32>
    %216 = vector.broadcast %215 : vector<2x16x1xf32> to vector<2x16x16xf32>
    %217 = arith.mulf %212, %216 : vector<2x16x16xf32>
    %218 = arith.truncf %217 : vector<2x16x16xf32> to vector<2x16x16xbf16>
    "tpu.trace_start"() <{level = 10 : i32, message = "bqk,bkd->bqd"}> : () -> ()
    %cst_131 = arith.constant dense<0.000000e+00> : vector<2x16x32xf32>
    %219 = tpu.matmul %218, %206, %cst_131 {dimension_numbers = #tpu.dot_dimension_numbers<[2], [1], [1], [2], [0, 0, 0, 1, 1, 2], [0], [0]>} : vector<2x16x16xbf16>, vector<2x16x32xbf16>, vector<2x16x32xf32> -> vector<2x16x32xf32>
    "tpu.trace_stop"() : () -> ()
    %220 = vector.shape_cast %219 : vector<2x16x32xf32> to vector<32x32xf32>
    %221 = arith.truncf %220 : vector<32x32xf32> to vector<32x32xbf16>
    %c3_132 = arith.constant 3 : index
    %c0_133 = arith.constant 0 : index
    %c0_134 = arith.constant 0 : index
    %222 = vector.load %arg13[%c3_132, %c0_133, %c0_134] : memref<4x32x128xbf16, #tpu.memory_space<vmem>>, vector<1x32x128xbf16>
    %223 = vector.shape_cast %222 : vector<1x32x128xbf16> to vector<32x128xbf16>
    %cst_135 = arith.constant dense<0.000000e+00> : vector<32x128xf32>
    %224 = tpu.matmul %221, %223, %cst_135 {dimension_numbers = #tpu.dot_dimension_numbers<[1], [0], [0], [1], [0, 0, 1, 1], [], []>} : vector<32x32xbf16>, vector<32x128xbf16>, vector<32x128xf32> -> vector<32x128xf32>
    %225 = arith.addf %177, %224 : vector<32x128xf32>
    %c0_136 = arith.constant 0 : index
    %c0_137 = arith.constant 0 : index
    %226 = vector.load %arg14[%c0_136, %c0_137] : memref<1x128xf32, #tpu.memory_space<vmem>>, vector<1x128xf32>
    %227 = vector.broadcast %226 : vector<1x128xf32> to vector<32x128xf32>
    %228 = arith.addf %225, %227 : vector<32x128xf32>
    %229 = arith.addf %0, %228 : vector<32x128xf32>
    %230 = tpu.iota {dimensions = array<i32: 0>} : vector<32x128xi32>
    %c16_i32 = arith.constant 16 : i32
    %c0_i32 = arith.constant 0 : i32
    %231 = arith.cmpi eq, %c16_i32, %c0_i32 : i32
    %c1_i32 = arith.constant 1 : i32
    %232 = arith.select %231, %c1_i32, %c16_i32 : i32
    %233 = vector.broadcast %232 : i32 to vector<32x128xi32>
    %234 = arith.remsi %230, %233 : vector<32x128xi32>
    %c0_i32_138 = arith.constant 0 : i32
    %235 = vector.broadcast %c0_i32_138 : i32 to vector<32x128xi32>
    %236 = arith.cmpi ne, %234, %235 : vector<32x128xi32>
    %c0_i32_139 = arith.constant 0 : i32
    %237 = vector.broadcast %c0_i32_139 : i32 to vector<32x128xi32>
    %238 = arith.cmpi slt, %234, %237 : vector<32x128xi32>
    %c0_i32_140 = arith.constant 0 : i32
    %239 = arith.cmpi slt, %232, %c0_i32_140 : i32
    %240 = vector.broadcast %239 : i1 to vector<32x128xi1>
    %241 = vector.broadcast %240 : vector<32x128xi1> to vector<32x128xi1>
    %242 = arith.xori %238, %241 : vector<32x128xi1>
    %243 = arith.andi %242, %236 : vector<32x128xi1>
    %244 = vector.broadcast %232 : i32 to vector<32x128xi32>
    %245 = arith.addi %234, %244 : vector<32x128xi32>
    %246 = arith.select %243, %245, %234 : vector<32x128xi1>, vector<32x128xi32>
    %c0_i32_141 = arith.constant 0 : i32
    %247 = vector.broadcast %c0_i32_141 : i32 to vector<32x128xi32>
    %248 = arith.cmpi sgt, %246, %247 : vector<32x128xi32>
    %c1_i32_142 = arith.constant 1 : i32
    %249 = tpu.dynamic_rotate %229 by %c1_i32_142 dim 0 : vector<32x128xf32>, i32 -> vector<32x128xf32>
    %cst_143 = arith.constant 0.000000e+00 : f32
    %250 = vector.broadcast %cst_143 : f32 to vector<32x128xf32>
    %251 = arith.select %248, %249, %250 : vector<32x128xi1>, vector<32x128xf32>
    %c15_i32 = arith.constant 15 : i32
    %252 = vector.broadcast %c15_i32 : i32 to vector<32x128xi32>
    %253 = arith.cmpi slt, %246, %252 : vector<32x128xi32>
    %c31_i32 = arith.constant 31 : i32
    %254 = tpu.dynamic_rotate %229 by %c31_i32 dim 0 : vector<32x128xf32>, i32 -> vector<32x128xf32>
    %cst_144 = arith.constant 0.000000e+00 : f32
    %255 = vector.broadcast %cst_144 : f32 to vector<32x128xf32>
    %256 = arith.select %253, %254, %255 : vector<32x128xi1>, vector<32x128xf32>
    %c0_145 = arith.constant 0 : index
    %c0_146 = arith.constant 0 : index
    %257 = vector.load %arg15[%c0_145, %c0_146] : memref<3x128xf32, #tpu.memory_space<vmem>>, vector<3x128xf32>
    %258 = vector.extract_strided_slice %257 {offsets = [0, 0], sizes = [1, 128], strides = [1, 1]} : vector<3x128xf32> to vector<1x128xf32>
    %259 = vector.broadcast %258 : vector<1x128xf32> to vector<32x128xf32>
    %260 = arith.mulf %251, %259 : vector<32x128xf32>
    %261 = vector.extract_strided_slice %257 {offsets = [1, 0], sizes = [1, 128], strides = [1, 1]} : vector<3x128xf32> to vector<1x128xf32>
    %262 = vector.broadcast %261 : vector<1x128xf32> to vector<32x128xf32>
    %263 = arith.mulf %229, %262 : vector<32x128xf32>
    %264 = arith.addf %260, %263 : vector<32x128xf32>
    %265 = vector.extract_strided_slice %257 {offsets = [2, 0], sizes = [1, 128], strides = [1, 1]} : vector<3x128xf32> to vector<1x128xf32>
    %266 = vector.broadcast %265 : vector<1x128xf32> to vector<32x128xf32>
    %267 = arith.mulf %256, %266 : vector<32x128xf32>
    %268 = arith.addf %264, %267 : vector<32x128xf32>
    %c0_147 = arith.constant 0 : index
    %c0_148 = arith.constant 0 : index
    %269 = vector.load %arg16[%c0_147, %c0_148] : memref<1x128xf32, #tpu.memory_space<vmem>>, vector<1x128xf32>
    %270 = vector.broadcast %269 : vector<1x128xf32> to vector<32x128xf32>
    %271 = arith.addf %268, %270 : vector<32x128xf32>
    %272 = arith.negf %271 : vector<32x128xf32>
    %273 = math.exp %272 : vector<32x128xf32>
    %cst_149 = arith.constant 1.000000e+00 : f32
    %274 = vector.broadcast %cst_149 : f32 to vector<32x128xf32>
    %275 = arith.addf %274, %273 : vector<32x128xf32>
    %276 = arith.divf %274, %275 : vector<32x128xf32>
    %277 = arith.mulf %271, %276 : vector<32x128xf32>
    %278 = arith.addf %229, %277 : vector<32x128xf32>
    %279 = arith.addf %278, %8 : vector<32x128xf32>
    %c0_150 = arith.constant 0 : index
    %c0_151 = arith.constant 0 : index
    %280 = vector.load %arg17[%c0_150, %c0_151] : memref<1x128xf32, #tpu.memory_space<vmem>>, vector<1x128xf32>
    %c0_152 = arith.constant 0 : index
    %c0_153 = arith.constant 0 : index
    %281 = vector.load %arg18[%c0_152, %c0_153] : memref<1x128xf32, #tpu.memory_space<vmem>>, vector<1x128xf32>
    %cst_154 = arith.constant dense<0.000000e+00> : vector<32xf32>
    %282 = vector.multi_reduction <add>, %279, %cst_154 [1] : vector<32x128xf32> to vector<32xf32>
    %283 = vector.shape_cast %282 : vector<32xf32> to vector<32x1xf32>
    %cst_155 = arith.constant 1.280000e+02 : f32
    %284 = vector.broadcast %cst_155 : f32 to vector<32x1xf32>
    %285 = arith.divf %283, %284 : vector<32x1xf32>
    %286 = vector.broadcast %285 : vector<32x1xf32> to vector<32x128xf32>
    %287 = arith.subf %279, %286 : vector<32x128xf32>
    %288 = arith.mulf %287, %287 : vector<32x128xf32>
    %cst_156 = arith.constant dense<0.000000e+00> : vector<32xf32>
    %289 = vector.multi_reduction <add>, %288, %cst_156 [1] : vector<32x128xf32> to vector<32xf32>
    %290 = vector.shape_cast %289 : vector<32xf32> to vector<32x1xf32>
    %cst_157 = arith.constant 1.280000e+02 : f32
    %291 = vector.broadcast %cst_157 : f32 to vector<32x1xf32>
    %292 = arith.divf %290, %291 : vector<32x1xf32>
    %cst_158 = arith.constant 9.99999974E-6 : f32
    %293 = vector.broadcast %cst_158 : f32 to vector<32x1xf32>
    %294 = arith.addf %292, %293 : vector<32x1xf32>
    %295 = math.rsqrt %294 : vector<32x1xf32>
    %296 = vector.broadcast %295 : vector<32x1xf32> to vector<32x128xf32>
    %297 = arith.mulf %287, %296 : vector<32x128xf32>
    %298 = vector.broadcast %280 : vector<1x128xf32> to vector<32x128xf32>
    %299 = arith.mulf %297, %298 : vector<32x128xf32>
    %300 = vector.broadcast %281 : vector<1x128xf32> to vector<32x128xf32>
    %301 = arith.addf %299, %300 : vector<32x128xf32>
    %c0_159 = arith.constant 0 : index
    %c0_160 = arith.constant 0 : index
    %302 = vector.load %arg19[%c0_159, %c0_160] : memref<128x256xbf16, #tpu.memory_space<vmem>>, vector<128x256xbf16>
    %303 = arith.truncf %301 : vector<32x128xf32> to vector<32x128xbf16>
    %cst_161 = arith.constant dense<0.000000e+00> : vector<32x256xf32>
    %304 = tpu.matmul %303, %302, %cst_161 {dimension_numbers = #tpu.dot_dimension_numbers<[1], [0], [0], [1], [0, 0, 1, 1], [], []>} : vector<32x128xbf16>, vector<128x256xbf16>, vector<32x256xf32> -> vector<32x256xf32>
    %c0_162 = arith.constant 0 : index
    %c0_163 = arith.constant 0 : index
    %305 = vector.load %arg20[%c0_162, %c0_163] : memref<1x256xf32, #tpu.memory_space<vmem>>, vector<1x256xf32>
    %306 = vector.broadcast %305 : vector<1x256xf32> to vector<32x256xf32>
    %307 = arith.addf %304, %306 : vector<32x256xf32>
    %cst_164 = arith.constant 5.000000e-01 : f32
    %308 = vector.broadcast %cst_164 : f32 to vector<32x256xf32>
    %309 = arith.mulf %308, %307 : vector<32x256xf32>
    %cst_165 = arith.constant 0.707106769 : f32
    %310 = vector.broadcast %cst_165 : f32 to vector<32x256xf32>
    %311 = arith.mulf %307, %310 : vector<32x256xf32>
    %312 = math.erf %311 : vector<32x256xf32>
    %cst_166 = arith.constant 1.000000e+00 : f32
    %313 = vector.broadcast %cst_166 : f32 to vector<32x256xf32>
    %314 = arith.addf %313, %312 : vector<32x256xf32>
    %315 = arith.mulf %309, %314 : vector<32x256xf32>
    %c0_167 = arith.constant 0 : index
    %c0_168 = arith.constant 0 : index
    %316 = vector.load %arg21[%c0_167, %c0_168] : memref<256x128xbf16, #tpu.memory_space<vmem>>, vector<256x128xbf16>
    %317 = arith.truncf %315 : vector<32x256xf32> to vector<32x256xbf16>
    %cst_169 = arith.constant dense<0.000000e+00> : vector<32x128xf32>
    %318 = tpu.matmul %317, %316, %cst_169 {dimension_numbers = #tpu.dot_dimension_numbers<[1], [0], [0], [1], [0, 0, 1, 1], [], []>} : vector<32x256xbf16>, vector<256x128xbf16>, vector<32x128xf32> -> vector<32x128xf32>
    %c0_170 = arith.constant 0 : index
    %c0_171 = arith.constant 0 : index
    %319 = vector.load %arg22[%c0_170, %c0_171] : memref<1x128xf32, #tpu.memory_space<vmem>>, vector<1x128xf32>
    %320 = vector.broadcast %319 : vector<1x128xf32> to vector<32x128xf32>
    %321 = arith.addf %318, %320 : vector<32x128xf32>
    %322 = arith.addf %279, %321 : vector<32x128xf32>
    %c0_172 = arith.constant 0 : index
    %c0_173 = arith.constant 0 : index
    %323 = vector.load %arg23[%c0_172, %c0_173] : memref<32x128xf32, #tpu.memory_space<vmem>>, vector<32x128xf32>
    tpu.vector_store %arg23[%c0_172, %c0_173], %322 {strides = array<i32>} : memref<32x128xf32, #tpu.memory_space<vmem>>, vector<32x128xf32>,
    return
  }
  func.func @transform_0(%arg0: i32) -> (i32, i32) {
    %c0_i32 = arith.constant 0 : i32
    %c0_i32_0 = arith.constant 0 : i32
    return %arg0, %c0_i32 : i32, i32
  }
  func.func @transform_1(%arg0: i32) -> (i32, i32) {
    %c0_i32 = arith.constant 0 : i32
    %c0_i32_0 = arith.constant 0 : i32
    return %arg0, %c0_i32 : i32, i32
  }
  func.func @transform_2(%arg0: i32) -> (i32, i32) {
    %c0_i32 = arith.constant 0 : i32
    %c0_i32_0 = arith.constant 0 : i32
    %c0_i32_1 = arith.constant 0 : i32
    return %c0_i32, %c0_i32_0 : i32, i32
  }
  func.func @transform_3(%arg0: i32) -> (i32, i32) {
    %c0_i32 = arith.constant 0 : i32
    %c0_i32_0 = arith.constant 0 : i32
    %c0_i32_1 = arith.constant 0 : i32
    return %c0_i32, %c0_i32_0 : i32, i32
  }
  func.func @transform_4(%arg0: i32) -> (i32, i32) {
    %c0_i32 = arith.constant 0 : i32
    %c0_i32_0 = arith.constant 0 : i32
    %c0_i32_1 = arith.constant 0 : i32
    return %c0_i32, %c0_i32_0 : i32, i32
  }
  func.func @transform_5(%arg0: i32) -> (i32, i32) {
    %c0_i32 = arith.constant 0 : i32
    %c0_i32_0 = arith.constant 0 : i32
    %c0_i32_1 = arith.constant 0 : i32
    return %c0_i32, %c0_i32_0 : i32, i32
  }
  func.func @transform_6(%arg0: i32) -> (i32, i32, i32) {
    %c0_i32 = arith.constant 0 : i32
    %c0_i32_0 = arith.constant 0 : i32
    %c0_i32_1 = arith.constant 0 : i32
    %c0_i32_2 = arith.constant 0 : i32
    return %c0_i32, %c0_i32_0, %c0_i32_1 : i32, i32, i32
  }
  func.func @transform_7(%arg0: i32) -> (i32, i32, i32) {
    %c0_i32 = arith.constant 0 : i32
    %c0_i32_0 = arith.constant 0 : i32
    %c0_i32_1 = arith.constant 0 : i32
    %c0_i32_2 = arith.constant 0 : i32
    return %c0_i32, %c0_i32_0, %c0_i32_1 : i32, i32, i32
  }
  func.func @transform_8(%arg0: i32) -> (i32, i32, i32) {
    %c0_i32 = arith.constant 0 : i32
    %c0_i32_0 = arith.constant 0 : i32
    %c0_i32_1 = arith.constant 0 : i32
    %c0_i32_2 = arith.constant 0 : i32
    return %c0_i32, %c0_i32_0, %c0_i32_1 : i32, i32, i32
  }
  func.func @transform_9(%arg0: i32) -> (i32, i32, i32) {
    %c0_i32 = arith.constant 0 : i32
    %c0_i32_0 = arith.constant 0 : i32
    %c0_i32_1 = arith.constant 0 : i32
    %c0_i32_2 = arith.constant 0 : i32
    return %c0_i32, %c0_i32_0, %c0_i32_1 : i32, i32, i32
  }
  func.func @transform_10(%arg0: i32) -> (i32, i32, i32) {
    %c0_i32 = arith.constant 0 : i32
    %c0_i32_0 = arith.constant 0 : i32
    %c0_i32_1 = arith.constant 0 : i32
    %c0_i32_2 = arith.constant 0 : i32
    return %c0_i32, %c0_i32_0, %c0_i32_1 : i32, i32, i32
  }
  func.func @transform_11(%arg0: i32) -> (i32, i32, i32) {
    %c0_i32 = arith.constant 0 : i32
    %c0_i32_0 = arith.constant 0 : i32
    %c0_i32_1 = arith.constant 0 : i32
    %c0_i32_2 = arith.constant 0 : i32
    return %c0_i32, %c0_i32_0, %c0_i32_1 : i32, i32, i32
  }
  func.func @transform_12(%arg0: i32) -> (i32, i32, i32) {
    %c0_i32 = arith.constant 0 : i32
    %c0_i32_0 = arith.constant 0 : i32
    %c0_i32_1 = arith.constant 0 : i32
    %c0_i32_2 = arith.constant 0 : i32
    return %c0_i32, %c0_i32_0, %c0_i32_1 : i32, i32, i32
  }
  func.func @transform_13(%arg0: i32) -> (i32, i32) {
    %c0_i32 = arith.constant 0 : i32
    %c0_i32_0 = arith.constant 0 : i32
    %c0_i32_1 = arith.constant 0 : i32
    return %c0_i32, %c0_i32_0 : i32, i32
  }
  func.func @transform_14(%arg0: i32) -> (i32, i32) {
    %c0_i32 = arith.constant 0 : i32
    %c0_i32_0 = arith.constant 0 : i32
    %c0_i32_1 = arith.constant 0 : i32
    return %c0_i32, %c0_i32_0 : i32, i32
  }
  func.func @transform_15(%arg0: i32) -> (i32, i32) {
    %c0_i32 = arith.constant 0 : i32
    %c0_i32_0 = arith.constant 0 : i32
    %c0_i32_1 = arith.constant 0 : i32
    return %c0_i32, %c0_i32_0 : i32, i32
  }
  func.func @transform_16(%arg0: i32) -> (i32, i32) {
    %c0_i32 = arith.constant 0 : i32
    %c0_i32_0 = arith.constant 0 : i32
    %c0_i32_1 = arith.constant 0 : i32
    return %c0_i32, %c0_i32_0 : i32, i32
  }
  func.func @transform_17(%arg0: i32) -> (i32, i32) {
    %c0_i32 = arith.constant 0 : i32
    %c0_i32_0 = arith.constant 0 : i32
    %c0_i32_1 = arith.constant 0 : i32
    return %c0_i32, %c0_i32_0 : i32, i32
  }
  func.func @transform_18(%arg0: i32) -> (i32, i32) {
    %c0_i32 = arith.constant 0 : i32
    %c0_i32_0 = arith.constant 0 : i32
    %c0_i32_1 = arith.constant 0 : i32
    return %c0_i32, %c0_i32_0 : i32, i32
  }
  func.func @transform_19(%arg0: i32) -> (i32, i32) {
    %c0_i32 = arith.constant 0 : i32
    %c0_i32_0 = arith.constant 0 : i32
    %c0_i32_1 = arith.constant 0 : i32
    return %c0_i32, %c0_i32_0 : i32, i32
  }
  func.func @transform_20(%arg0: i32) -> (i32, i32) {
    %c0_i32 = arith.constant 0 : i32
    %c0_i32_0 = arith.constant 0 : i32
    %c0_i32_1 = arith.constant 0 : i32
    return %c0_i32, %c0_i32_0 : i32, i32
  }
  func.func @transform_21(%arg0: i32) -> (i32, i32) {
    %c0_i32 = arith.constant 0 : i32
    %c0_i32_0 = arith.constant 0 : i32
    %c0_i32_1 = arith.constant 0 : i32
    return %c0_i32, %c0_i32_0 : i32, i32
  }
  func.func @transform_22(%arg0: i32) -> (i32, i32) {
    %c0_i32 = arith.constant 0 : i32
    %c0_i32_0 = arith.constant 0 : i32
    return %arg0, %c0_i32 : i32, i32
  }
  func.func @transform_23(%arg0: i32) -> (i32, i32) {
    %c0_i32 = arith.constant 0 : i32
    %c0_i32_0 = arith.constant 0 : i32
    return %arg0, %c0_i32 : i32, i32
  }
}

</mosaic_0001>

<bundles_post_ra>
// kernel: tpu_custom_call.1
= control target key start
LH: loop header
LB: loop body
LE: loop exit
PB: predicated region body
PF: predicated region fallthrough
CT: control target
= control target key end

     0   :  { %s6829_s0 = inlined_call_operand.vmem [shape: f32[64,128], index: 0, kind: input, shape index: {}]   ;;  %s6830_s1 = inlined_call_operand.hbm [shape: f32[64,128], index: 1, kind: input, shape index: {}, may-alias: {1,23}]   ;;  %s6831_s2 = inlined_call_operand.vmem [shape: bf16[128,128], index: 2, kind: input, shape index: {}]   ;;  %s6832_s3 = inlined_call_operand.vmem [shape: f32[1,128], index: 3, kind: input, shape index: {}]   ;;  %s6833_s4 = inlined_call_operand.vmem [shape: f32[1,128], index: 4, kind: input, shape index: {}]   ;;  %s6834_s5 = inlined_call_operand.vmem [shape: f32[1,128], index: 5, kind: input, shape index: {}]   ;;  %s6835_s6 = inlined_call_operand.vmem [shape: bf16[4,128,32], index: 6, kind: input, shape index: {}]   ;;  %s6836_s7 = inlined_call_operand.vmem [shape: f32[4,1,32], index: 7, kind: input, shape index: {}]   ;;  %s6837_s8 = inlined_call_operand.vmem [shape: bf16[4,128,32], index: 8, kind: input, shape index: {}]   ;;  %s6838_s9 = inlined_call_operand.vmem [shape: f32[4,1,32], index: 9, kind: input, shape index: {}]   ;;  %s6839_s10 = inlined_call_operand.vmem [shape: bf16[4,128,32], index: 10, kind: input, shape index: {}]   ;;  %s6840_s11 = inlined_call_operand.vmem [shape: f32[4,1,32], index: 11, kind: input, shape index: {}]   ;;  %s6841_s12 = inlined_call_operand.vmem [shape: bf16[4,32,128], index: 12, kind: input, shape index: {}]   ;;  %s6842_s13 = inlined_call_operand.vmem [shape: f32[1,128], index: 13, kind: input, shape index: {}]   ;;  %s6843_s14 = inlined_call_operand.vmem [shape: f32[3,128], index: 14, kind: input, shape index: {}]   ;;  %s6844_s15 = inlined_call_operand.vmem [shape: f32[1,128], index: 15, kind: input, shape index: {}]   ;;  %s6845_s16 = inlined_call_operand.vmem [shape: f32[1,128], index: 16, kind: input, shape index: {}]   ;;  %s6846_s17 = inlined_call_operand.vmem [shape: f32[1,128], index: 17, kind: input, shape index: {}]   ;;  %s6847_s18 = inlined_call_operand.vmem [shape: bf16[128,256], index: 18, kind: input, shape index: {}]   ;;  %s6848_s19 = inlined_call_operand.vmem [shape: f32[1,256], index: 19, kind: input, shape index: {}]   ;;  %s6849_s20 = inlined_call_operand.vmem [shape: bf16[256,128], index: 20, kind: input, shape index: {}]   ;;  %s6850_s21 = inlined_call_operand.vmem [shape: f32[1,128], index: 21, kind: input, shape index: {}]   ;;  %s6851_s22 = inlined_call_operand.hbm [shape: f32[64,128], index: 22, kind: output, shape index: {0}]   ;;  %s6852_s23 = inlined_call_operand.hbm [shape: f32[64,128], index: 23, kind: output, shape index: {1}, may-alias: {1,23}]  }
   0x1   :  { %6869 = sst [smem:[#allocation17_spill]] %s6829_s0 }
   0x2   :  { %6870 = sst [smem:[#allocation18_spill]] %s6830_s1 }
   0x3   :  { %6871 = sst [smem:[#allocation19_spill]] %s6831_s2 }
   0x4   :  { %6872 = sst [smem:[#allocation20_spill]] %s6832_s3 }
   0x5   :  { %6873 = sst [smem:[#allocation21_spill]] %s6833_s4 }
   0x6   :  { %6874 = sst [smem:[#allocation22_spill]] %s6834_s5 }
   0x7   :  { %6875 = sst [smem:[#allocation23_spill]] %s6835_s6 }
   0x8   :  { %6876 = sst [smem:[#allocation24_spill]] %s6836_s7 }
   0x9   :  { %6877 = sst [smem:[#allocation25_spill]] %s6837_s8 }
   0xa   :  { %6878 = sst [smem:[#allocation26_spill]] %s6838_s9 }
   0xb   :  { %6879 = sst [smem:[#allocation27_spill]] %s6839_s10 }
   0xc   :  { %6880 = sst [smem:[#allocation28_spill]] %s6840_s11 }
   0xd   :  { %6881 = sst [smem:[#allocation29_spill]] %s6848_s19 }
   0xe   :  { %6882 = sst [smem:[#allocation30_spill]] %s6849_s20 }
   0xf   :  { %6883 = sst [smem:[#allocation31_spill]] %s6850_s21 }
  0x10   :  { %6884 = sst [smem:[#allocation32_spill]] %s6851_s22 }
  0x11   :  { %6885 = sst [smem:[#allocation33_spill]] %s6852_s23 }
  0x12   :  { %29 = vsyncpa [#allocation3], 0 }
  0x13   :  { %31 = vsyncpa [#allocation3 + $0x1], 0 }
  0x14   :  { %32 = vsyncpa [#allocation4], 0 }
  0x15   :  { %34 = vsyncpa [#allocation4 + $0x1], 0 }
  0x16   :  { %35 = vsyncpa [#allocation7], 0 }
  0x17   :  { %37 = vsyncpa [#allocation7 + $0x1], 0  ;;  %s5489_s4 = smov 0   ;;  %s5491_s30 = smov 0  }
  0x18   :  { %s5493_s24 = smov 0   ;;  %s5495_s25 = smov 0  }
  0x19 LB: > { %6886 = sst [smem:[#allocation11_spill]] %s5350_s4  ;;  %s5510_s5 = sadd.s32 4294967295, %s5362_s25   ;;  %s5362_s25 = sphi %s5495_s25, %s6931_s25   ;;  %s5358_s24 = sphi %s5493_s24, %s6936_s24   ;;  %s5354_s30 = sphi %s5491_s30, %s6935_s30   ;;  %s5350_s4 = sphi %s5489_s4, %s6934_s4  }
  0x1a   : > { %6887 = sst [smem:[#allocation12_spill]] %s5358_s24  ;;  %s4092_s1 = sadd.s32 4294967294, %s5362_s25  }
  0x1b   : > { %s5514_s26 = sadd.s32 1, %s5362_s25   ;;  %s76_s2 = sadd.s32 1, %s5358_s24 }
  0x1c   : > { %6888 = sst [smem:[#allocation13_spill]] %s5514_s26  ;;  %s73_s6 = ssub.s32 %s5362_s25, %s5514_s26 }
  0x1d   : > { %p83_p0 = scmp.ne.s32.totalorder %s5358_s24, %s5354_s30  ;;  %p74_p1 = scmp.eq.s32.totalorder %s73_s6, 0 }
  0x1e   : > { %p84_p2 = scmp.eq.s32.totalorder %s5362_s25, 0  ;;  %p89_p3 = scmp.ne.s32.totalorder %s5354_s30, %s5350_s4 }
  0x1f   : > { %p90_p4 = scmp.eq.s32.totalorder %s5510_s5, 0  ;;  %p533_p7 = scmp.eq.s32.totalorder %s5510_s5, 1 }
  0x20   : > { %s5526_s27 = scalar_select %p74_p1, %s5358_s24, %s76_s2  }
  0x21   : > { %p5528_p5 = por %p84_p2, %p83_p0  ;;  %p5532_p6 = por %p90_p4, %p89_p3 }
  0x22   : > { %6889 = sst [smem:[#allocation14_spill]] %s5526_s27  ;;  %p539_p8 = scmp.eq.s32.totalorder %s4092_s1, 1 }
  0x23   : > { %p5053_p10 = scmp.lt.s32.totalorder %s5362_s25, 2  ;;  %p5539_p11 = por %p533_p7, %p83_p0 }
  0x24   : > { %p5543_p12 = por %p539_p8, %p89_p3  ;;  %s654_s0 = sand.u32 1, %s5358_s24  }
  0x25   : > { %s6892_s29 = scalar_select %p5539_p11, 1, 0 }
  0x26   : > { %s6894_s3 = scalar_select %p5543_p12, 1, 0 }
  0x27   : > { %6893 = sst [smem:[#allocation15_spill]] %s6892_s29  ;;  %s4889_s2 = sshll.u32 %s5362_s25, 5 }
  0x28   : > { %6895 = sst [smem:[#allocation16_spill]] %s6894_s3  ;;  %s4095_s6 = sshll.u32 %s654_s0, 5 }
  0x29   : > { %s6896_s4 = sld [smem:[#allocation18_spill]]  ;;  %s658_s1 = scalar_lea.vmem [#allocation2], %s4095_s6 }
  0x2a   : > { %s666_s20 = sshll.u32 %s658_s1, 4  ;;  %p5554_p13 = pnand %p5053_p10, %p5528_p5  ;;  %s667_s20 = int_to_ptr.vmem [resolvable:$true] %s666_s20 }
  0x2b   : > { %p4098_p0 = scmp.ge.s32.totalorder %s5362_s25, 1  ;;  %p674_p1 = scmp.lt.s32.totalorder %s5362_s25, 3 }
  0x2c   : > { %s655_s24 = scalar_lea.sflag [#allocation3], %s654_s0  ;;  %p5238_p3 = pneg %p5554_p13 }
  0x2f   : > { %s6897_s22 = smov %s6896_s4  ;;  %s663_s21 = scalar_lea.hbm %s6896_s4, %s4889_s2 }
  0x30   : > { %s664_s23 = sshll.u32 %s663_s21, 4  ;;  %s5241_s26 = scalar_lea.hbm %s6897_s22, 64  ;;  %s665_s23 = int_to_ptr.hbm [resolvable:$true] %s664_s23 }
  0x31   : > { %s5234_s3 = sshra.s32 %s665_s23, 4  ;;  %s5235_s3 = int_to_ptr.hbm [resolvable:$true] %s5234_s3 }
  0x32   : > { %s5236_s29 = scalar_lea.hbm %s5235_s3, 32  ;;  %p5242_p5 = scmp.lt.s32.totalorder %s5235_s3, %s6897_s22 }
  0x33   : > { %p5237_p2 = scmp.ne.s32.totalorder %s5235_s3, %s5236_s29  ;;  %p5243_p8 = scmp.lt.s32.totalorder %s5241_s26, %s5236_s29 }
  0x35   : > { %p5239_p4 = pnand %p5238_p3, %p5237_p2  ;;  %p5244_p10 = por %p5243_p8, %p5242_p5 }
  0x37   : > { %p5240_p7 = pneg %p5239_p4 }
  0x39   : > { %p5245_p9 = pnand %p5244_p10, %p5240_p7 }
  0x3b   : > { %5248 = shalt.err (!%p5245_p9)
}
  0x3c   : > { %s5364_s0 = smov 128   ;;  %s5365_s2 = smov 8  }
  0x3d   : > { %5045 = dma.hbm_to_vmem [thread:$0]  (!%p5554_p13), %s665_s23, 512, %s667_s20, %s655_s24, %s5364_s0, %s5364_s0, %s5365_s2  }
  0x3e   : > { %p675_p2 = pnand %p4098_p0, %p674_p1 }
  0x3f   : > { %s5575_s6 = sand.u32 (!%p675_p2), 1, %s5354_s30  }
  0x40   : > { %678 = sbr.rel (%p675_p2) target bundleno = 3482 (0xd9a), region = 108  ;;  %s5578_s29 = sshll.u32 (!%p675_p2), %s5575_s6, 5 }
  0x41   : > { %s681_s3 = scalar_lea.sflag (!%p675_p2), [#allocation3], %s5575_s6  ;;  %s5582_s1 = scalar_lea.vmem (!%p675_p2), [#allocation2], %s5578_s29 }
  0x45   : > { %5337 = dma.done.wait (%p5532_p6), %s681_s3, 512  }
  0x46   : > { %5339 = vsyncadd (%p5532_p6), %s681_s3, 4294966784  ;;  %s4102_s19 = sshll.u32 %s5510_s5, 2  ;;  %s6899_s21 = sld [smem:[#allocation17_spill]]  ;;  %v5366_v4 = vmov 128.0   ;;  %vm1265_vm13 = vcmask 261120   ;;  %vm1316_vm14 = vcmask 130048  }
  0x47   : > { %p759_p9 = scmp.lt.s32.totalorder %s4102_s19, 7  ;;  %5112 = vrcp.f32 %v5366_v4  ;;  %s6900_s27 = sld [smem:[#allocation23_spill]] }
  0x48   : > { %s6901_s8 = sld [smem:[#allocation25_spill]]  ;;  %s3942_s2 = scalar_lea.sflag [#allocation7], %s5575_s6 }
  0x49   : > { %s6938_s19 = smov (!%p759_p9, %s4102_s19), 7  ;;  %s6902_s10 = sld [smem:[#allocation27_spill]] }
  0x4a   : > { %s4103_s20 = sshll.u32 %s6938_s19, 3  ;;  %s6903_s19 = sld [smem:[#allocation19_spill]] }
  0x4b   : > { %s6904_s28 = sld [smem:[#allocation21_spill]] }
  0x4c   : > { %s5592_s4 = scalar_lea.vmem %s6899_s21, %s4103_s20  ;;  %s6905_s3 = sld [smem:[#allocation22_spill]] }
  0x4d   : > { %v5595_v0 = vld [vmem:[%s5592_s4 + $0x10] sm:$0xff]  ;;  %v5598_v1 = vld [vmem:[%s5592_s4] sm:$0xff]  ;;  %v5603_v2 = vld [vmem:[%s5592_s4 + $0x18] sm:$0xff]  ;;  %v5113_v5 = vpop.eup %5112  ;;  %s6906_s9 = sld [smem:[#allocation26_spill]]  ;;  %s5034_s21 = sshll.u32 %s5510_s5, 5 }
  0x4e   : > { %879 = vadd.xlane.f32.xlu1 %v5595_v0  ;;  %875 = vadd.xlane.f32.xlu0 %v5598_v1  ;;  %v5606_v3 = vld [vmem:[%s5592_s4 + $0x8] sm:$0xff]  ;;  %v884_v6 = vmul.f32 128.0, %v5113_v5  ;;  %vm888_vm0 = vweird.f32 %v5113_v5  ;;  %v4905_v27 = vld [vmem:[%s6900_s27 + $0x38] sm:$0xff]  ;;  %v4904_v30 = vld [vmem:[%s6900_s27 + $0x30] sm:$0xff]  ;;  %s6907_s11 = sld [smem:[#allocation28_spill]] }
  0x4f   : > { %v4913_v28 = vld [vmem:[%s6901_s8 + $0x38] sm:$0xff]  ;;  %1046 = vmatpush.bf16.msra.mxu1 %v4905_v27  ;;  %v4912_v31 = vld [vmem:[%s6901_s8 + $0x30] sm:$0xff]  ;;  %v4903_v33 = vld [vmem:[%s6900_s27 + $0x28] sm:$0xff]  ;;  %s6908_s7 = sld [smem:[#allocation24_spill]] }
  0x50   : > { %v885_v7 = vsub.f32 1.0, %v884_v6  ;;  %v4921_v29 = vld [vmem:[%s6902_s10 + $0x38] sm:$0xff]  ;;  %1133 = vmatpush.bf16.msra.mxu2 %v4913_v28  ;;  %v4920_v32 = vld [vmem:[%s6902_s10 + $0x30] sm:$0xff]  ;;  %v4911_v34 = vld [vmem:[%s6901_s8 + $0x28] sm:$0xff]  ;;  %s6912_s0 = sld [smem:[#allocation29_spill]] }
  0x51   : > { %1220 = vmatpush.bf16.msra.mxu3 %v4921_v29  ;;  %v4919_v35 = vld [vmem:[%s6902_s10 + $0x28] sm:$0xff]  ;;  %v4902_v36 = vld [vmem:[%s6900_s27 + $0x20] sm:$0xff]  ;;  %v4901_v39 = vld [vmem:[%s6900_s27 + $0x18] sm:$0xff]  ;;  %s6913_s23 = sld [smem:[#allocation30_spill]] }
  0x52   : > { %v886_v8 = vmul.f32 %v5113_v5, %v885_v7  ;;  %v4910_v37 = vld [vmem:[%s6901_s8 + $0x20] sm:$0xff]  ;;  %v4909_v40 = vld [vmem:[%s6901_s8 + $0x18] sm:$0xff]  ;;  %v4900_v42 = vld [vmem:[%s6900_s27 + $0x10] sm:$0xff]  ;;  %s6925_s26 = sld [smem:[#allocation33_spill]] }
  0x53   : > { %1047 = vmatpush.bf16.msra.mxu1 %v4904_v30  ;;  %v4918_v38 = vld [vmem:[%s6902_s10 + $0x20] sm:$0xff]  ;;  %v4917_v41 = vld [vmem:[%s6902_s10 + $0x18] sm:$0xff]  ;;  %v4908_v43 = vld [vmem:[%s6901_s8 + $0x10] sm:$0xff] }
  0x54   : > { %v887_v9 = vadd.f32 %v5113_v5, %v886_v8  ;;  %1134 = vmatpush.bf16.msra.mxu2 %v4912_v31  ;;  %v4916_v44 = vld [vmem:[%s6902_s10 + $0x10] sm:$0xff]  ;;  %v4899_v45 = vld [vmem:[%s6900_s27 + $0x8] sm:$0xff]  ;;  %v4898_v52 = vld [vmem:[%s6900_s27] sm:$0xff] }
  0x55   : > { %1221 = vmatpush.bf16.msra.mxu3 %v4920_v32  ;;  %v4907_v46 = vld [vmem:[%s6901_s8 + $0x8] sm:$0xff]  ;;  %v4906_v53 = vld [vmem:[%s6901_s8] sm:$0xff]  ;;  %v4896_v28 = vld [vmem:[%s6903_s19 + $0x30] sm:$0xff] }
  0x56   : > { %881 = vadd.xlane.f32.xlu1 %v5603_v2  ;;  %877 = vadd.xlane.f32.xlu0 %v5606_v3  ;;  %v5610_v10 = vsel %vm888_vm0, %v5113_v5, %v887_v9  ;;  %v4915_v47 = vld [vmem:[%s6902_s10 + $0x8] sm:$0xff]  ;;  %v4914_v55 = vld [vmem:[%s6902_s10] sm:$0xff] }
  0x57   : > { %1048 = vmatpush.bf16.msra.mxu1 %v4903_v33  ;;  %v5092_v29 = vld [vmem:[%s6904_s28] ss:$0 sm:$0xff]  ;;  %s6909_s28 = sld [smem:[#allocation20_spill]] }
  0x58   : > { %1135 = vmatpush.bf16.msra.mxu2 %v4911_v34 }
  0x59   : > { %1222 = vmatpush.bf16.msra.mxu3 %v4919_v35  ;;  %v4895_v35 = vld [vmem:[%s6903_s19 + $0x28] sm:$0xff] }
  0x5b   : > { %1049 = vmatpush.bf16.msra.mxu1 %v4902_v36  ;;  %v5093_v36 = vld [vmem:[%s6905_s3] ss:$0 sm:$0xff]  ;;  %s5824_s3 = scalar_lea.vmem [#allocation6], %s5578_s29 }
  0x5c   : > { %1136 = vmatpush.bf16.msra.mxu2 %v4910_v37 }
  0x5d   : > { %1223 = vmatpush.bf16.msra.mxu3 %v4918_v38 }
  0x5f   : > { %1050 = vmatpush.bf16.msra.mxu1 %v4901_v39 }
  0x60   : > { %1137 = vmatpush.bf16.msra.mxu2 %v4909_v40 }
  0x61   : > { %1224 = vmatpush.bf16.msra.mxu3 %v4917_v41  ;;  %v4894_v41 = vld [vmem:[%s6903_s19 + $0x20] sm:$0xff] }
  0x63   : > { %1051 = vmatpush.bf16.msra.mxu1 %v4900_v42 }
  0x64   : > { %1138 = vmatpush.bf16.msra.mxu2 %v4908_v43 }
  0x65   : > { %1225 = vmatpush.bf16.msra.mxu3 %v4916_v44 }
  0x67   : > { %1052 = vmatpush.bf16.msra.mxu1 %v4899_v45 }
  0x68   : > { %1139 = vmatpush.bf16.msra.mxu2 %v4907_v46  ;;  %v4893_v46 = vld [vmem:[%s6903_s19 + $0x18] sm:$0xff] }
  0x69   : > { %1226 = vmatpush.bf16.msra.mxu3 %v4915_v47 }
  0x6b   : > { %1053 = vmatpush.bf16.msra.mxu1 %v4898_v52  ;;  %v4891_v52 = vld [vmem:[%s6903_s19 + $0x8] sm:$0xff] }
  0x6c   : > { %1140 = vmatpush.bf16.msra.mxu2 %v4906_v53 }
  0x6d   : > { %1227 = vmatpush.bf16.msra.mxu3 %v4914_v55  ;;  %v772_v55 = vld [vmem:[%s5582_s1] sm:$0xff] }
  0xc1   : > { %v880_v11 = vpop.xlane.xlu1 %879  ;;  %v876_v12 = vpop.xlane.xlu0 %875 }
  0xc2   : > { %v892_v13 = vmul.f32 %v5610_v10, %v880_v11  ;;  %v890_v14 = vmul.f32 %v5610_v10, %v876_v12 }
  0xc4   : > { %v5615_v15 = vsub.f32 %v5595_v0, %v892_v13  ;;  %v5618_v16 = vsub.f32 %v5598_v1, %v890_v14 }
  0xc6   : > { %v900_v17 = vmul.f32 %v5615_v15, %v5615_v15  ;;  %v898_v18 = vmul.f32 %v5618_v16, %v5618_v16 }
  0xc8   : > { %906 = vadd.xlane.f32.xlu0 %v900_v17  ;;  %902 = vadd.xlane.f32.xlu2 %v898_v18 }
  0xc9   : > { %v882_v19 = vpop.xlane.xlu1 %881  ;;  %v878_v20 = vpop.xlane.xlu0 %877 }
  0xca   : > { %v893_v21 = vmul.f32 %v5610_v10, %v882_v19  ;;  %v891_v22 = vmul.f32 %v5610_v10, %v878_v20 }
  0xcc   : > { %v5627_v23 = vsub.f32 %v5603_v2, %v893_v21  ;;  %v5630_v24 = vsub.f32 %v5606_v3, %v891_v22 }
  0xce   : > { %v901_v25 = vmul.f32 %v5627_v23, %v5627_v23  ;;  %v899_v26 = vmul.f32 %v5630_v24, %v5630_v24 }
  0xd0   : > { %908 = vadd.xlane.f32.xlu1 %v901_v25  ;;  %904 = vadd.xlane.f32.xlu2 %v899_v26  ;;  %v4897_v25 = vld [vmem:[%s6903_s19 + $0x38] sm:$0xff] }
  0xd1   : > { %846 = vmatpush.bf16.msra.mxu0 %v4897_v25 }
  0xd5   : > { %847 = vmatpush.bf16.msra.mxu0 %v4896_v28 }
  0xd9   : > { %848 = vmatpush.bf16.msra.mxu0 %v4895_v35  ;;  %v4931_v35 = vld [vmem:[%s6900_s27 + $0x78] sm:$0xff] }
  0xdd   : > { %849 = vmatpush.bf16.msra.mxu0 %v4894_v41  ;;  %v4930_v41 = vld [vmem:[%s6900_s27 + $0x70] sm:$0xff] }
  0xe1   : > { %850 = vmatpush.bf16.msra.mxu0 %v4893_v46 }
 0x13b   : > { %v903_v48 = vpop.xlane.xlu2 %902  ;;  %v907_v50 = vpop.xlane.xlu0 %906 }
 0x13c   : > { %v910_v49 = vmul.f32 %v903_v48, %v5610_v10  ;;  %v912_v54 = vmul.f32 %v907_v50, %v5610_v10 }
 0x13e   : > { %v914_v51 = vadd.f32 1e-05, %v910_v49  ;;  %v916_v56 = vadd.f32 1e-05, %v912_v54  ;;  %v4892_v49 = vld [vmem:[%s6903_s19 + $0x10] sm:$0xff] }
 0x13f   : > { %851 = vmatpush.bf16.msra.mxu0 %v4892_v49 }
 0x140   : > { %5114 = vrsqrt.f32 %v914_v51  ;;  %vm924_vm2 = vweird.f32 %v914_v51  ;;  %vm944_vm9 = vweird.f32 %v916_v56 }
 0x141   : > { %5116 = vrsqrt.f32 %v916_v56 }
 0x143   : > { %v909_v57 = vpop.xlane.xlu1 %908  ;;  %v905_v58 = vpop.xlane.xlu2 %904  ;;  %852 = vmatpush.bf16.msra.mxu0 %v4891_v52 }
 0x144   : > { %v913_v59 = vmul.f32 %v909_v57, %v5610_v10  ;;  %v911_v60 = vmul.f32 %v905_v58, %v5610_v10 }
 0x146   : > { %v5115_v61 = vpop.eup %5114  ;;  %v917_v62 = vadd.f32 1e-05, %v913_v59  ;;  %v915_v63 = vadd.f32 1e-05, %v911_v60  ;;  %v774_v59 = vld [vmem:[%s5582_s1 + $0x10] sm:$0xff]  ;;  %v775_v60 = vld [vmem:[%s5582_s1 + $0x18] sm:$0xff] }
 0x147   : > { %v919_v4 = vmul.f32 %v5115_v61, %v914_v51  ;;  %v5117_v7 = vpop.eup %5116  ;;  %vm925_vm1 = vweird.f32 %v5115_v61 }
 0x148   : > { %5118 = vrsqrt.f32 %v917_v62  ;;  %v939_v14 = vmul.f32 %v5117_v7, %v916_v56  ;;  %vm926_vm3 = vmor %vm924_vm2, %vm925_vm1  ;;  %vm934_vm5 = vweird.f32 %v915_v63  ;;  %vm954_vm7 = vweird.f32 %v917_v62  ;;  %v773_v56 = vld [vmem:[%s5582_s1 + $0x8] sm:$0xff]  ;;  %s3970_s1 = scalar_lea.hbm %s6925_s26, %s5034_s21 }
 0x149   : > { %v920_v5 = vmul.f32 %v5115_v61, %v919_v4  ;;  %5120 = vrsqrt.f32 %v915_v63  ;;  %vm945_vm10 = vweird.f32 %v5117_v7  ;;  %v5095_v4 = vld [vmem:[%s6906_s9] ss:$0 sm:$0xff] }
 0x14a   : > { %v940_v21 = vmul.f32 %v5117_v7, %v939_v14  ;;  %vm946_vm12 = vmor %vm944_vm9, %vm945_vm10 }
 0x14b   : > { %v921_v6 = vmul.f32 0.5, %v920_v5 }
 0x14c   : > { %v941_v31 = vmul.f32 0.5, %v940_v21 }
 0x14d   : > { %v922_v8 = vsub.f32 1.5, %v921_v6  ;;  %v5096_v6 = vld [vmem:[%s6907_s11] ss:$0 sm:$0xff] }
 0x14e   : > { %v5119_v9 = vpop.eup %5118  ;;  %v942_v39 = vsub.f32 1.5, %v941_v31 }
 0x14f   : > { %v5121_v11 = vpop.eup %5120  ;;  %v949_v12 = vmul.f32 %v5119_v9, %v917_v62  ;;  %v923_v13 = vmul.f32 %v5115_v61, %v922_v8  ;;  %vm955_vm8 = vweird.f32 %v5119_v9  ;;  %v5094_v8 = vld [vmem:[%s6908_s7] ss:$0 sm:$0xff] }
 0x150   : > { %v929_v17 = vmul.f32 %v5121_v11, %v915_v63  ;;  %vm935_vm4 = vweird.f32 %v5121_v11  ;;  %vm956_vm11 = vmor %vm954_vm7, %vm955_vm8  ;;  %v943_v44 = vmul.f32 %v5117_v7, %v942_v39 }
 0x151   : > { %v950_v18 = vmul.f32 %v5119_v9, %v949_v12  ;;  %v927_v20 = vsel %vm926_vm3, %v5115_v61, %v923_v13  ;;  %vm936_vm6 = vmor %vm934_vm5, %vm935_vm4  ;;  %v793_v61 = vpack.c.bf16 %v775_v60, %v774_v59 }
 0x152   : > { %v930_v19 = vmul.f32 %v5121_v11, %v929_v17  ;;  %v958_v30 = vmul.f32 %v927_v20, %v5618_v16  ;;  %v947_v47 = vsel %vm946_vm12, %v5117_v7, %v943_v44 }
 0x153   : > { %v951_v26 = vmul.f32 0.5, %v950_v18  ;;  %v960_v50 = vmul.f32 %v947_v47, %v5615_v15  ;;  %v792_v15 = vpack.c.bf16 %v773_v56, %v772_v55 }
 0x154   : > { %v931_v22 = vmul.f32 0.5, %v930_v19  ;;  %v965_v37 = vmul.f32 %v5092_v29, %v958_v30 }
 0x155   : > { %v952_v33 = vsub.f32 1.5, %v951_v26  ;;  %v967_v53 = vmul.f32 %v5092_v29, %v960_v50 }
 0x156   : > { %v932_v27 = vsub.f32 1.5, %v931_v22  ;;  %v972_v42 = vadd.f32 %v5093_v36, %v965_v37 }
 0x157   : > { %v953_v40 = vmul.f32 %v5119_v9, %v952_v33  ;;  %v974_v57 = vadd.f32 %v5093_v36, %v967_v53 }
 0x158   : > { %v933_v32 = vmul.f32 %v5121_v11, %v932_v27 }
 0x15a   : > { %v937_v34 = vsel %vm936_vm6, %v5121_v11, %v933_v32 }
 0x15b   : > { %v959_v38 = vmul.f32 %v937_v34, %v5630_v24  ;;  %v957_v24 = vsel %vm956_vm11, %v5119_v9, %v953_v40 }
 0x15c   : > { %v961_v48 = vmul.f32 %v957_v24, %v5627_v23  ;;  %v4890_v23 = vld [vmem:[%s6903_s19] sm:$0xff]  ;;  %s3971_s19 = sshll.u32 %s5824_s3, 4  ;;  %s3972_s19 = int_to_ptr.vmem [resolvable:$true] %s3971_s19 }
 0x15d   : > { %v966_v16 = vmul.f32 %v5092_v29, %v959_v38  ;;  %853 = vmatpush.bf16.msra.mxu0 %v4890_v23 }
 0x15e   : > { %v968_v51 = vmul.f32 %v5092_v29, %v961_v48  ;;  %v4929_v48 = vld [vmem:[%s6900_s27 + $0x68] sm:$0xff] }
 0x15f   : > { %v973_v43 = vadd.f32 %v5093_v36, %v966_v16 }
 0x160   : > { %v975_v54 = vadd.f32 %v5093_v36, %v968_v51  ;;  %854 = vmatmul.bf16.vlgmr.msra.gmra.mxu0 %v792_v15 }
 0x161   : > { %v5732_v45 = vpack.c.bf16 %v973_v43, %v972_v42 }
 0x162   : > { %v5753_v58 = vpack.c.bf16 %v975_v54, %v974_v57  ;;  %v4928_v57 = vld [vmem:[%s6900_s27 + $0x60] sm:$0xff] }
 0x163   : > { %1054 = vmatmul.bf16.vlgmr.msra.gmra.mxu1 %v5732_v45  ;;  %1141 = vmatmul.bf16.vlgmr.msra.gmra.mxu2 %v5732_v45 }
 0x164   : > { %1228 = vmatmul.bf16.vlgmr.msra.gmra.mxu3 %v5732_v45 }
 0x170   : > { %859 = vmatmul.bf16.gmra.mxu0 %v793_v61 }
 0x173   : > { %1059 = vmatmul.bf16.gmra.mxu1 %v5753_v58  ;;  %1146 = vmatmul.bf16.gmra.mxu2 %v5753_v58 }
 0x174   : > { %1233 = vmatmul.bf16.gmra.mxu3 %v5753_v58 }
 0x1e0   : > { %v1055_v62 = vpop.f32.mrf.mxu1 }
 0x1e1   : > { %v1056_v14 = vadd.f32 %v5094_v8, %v1055_v62 }
 0x1e3   : > { %v1239_v28 = vmul.f32 0.17677669, %v1056_v14  ;;  %v4938_v14 = vld [vmem:[%s6901_s8 + $0x70] sm:$0xff] }
 0x1e5   : > { %v1243_v38 = vpack.c.bf16 %v1239_v28, %v1239_v28  ;;  %v4934_v28 = vld [vmem:[%s6901_s8 + $0x50] sm:$0xff] }
 0x1e6   : > { %v1142_v63 = vpop.f32.mrf.mxu2 }
 0x1e7   : > { %v1229_v5 = vpop.f32.mrf.mxu3  ;;  %v1143_v9 = vadd.f32 %v5095_v4, %v1142_v63  ;;  %v1257_v43 = vunpack.c.l.b16 %v1243_v38 }
 0x1e8   : > { %v1057_v7 = vpop.f32.mrf.mxu1  ;;  %v1230_v11 = vadd.f32 %v5096_v6, %v1229_v5 }
 0x1e9   : > { %v1058_v12 = vadd.f32 %v5094_v8, %v1057_v7  ;;  %v1247_v17 = vpack.c.bf16 %v1143_v9, %v1143_v9  ;;  %v4939_v7 = vld [vmem:[%s6901_s8 + $0x78] sm:$0xff] }
 0x1ea   : > { %v1251_v20 = vpack.c.bf16 %v1230_v11, %v1230_v11 }
 0x1eb   : > { %v1240_v25 = vmul.f32 0.17677669, %v1058_v12  ;;  %v1262_v29 = vunpack.c.l.b16 %v1247_v17 }
 0x1ec   : > { %v1372_v31 = vunpack.c.l.b16 %v1251_v20  ;;  %v4937_v20 = vld [vmem:[%s6901_s8 + $0x68] sm:$0xff] }
 0x1ed   : > { %v1244_v33 = vpack.c.bf16 %v1240_v25, %v1240_v25  ;;  %v4935_v25 = vld [vmem:[%s6901_s8 + $0x58] sm:$0xff] }
 0x1ee   : > { %v1144_v13 = vpop.f32.mrf.mxu2 }
 0x1ef   : > { %v1145_v18 = vadd.f32 %v5095_v4, %v1144_v13  ;;  %v1231_v19 = vpop.f32.mrf.mxu3  ;;  %v1258_v40 = vunpack.c.l.b16 %v1244_v33  ;;  %v4926_v13 = vld [vmem:[%s6900_s27 + $0x50] sm:$0xff]  ;;  %v4932_v33 = vld [vmem:[%s6901_s8 + $0x40] sm:$0xff] }
 0x1f0   : > { %v1232_v21 = vadd.f32 %v5096_v6, %v1231_v19  ;;  %v1060_v22 = vpop.f32.mrf.mxu1  ;;  %v4925_v19 = vld [vmem:[%s6900_s27 + $0x48] sm:$0xff] }
 0x1f1   : > { %v1248_v26 = vpack.c.bf16 %v1145_v18, %v1145_v18  ;;  %v1259_v46 = vpack.c.b16 %v1258_v40, %v1257_v43  ;;  %v1061_v50 = vadd.f32 %v5094_v8, %v1060_v22  ;;  %v4936_v22 = vld [vmem:[%s6901_s8 + $0x60] sm:$0xff] }
 0x1f2   : > { %v1252_v27 = vpack.c.bf16 %v1232_v21, %v1232_v21  ;;  %v4924_v21 = vld [vmem:[%s6900_s27 + $0x40] sm:$0xff] }
 0x1f3   : > { %v1263_v30 = vunpack.c.l.b16 %v1248_v26  ;;  %v1241_v59 = vmul.f32 0.17677669, %v1061_v50  ;;  %v5097_v26 = vld [vmem:[%s6909_s28] ss:$0 sm:$0xff] }
 0x1f4   : > { %v1373_v32 = vunpack.c.l.b16 %v1252_v27  ;;  %v855_v27 = vpop.f32.mrf.mxu0 }
 0x1f5   : > { %v1264_v34 = vpack.c.b16 %v1263_v30, %v1262_v29  ;;  %v1245_v9 = vpack.c.bf16 %v1241_v59, %v1241_v59  ;;  %v856_v29 = vadd.f32 %v5097_v26, %v855_v27 }
 0x1f6   : > { %v1147_v36 = vpop.f32.mrf.mxu2  ;;  %v1374_v37 = vpack.c.b16 %v1373_v32, %v1372_v31  ;;  %v4933_v31 = vld [vmem:[%s6901_s8 + $0x48] sm:$0xff] }
 0x1f7   : > { %v1234_v39 = vpop.f32.mrf.mxu3  ;;  %v1270_v16 = vsel %vm1265_vm13, %v1264_v34, 0  ;;  %v1148_v44 = vadd.f32 %v5095_v4, %v1147_v36  ;;  %v1288_v17 = vunpack.c.l.b16 %v1245_v9  ;;  %v865_v30 = vadd.f32 %v856_v29, %v5598_v1 }
 0x1f8   : > { %1386 = vmatpush.bf16.msrb.mxu2 %v1374_v37  ;;  %1279 = vmatpush.bf16.xpose.msrb.mxu0 %v1270_v16  ;;  %v1062_v42 = vpop.f32.mrf.mxu1  ;;  %v1235_v24 = vadd.f32 %v5096_v6, %v1234_v39 }
 0x1f9   : > { %v1063_v47 = vadd.f32 %v5094_v8, %v1062_v42  ;;  %v1249_v51 = vpack.c.bf16 %v1148_v44, %v1148_v44  ;;  %869 = vst [vmem:[%s5824_s3] sm:$0xff] %v865_v30 }
 0x1fa   : > { %v1253_v54 = vpack.c.bf16 %v1235_v24, %v1235_v24  ;;  %v5099_v24 = vld [vmem:[%s6906_s9 + $0x1] ss:$0 sm:$0xff] }
 0x1fb   : > { %v1242_v55 = vmul.f32 0.17677669, %v1063_v47  ;;  %v1293_v60 = vunpack.c.l.b16 %v1249_v51 }
 0x1fc   : > { %v1400_v62 = vunpack.c.l.b16 %v1253_v54  ;;  %v857_v32 = vpop.f32.mrf.mxu0 }
 0x1fd   : > { %v1246_v5 = vpack.c.bf16 %v1242_v55, %v1242_v55  ;;  %v858_v34 = vadd.f32 %v5097_v26, %v857_v32 }
 0x1fe   : > { %v1149_v49 = vpop.f32.mrf.mxu2 }
 0x1ff   : > { %v1150_v52 = vadd.f32 %v5095_v4, %v1149_v49  ;;  %v1236_v53 = vpop.f32.mrf.mxu3  ;;  %4232 = vmatmul.msk.bf16.vlgmr.msrb.gmra.mxu0 %vm1265_vm13, %v1259_v46  ;;  %v1289_v12 = vunpack.c.l.b16 %v1246_v5  ;;  %v866_v1 = vadd.f32 %v858_v34, %v5606_v3 }
 0x200   : > { %1497 = vmatpush.bf16.msra.mxu0 %v4931_v35  ;;  %v1237_v23 = vadd.f32 %v5096_v6, %v1236_v53  ;;  %v4927_v6 = vld [vmem:[%s6900_s27 + $0x58] sm:$0xff] }
 0x201   : > { %v1250_v56 = vpack.c.bf16 %v1150_v52, %v1150_v52  ;;  %v1290_v18 = vpack.c.b16 %v1289_v12, %v1288_v17  ;;  %870 = vst [vmem:[%s5824_s3 + $0x8] sm:$0xff] %v866_v1 }
 0x202   : > { %v1254_v15 = vpack.c.bf16 %v1237_v23, %v1237_v23 }
 0x203   : > { %v1294_v61 = vunpack.c.l.b16 %v1250_v56 }
 0x204   : > { %1498 = vmatpush.bf16.msra.mxu0 %v4930_v41  ;;  %v1401_v63 = vunpack.c.l.b16 %v1254_v15  ;;  %v860_v35 = vpop.f32.mrf.mxu0 }
 0x205   : > { %v1295_v4 = vpack.c.b16 %v1294_v61, %v1293_v60  ;;  %v861_v36 = vadd.f32 %v5097_v26, %v860_v35 }
 0x206   : > { %v1402_v8 = vpack.c.b16 %v1401_v63, %v1400_v62 }
 0x207   : > { %v1300_v11 = vsel %vm1265_vm13, %v1295_v4, 0  ;;  %v867_v37 = vadd.f32 %v861_v36, %v5595_v0  ;;  %v5098_v36 = vld [vmem:[%s6908_s7 + $0x1] ss:$0 sm:$0xff] }
 0x208   : > { %1499 = vmatpush.bf16.msra.mxu0 %v4929_v48  ;;  %1414 = vmatpush.bf16.msrb.mxu3 %v1402_v8 }
 0x209   : > { %1309 = vmatpush.bf16.xpose.msrb.mxu1 %v1300_v11  ;;  %871 = vst [vmem:[%s5824_s3 + $0x10] sm:$0xff] %v867_v37 }
 0x20c   : > { %1500 = vmatpush.bf16.msra.mxu0 %v4928_v57  ;;  %v862_v38 = vpop.f32.mrf.mxu0 }
 0x20d   : > { %v863_v39 = vadd.f32 %v5097_v26, %v862_v38 }
 0x20f   : > { %v868_v16 = vadd.f32 %v863_v39, %v5603_v2 }
 0x210   : > { %1501 = vmatpush.bf16.msra.mxu0 %v4927_v6  ;;  %4233 = vmatmul.msk.bf16.vlgmr.msrb.gmra.mxu1 %vm1265_vm13, %v1290_v18 }
 0x211   : > { %1586 = vmatpush.bf16.msra.mxu1 %v4939_v7  ;;  %872 = vst [vmem:[%s5824_s3 + $0x18] sm:$0xff] %v868_v16 }
 0x214   : > { %1502 = vmatpush.bf16.msra.mxu0 %v4926_v13 }
 0x215   : > { %1587 = vmatpush.bf16.msra.mxu1 %v4938_v14 }
 0x218   : > { %1503 = vmatpush.bf16.msra.mxu0 %v4925_v19 }
 0x219   : > { %1588 = vmatpush.bf16.msra.mxu1 %v4937_v20 }
 0x21c   : > { %1504 = vmatpush.bf16.msra.mxu0 %v4924_v21 }
 0x21d   : > { %1589 = vmatpush.bf16.msra.mxu1 %v4936_v22 }
 0x21f   : > { %1505 = vmatmul.bf16.vlgmr.msra.gmra.mxu0 %v5732_v45 }
 0x221   : > { %1590 = vmatpush.bf16.msra.mxu1 %v4935_v25 }
 0x225   : > { %1591 = vmatpush.bf16.msra.mxu1 %v4934_v28 }
 0x229   : > { %1592 = vmatpush.bf16.msra.mxu1 %v4933_v31 }
 0x22d   : > { %1593 = vmatpush.bf16.msra.mxu1 %v4932_v33 }
 0x22f   : > { %1510 = vmatmul.bf16.gmra.mxu0 %v5753_v58 }
 0x230   : > { %1594 = vmatmul.bf16.vlgmr.msra.gmra.mxu1 %v5732_v45 }
 0x240   : > { %1599 = vmatmul.bf16.gmra.mxu1 %v5753_v58 }
 0x27c   : > { %v1281_v43 = vpop.f32.mrf.mxu0 }
 0x27d   : > { %v1317_v44 = vsel %vm1316_vm14, %v1281_v43, -inf }
 0x284   : > { %v1283_v62 = vpop.f32.mrf.mxu0 }
 0x285   : > { %v1320_v6 = vsel %vm1316_vm14, %v1283_v62, -inf }
 0x28d   : > { %v1311_v40 = vpop.f32.mrf.mxu1 }
 0x28e   : > { %v1323_v3 = vsel %vm1316_vm14, %v1311_v40, -inf }
 0x28f   : > { %1324 = vmax.xlane.f32.xlu2 %v1323_v3 }
 0x295   : > { %v1313_v41 = vpop.f32.mrf.mxu1 }
 0x296   : > { %v1326_v42 = vsel %vm1316_vm14, %v1313_v41, -inf }
 0x297   : > { %1327 = vmax.xlane.f32.xlu0 %v1326_v42 }
 0x29c   : > { %v1506_v13 = vpop.f32.mrf.mxu0 }
 0x29f   : > { %1318 = vmax.xlane.f32.xlu0 %v1317_v44 }
 0x2a4   : > { %v1508_v30 = vpop.f32.mrf.mxu0 }
 0x2ad   : > { %v1595_v0 = vpop.f32.mrf.mxu1 }
 0x2ae   : > { %v1596_v2 = vadd.f32 %v5099_v24, %v1595_v0 }
 0x2b0   : > { %v1702_v47 = vpack.c.bf16 %v1596_v2, %v1596_v2 }
 0x2b2   : > { %v1717_v50 = vunpack.c.l.b16 %v1702_v47 }
 0x2b5   : > { %v1597_v46 = vpop.f32.mrf.mxu1 }
 0x2b6   : > { %v1598_v48 = vadd.f32 %v5099_v24, %v1597_v46 }
 0x2b8   : > { %v1703_v49 = vpack.c.bf16 %v1598_v48, %v1598_v48 }
 0x2ba   : > { %v1718_v51 = vunpack.c.l.b16 %v1703_v49 }
 0x2bc   : > { %v1719_v52 = vpack.c.b16 %v1718_v51, %v1717_v50 }
 0x2bd   : > { %v1600_v11 = vpop.f32.mrf.mxu1 }
 0x2be   : > { %v1724_v53 = vsel %vm1265_vm13, %v1719_v52, 0  ;;  %v1601_v22 = vadd.f32 %v5099_v24, %v1600_v11 }
 0x2bf   : > { %1733 = vmatpush.bf16.xpose.msra.mxu3 %v1724_v53 }
 0x2c0   : > { %v1704_v28 = vpack.c.bf16 %v1601_v22, %v1601_v22 }
 0x2c2   : > { %v1747_v34 = vunpack.c.l.b16 %v1704_v28 }
 0x2c5   : > { %v1602_v14 = vpop.f32.mrf.mxu1 }
 0x2c6   : > { %v1603_v17 = vadd.f32 %v5099_v24, %v1602_v14 }
 0x2c8   : > { %v1705_v26 = vpack.c.bf16 %v1603_v17, %v1603_v17 }
 0x2ca   : > { %v1748_v31 = vunpack.c.l.b16 %v1705_v26 }
 0x2cc   : > { %v1749_v37 = vpack.c.b16 %v1748_v31, %v1747_v34  ;;  %v4922_v34 = vld [vmem:[%s6841_s12] sm:$0xff] }
 0x2ce   : > { %v1754_v42 = vsel %vm1265_vm13, %v1749_v37, 0 }
 0x302   : > { %v1325_v54 = vpop.xlane.xlu2 %1324 }
 0x303   : > { %v1331_v23 = vsub.f32 %v1311_v40, %v1325_v54  ;;  %v1509_v40 = vadd.f32 %v5098_v36, %v1508_v30 }
 0x305   : > { %v1337_v55 = vmul.f32 1.442695, %v1331_v23  ;;  %v1695_v44 = vmul.f32 0.17677669, %v1509_v40 }
 0x307   : > { %5122 = vpow2.f32 %v1337_v55  ;;  %v1699_v24 = vpack.c.bf16 %v1695_v44, %v1695_v44 }
 0x309   : > { %v1713_v46 = vunpack.c.l.b16 %v1699_v24 }
 0x30a   : > { %v1328_v56 = vpop.xlane.xlu0 %1327 }
 0x30b   : > { %v1332_v57 = vsub.f32 %v1313_v41, %v1328_v56  ;;  %v1507_v41 = vadd.f32 %v5098_v36, %v1506_v13 }
 0x30d   : > { %v5123_v15 = vpop.eup %5122  ;;  %v1339_v59 = vmul.f32 1.442695, %v1332_v57  ;;  %v1694_v0 = vmul.f32 0.17677669, %v1507_v41 }
 0x30e   : > { %v1347_v60 = vsel %vm1316_vm14, %v5123_v15, 0.0 }
 0x30f   : > { %5124 = vpow2.f32 %v1339_v59  ;;  %1348 = vadd.xlane.f32.xlu1 %v1347_v60  ;;  %v1698_v2 = vpack.c.bf16 %v1694_v0, %v1694_v0  ;;  %v4946_v59 = vld [vmem:[%s6902_s10 + $0x70] sm:$0xff]  ;;  %v4945_v60 = vld [vmem:[%s6902_s10 + $0x68] sm:$0xff] }
 0x311   : > { %v1712_v48 = vunpack.c.l.b16 %v1698_v2 }
 0x312   : > { %v1319_v61 = vpop.xlane.xlu0 %1318 }
 0x313   : > { %v1329_v63 = vsub.f32 %v1281_v43, %v1319_v61  ;;  %v1511_v43 = vpop.f32.mrf.mxu0  ;;  %v1714_v49 = vpack.c.b16 %v1713_v46, %v1712_v48  ;;  %v4944_v61 = vld [vmem:[%s6902_s10 + $0x60] sm:$0xff] }
 0x314   : > { %v1512_v51 = vadd.f32 %v5098_v36, %v1511_v43  ;;  %v5100_v43 = vld [vmem:[%s6907_s11 + $0x1] ss:$0 sm:$0xff] }
 0x315   : > { %v5125_v5 = vpop.eup %5124  ;;  %v1333_v4 = vmul.f32 1.442695, %v1329_v63  ;;  %v4942_v63 = vld [vmem:[%s6902_s10 + $0x50] sm:$0xff] }
 0x316   : > { %v1350_v7 = vsel %vm1316_vm14, %v5125_v5, 0.0  ;;  %v1696_v53 = vmul.f32 0.17677669, %v1512_v51 }
 0x317   : > { %5126 = vpow2.f32 %v1333_v4  ;;  %1321 = vmax.xlane.f32.xlu1 %v1320_v6  ;;  %1351 = vadd.xlane.f32.xlu2 %v1350_v7  ;;  %v4940_v6 = vld [vmem:[%s6902_s10 + $0x40] sm:$0xff] }
 0x318   : > { %v1700_v23 = vpack.c.bf16 %v1696_v53, %v1696_v53 }
 0x31a   : > { %v1742_v56 = vunpack.c.l.b16 %v1700_v23 }
 0x31b   : > { %v1513_v47 = vpop.f32.mrf.mxu0 }
 0x31c   : > { %v1514_v50 = vadd.f32 %v5098_v36, %v1513_v47 }
 0x31d   : > { %v5849_v8 = vpop.eup %5126 }
 0x31e   : > { %v1341_v9 = vsel %vm1316_vm14, %v5849_v8, 0.0  ;;  %v1697_v52 = vmul.f32 0.17677669, %v1514_v50 }
 0x31f   : > { %1342 = vadd.xlane.f32.xlu2 %v1341_v9 }
 0x320   : > { %v1701_v54 = vpack.c.bf16 %v1697_v52, %v1697_v52 }
 0x322   : > { %v1743_v55 = vunpack.c.l.b16 %v1701_v54 }
 0x324   : > { %v1744_v57 = vpack.c.b16 %v1743_v55, %v1742_v56 }
 0x382   : > { %v1349_v12 = vpop.xlane.xlu1 %1348 }
 0x383   : > { %5128 = vrcp.f32 %v1349_v12 }
 0x389   : > { %v5129_v20 = vpop.eup %5128 }
 0x38a   : > { %v1322_v18 = vpop.xlane.xlu1 %1321  ;;  %v1352_v19 = vpop.xlane.xlu2 %1351  ;;  %v1359_v27 = vmul.f32 %v5129_v20, %v5123_v15  ;;  %v4947_v15 = vld [vmem:[%s6902_s10 + $0x78] sm:$0xff] }
 0x38b   : > { %v1330_v21 = vsub.f32 %v1283_v62, %v1322_v18  ;;  %5130 = vrcp.f32 %v1352_v19  ;;  %1675 = vmatpush.bf16.msra.mxu2 %v4947_v15  ;;  %v4943_v62 = vld [vmem:[%s6902_s10 + $0x58] sm:$0xff] }
 0x38c   : > { %v1363_v32 = vpack.c.bf16 %v1359_v27, %v1359_v27 }
 0x38d   : > { %v1335_v25 = vmul.f32 1.442695, %v1330_v21 }
 0x38e   : > { %v1395_v38 = vunpack.c.l.b16 %v1363_v32 }
 0x38f   : > { %5132 = vpow2.f32 %v1335_v25  ;;  %1676 = vmatpush.bf16.msra.mxu2 %v4946_v59 }
 0x391   : > { %v5131_v29 = vpop.eup %5130 }
 0x392   : > { %v1360_v33 = vmul.f32 %v5131_v29, %v5125_v5  ;;  %v4941_v5 = vld [vmem:[%s6902_s10 + $0x48] sm:$0xff]  ;;  %v1343_v4 = vpop.xlane.xlu2 %1342 }
 0x393   : > { %1677 = vmatpush.bf16.msra.mxu2 %v4945_v60  ;;  %5134 = vrcp.f32 %v1343_v4 }
 0x394   : > { %v1364_v1 = vpack.c.bf16 %v1360_v33, %v1360_v33  ;;  %v4923_v33 = vld [vmem:[%s6841_s12 + $0x8] sm:$0xff] }
 0x395   : > { %v5133_v35 = vpop.eup %5132 }
 0x396   : > { %v1396_v39 = vunpack.c.l.b16 %v1364_v1  ;;  %v1344_v16 = vsel %vm1316_vm14, %v5133_v35, 0.0 }
 0x397   : > { %1345 = vadd.xlane.f32.xlu0 %v1344_v16  ;;  %1678 = vmatpush.bf16.msra.mxu2 %v4944_v61 }
 0x398   : > { %v1397_v3 = vpack.c.b16 %v1396_v39, %v1395_v38 }
 0x399   : > { %v5135_v9 = vpop.eup %5134 }
 0x39a   : > { %4235 = vmatmul.msk.bf16.vlgmr.msrb.gmra.mxu3 %vm1316_vm14, %v1397_v3  ;;  %v1357_v11 = vmul.f32 %v5135_v9, %v5849_v8 }
 0x39b   : > { %1763 = vmatpush.bf16.xpose.msrb.mxu3 %v1754_v42  ;;  %1679 = vmatpush.bf16.msra.mxu2 %v4943_v62 }
 0x39c   : > { %v1361_v13 = vpack.c.bf16 %v1357_v11, %v1357_v11 }
 0x39e   : > { %v1367_v18 = vunpack.c.l.b16 %v1361_v13  ;;  %v4957_v13 = vld [vmem:[%s6900_s27 + $0xb8] sm:$0xff] }
 0x39f   : > { %1680 = vmatpush.bf16.msra.mxu2 %v4942_v63 }
 0x3a3   : > { %1681 = vmatpush.bf16.msra.mxu2 %v4941_v5 }
 0x3a7   : > { %1682 = vmatpush.bf16.msra.mxu2 %v4940_v6 }
 0x3aa   : > { %4383 = vmatmul.msk.bf16.vlgmr.msra.gmra.mxu3 %vm1265_vm13, %v1714_v49 }
 0x3ba   : > { %4384 = vmatmul.msk.bf16.vlgmr.msrb.gmra.mxu3 %vm1265_vm13, %v1744_v57 }
 0x40a   : > { %v1346_v7 = vpop.xlane.xlu0 %1345 }
 0x40b   : > { %5136 = vrcp.f32 %v1346_v7 }
 0x411   : > { %v5137_v12 = vpop.eup %5136 }
 0x412   : > { %v1358_v14 = vmul.f32 %v5137_v12, %v5133_v35 }
 0x414   : > { %v1362_v17 = vpack.c.bf16 %v1358_v14, %v1358_v14  ;;  %v4956_v14 = vld [vmem:[%s6900_s27 + $0xb0] sm:$0xff] }
 0x416   : > { %v1368_v19 = vunpack.c.l.b16 %v1362_v17  ;;  %v4955_v17 = vld [vmem:[%s6900_s27 + $0xa8] sm:$0xff] }
 0x418   : > { %v1369_v20 = vpack.c.b16 %v1368_v19, %v1367_v18  ;;  %v4954_v18 = vld [vmem:[%s6900_s27 + $0xa0] sm:$0xff]  ;;  %v4953_v19 = vld [vmem:[%s6900_s27 + $0x98] sm:$0xff] }
 0x41a   : > { %4234 = vmatmul.msk.bf16.vlgmr.msrb.gmra.mxu2 %vm1316_vm14, %v1369_v20  ;;  %v4965_v20 = vld [vmem:[%s6901_s8 + $0xb8] sm:$0xff] }
 0x41b   : > { %1942 = vmatpush.bf16.msrb.mxu2 %v4923_v33 }
 0x41d   : > { %v1416_v21 = vpop.f32.mrf.mxu3 }
 0x41f   : > { %1943 = vmatpush.bf16.msrb.mxu2 %v4922_v34  ;;  %v4959_v34 = vld [vmem:[%s6901_s8 + $0x88] sm:$0xff] }
 0x425   : > { %v1418_v22 = vpop.f32.mrf.mxu3 }
 0x426   : > { %v1422_v25 = vpack.c.bf16 %v1418_v22, %v1416_v21  ;;  %v4952_v21 = vld [vmem:[%s6900_s27 + $0x90] sm:$0xff] }
 0x427   : > { %v4964_v22 = vld [vmem:[%s6901_s8 + $0xb0] sm:$0xff] }
 0x42a   : > { %1683 = vmatmul.bf16.vlgmr.msra.gmra.mxu2 %v5732_v45 }
 0x42d   : > { %v1735_v26 = vpop.f32.mrf.mxu3 }
 0x42e   : > { %v1770_v27 = vsel %vm1316_vm14, %v1735_v26, -inf }
 0x42f   : > { %1771 = vmax.xlane.f32.xlu1 %v1770_v27  ;;  %v4963_v27 = vld [vmem:[%s6901_s8 + $0xa8] sm:$0xff] }
 0x435   : > { %v1737_v28 = vpop.f32.mrf.mxu3 }
 0x436   : > { %v1773_v8 = vsel %vm1316_vm14, %v1737_v28, -inf }
 0x437   : > { %1774 = vmax.xlane.f32.xlu2 %v1773_v8  ;;  %v4962_v8 = vld [vmem:[%s6901_s8 + $0xa0] sm:$0xff] }
 0x43a   : > { %1688 = vmatmul.bf16.gmra.mxu2 %v5753_v58 }
 0x43d   : > { %v1765_v29 = vpop.f32.mrf.mxu3 }
 0x43e   : > { %v1776_v30 = vsel %vm1316_vm14, %v1765_v29, -inf }
 0x43f   : > { %1777 = vmax.xlane.f32.xlu0 %v1776_v30  ;;  %v4961_v30 = vld [vmem:[%s6901_s8 + $0x98] sm:$0xff] }
 0x445   : > { %v1767_v31 = vpop.f32.mrf.mxu3 }
 0x446   : > { %v1779_v32 = vsel %vm1316_vm14, %v1767_v31, -inf }
 0x447   : > { %1780 = vmax.xlane.f32.xlu1 %v1779_v32  ;;  %v4960_v32 = vld [vmem:[%s6901_s8 + $0x90] sm:$0xff] }
 0x49d   : > { %v1388_v1 = vpop.f32.mrf.mxu2 }
 0x4a2   : > { %v1772_v35 = vpop.xlane.xlu1 %1771 }
 0x4a3   : > { %v1782_v36 = vsub.f32 %v1735_v26, %v1772_v35  ;;  %v4951_v26 = vld [vmem:[%s6900_s27 + $0x88] sm:$0xff] }
 0x4a5   : > { %v1786_v37 = vmul.f32 1.442695, %v1782_v36  ;;  %v1390_v38 = vpop.f32.mrf.mxu2 }
 0x4a6   : > { %v1421_v39 = vpack.c.bf16 %v1390_v38, %v1388_v1 }
 0x4a7   : > { %5138 = vpow2.f32 %v1786_v37 }
 0x4a8   : > { %4409 = vmatmul.msk.bf16.vlgmr.msrb.gmra.mxu2 %vm1265_vm13, %v1421_v39  ;;  %v4958_v39 = vld [vmem:[%s6901_s8 + $0x80] sm:$0xff] }
 0x4aa   : > { %v1775_v16 = vpop.xlane.xlu2 %1774 }
 0x4ab   : > { %v1783_v40 = vsub.f32 %v1737_v28, %v1775_v16  ;;  %v4950_v28 = vld [vmem:[%s6900_s27 + $0x80] sm:$0xff] }
 0x4ad   : > { %v5900_v3 = vpop.eup %5138  ;;  %v1788_v41 = vmul.f32 1.442695, %v1783_v40  ;;  %v1684_v42 = vpop.f32.mrf.mxu2 }
 0x4ae   : > { %v1794_v44 = vsel %vm1316_vm14, %v5900_v3, 0.0  ;;  %v1685_v0 = vadd.f32 %v5100_v43, %v1684_v42 }
 0x4af   : > { %5140 = vpow2.f32 %v1788_v41  ;;  %1795 = vadd.xlane.f32.xlu2 %v1794_v44 }
 0x4b0   : > { %v1706_v49 = vpack.c.bf16 %v1685_v0, %v1685_v0 }
 0x4b2   : > { %v1778_v24 = vpop.xlane.xlu0 %1777  ;;  %v1825_v53 = vunpack.c.l.b16 %v1706_v49  ;;  %v4949_v49 = vld [vmem:[%s6841_s12 + $0x18] sm:$0xff] }
 0x4b3   : > { %v1784_v2 = vsub.f32 %v1765_v29, %v1778_v24  ;;  %1905 = vmatpush.bf16.msrb.mxu1 %v4949_v49 }
 0x4b5   : > { %v5907_v46 = vpop.eup %5140  ;;  %v1790_v47 = vmul.f32 1.442695, %v1784_v2  ;;  %v1686_v48 = vpop.f32.mrf.mxu2 }
 0x4b6   : > { %v1687_v50 = vadd.f32 %v5100_v43, %v1686_v48  ;;  %v1797_v51 = vsel %vm1316_vm14, %v5907_v46, 0.0 }
 0x4b7   : > { %5142 = vpow2.f32 %v1790_v47  ;;  %1798 = vadd.xlane.f32.xlu0 %v1797_v51  ;;  %v4973_v51 = vld [vmem:[%s6902_s10 + $0xb8] sm:$0xff] }
 0x4b8   : > { %v1707_v52 = vpack.c.bf16 %v1687_v50, %v1687_v50  ;;  %4410 = vmatmul.msk.bf16.gmra.mxu2 %vm1265_vm13, %v1422_v25  ;;  %v4948_v50 = vld [vmem:[%s6841_s12 + $0x10] sm:$0xff] }
 0x4b9   : > { %1906 = vmatpush.bf16.msrb.mxu1 %v4948_v50  ;;  %v4981_v50 = vld [vmem:[%s6900_s27 + $0xe8] sm:$0xff] }
 0x4ba   : > { %v1826_v54 = vunpack.c.l.b16 %v1707_v52  ;;  %v1781_v23 = vpop.xlane.xlu1 %1780  ;;  %v4972_v52 = vld [vmem:[%s6902_s10 + $0xb0] sm:$0xff] }
 0x4bb   : > { %v1785_v55 = vsub.f32 %v1767_v31, %v1781_v23  ;;  %v4969_v23 = vld [vmem:[%s6902_s10 + $0x98] sm:$0xff] }
 0x4bc   : > { %v1827_v56 = vpack.c.b16 %v1826_v54, %v1825_v53  ;;  %v4971_v53 = vld [vmem:[%s6902_s10 + $0xa8] sm:$0xff]  ;;  %v4970_v54 = vld [vmem:[%s6902_s10 + $0xa0] sm:$0xff] }
 0x4bd   : > { %v5912_v57 = vpop.eup %5142  ;;  %v1792_v15 = vmul.f32 1.442695, %v1785_v55  ;;  %v1689_v59 = vpop.f32.mrf.mxu2  ;;  %2203 = vmatpush.bf16.msra.mxu1 %v4973_v51  ;;  %v4968_v55 = vld [vmem:[%s6902_s10 + $0x90] sm:$0xff]  ;;  %v4980_v51 = vld [vmem:[%s6900_s27 + $0xe0] sm:$0xff] }
 0x4be   : > { %1839 = vmatpush.bf16.msra.mxu3 %v1827_v56  ;;  %v1800_v60 = vsel %vm1316_vm14, %v5912_v57, 0.0  ;;  %v1690_v61 = vadd.f32 %v5100_v43, %v1689_v59 }
 0x4bf   : > { %5144 = vpow2.f32 %v1792_v15  ;;  %1801 = vadd.xlane.f32.xlu1 %v1800_v60  ;;  %v4966_v15 = vld [vmem:[%s6902_s10 + $0x80] sm:$0xff] }
 0x4c0   : > { %v1708_v5 = vpack.c.bf16 %v1690_v61, %v1690_v61 }
 0x4c1   : > { %2204 = vmatpush.bf16.msra.mxu1 %v4972_v52  ;;  %v4979_v52 = vld [vmem:[%s6900_s27 + $0xd8] sm:$0xff] }
 0x4c2   : > { %v1853_v9 = vunpack.c.l.b16 %v1708_v5  ;;  %2025 = vmatpush.bf16.msrb.mxu3 %v4957_v13 }
 0x4c5   : > { %v5916_v62 = vpop.eup %5144  ;;  %v1691_v63 = vpop.f32.mrf.mxu2  ;;  %2205 = vmatpush.bf16.msra.mxu1 %v4971_v53  ;;  %v4978_v53 = vld [vmem:[%s6900_s27 + $0xd0] sm:$0xff] }
 0x4c6   : > { %v1692_v4 = vadd.f32 %v5100_v43, %v1691_v63  ;;  %v1803_v6 = vsel %vm1316_vm14, %v5916_v62, 0.0  ;;  %2026 = vmatpush.bf16.msrb.mxu3 %v4956_v14 }
 0x4c7   : > { %1804 = vadd.xlane.f32.xlu2 %v1803_v6 }
 0x4c8   : > { %v1709_v7 = vpack.c.bf16 %v1692_v4, %v1692_v4 }
 0x4c9   : > { %2206 = vmatpush.bf16.msra.mxu1 %v4970_v54  ;;  %v4977_v54 = vld [vmem:[%s6900_s27 + $0xc8] sm:$0xff] }
 0x4ca   : > { %v1854_v11 = vunpack.c.l.b16 %v1709_v7  ;;  %2027 = vmatpush.bf16.msrb.mxu3 %v4955_v17  ;;  %v5102_v7 = vld [vmem:[%s6906_s9 + $0x2] ss:$0 sm:$0xff] }
 0x4cc   : > { %v1855_v12 = vpack.c.b16 %v1854_v11, %v1853_v9  ;;  %v5101_v9 = vld [vmem:[%s6908_s7 + $0x2] ss:$0 sm:$0xff] }
 0x4cd   : > { %2207 = vmatpush.bf16.msra.mxu1 %v4969_v23  ;;  %v4976_v23 = vld [vmem:[%s6900_s27 + $0xc0] sm:$0xff] }
 0x4ce   : > { %1867 = vmatpush.bf16.msrb.mxu0 %v1855_v12  ;;  %2028 = vmatpush.bf16.msrb.mxu3 %v4954_v18 }
 0x4d1   : > { %2208 = vmatpush.bf16.msra.mxu1 %v4968_v55 }
 0x4d2   : > { %2029 = vmatpush.bf16.msrb.mxu3 %v4953_v19  ;;  %2114 = vmatpush.bf16.msra.mxu0 %v4965_v20 }
 0x4d6   : > { %2030 = vmatpush.bf16.msrb.mxu3 %v4952_v21  ;;  %2115 = vmatpush.bf16.msra.mxu0 %v4964_v22 }
 0x4da   : > { %2031 = vmatpush.bf16.msrb.mxu3 %v4951_v26  ;;  %2116 = vmatpush.bf16.msra.mxu0 %v4963_v27 }
 0x4de   : > { %2032 = vmatpush.bf16.msrb.mxu3 %v4950_v28  ;;  %2117 = vmatpush.bf16.msra.mxu0 %v4962_v8 }
 0x4e2   : > { %2118 = vmatpush.bf16.msra.mxu0 %v4961_v30 }
 0x4e6   : > { %2119 = vmatpush.bf16.msra.mxu0 %v4960_v32 }
 0x4ea   : > { %2120 = vmatpush.bf16.msra.mxu0 %v4959_v34 }
 0x4ee   : > { %2121 = vmatpush.bf16.msra.mxu0 %v4958_v39 }
 0x522   : > { %v1796_v25 = vpop.xlane.xlu2 %1795 }
 0x523   : > { %5146 = vrcp.f32 %v1796_v25 }
 0x529   : > { %v5147_v31 = vpop.eup %5146 }
 0x52a   : > { %v1799_v29 = vpop.xlane.xlu0 %1798  ;;  %v1810_v33 = vmul.f32 %v5147_v31, %v5900_v3 }
 0x52b   : > { %5148 = vrcp.f32 %v1799_v29  ;;  %v6048_v55 = vpop.f32.mrf.mxu2 }
 0x52c   : > { %v1814_v35 = vpack.c.bf16 %v1810_v33, %v1810_v33 }
 0x52e   : > { %v1820_v16 = vunpack.c.l.b16 %v1814_v35 }
 0x531   : > { %v5149_v1 = vpop.eup %5148 }
 0x532   : > { %v1811_v36 = vmul.f32 %v5149_v1, %v5907_v46  ;;  %v1802_v37 = vpop.xlane.xlu1 %1801 }
 0x533   : > { %5150 = vrcp.f32 %v1802_v37 }
 0x534   : > { %v1815_v38 = vpack.c.bf16 %v1811_v36, %v1811_v36 }
 0x536   : > { %v1821_v40 = vunpack.c.l.b16 %v1815_v38 }
 0x538   : > { %v1822_v3 = vpack.c.b16 %v1821_v40, %v1820_v16 }
 0x539   : > { %v5151_v42 = vpop.eup %5150 }
 0x53a   : > { %v1805_v41 = vpop.xlane.xlu2 %1804  ;;  %4385 = vmatmul.msk.bf16.vlgmr.msra.gmra.mxu3 %vm1316_vm14, %v1822_v3  ;;  %v1812_v43 = vmul.f32 %v5151_v42, %v5912_v57  ;;  %v4967_v57 = vld [vmem:[%s6902_s10 + $0x88] sm:$0xff] }
 0x53b   : > { %5152 = vrcp.f32 %v1805_v41  ;;  %2209 = vmatpush.bf16.msra.mxu1 %v4967_v57  ;;  %v6052_v57 = vpop.f32.mrf.mxu2 }
 0x53c   : > { %v1816_v0 = vpack.c.bf16 %v1812_v43, %v1812_v43 }
 0x53e   : > { %v1848_v46 = vunpack.c.l.b16 %v1816_v0  ;;  %v4983_v0 = vld [vmem:[%s6900_s27 + $0xf8] sm:$0xff] }
 0x53f   : > { %2210 = vmatpush.bf16.msra.mxu1 %v4966_v15 }
 0x541   : > { %v5153_v44 = vpop.eup %5152 }
 0x542   : > { %v1813_v24 = vmul.f32 %v5153_v44, %v5916_v62 }
 0x544   : > { %v1817_v2 = vpack.c.bf16 %v1813_v24, %v1813_v24 }
 0x546   : > { %v1849_v47 = vunpack.c.l.b16 %v1817_v2 }
 0x548   : > { %v1850_v48 = vpack.c.b16 %v1849_v47, %v1848_v46  ;;  %v4982_v47 = vld [vmem:[%s6900_s27 + $0xf0] sm:$0xff] }
 0x54a   : > { %4386 = vmatmul.msk.bf16.vlgmr.msrb.gmra.mxu0 %vm1316_vm14, %v1850_v48  ;;  %2033 = vmatmul.bf16.vlgmr.msrb.gmra.mxu3 %v5732_v45 }
 0x55a   : > { %2038 = vmatmul.bf16.gmra.mxu3 %v5753_v58  ;;  %2122 = vmatmul.bf16.vlgmr.msra.gmra.mxu0 %v5732_v45 }
 0x56a   : > { %2127 = vmatmul.bf16.gmra.mxu0 %v5753_v58 }
 0x5bd   : > { %v1841_v56 = vpop.f32.mrf.mxu3 }
 0x5c5   : > { %v1843_v59 = vpop.f32.mrf.mxu3 }
 0x5c6   : > { %v1874_v60 = vpack.c.bf16 %v1843_v59, %v1841_v56  ;;  %v6056_v59 = vpop.f32.mrf.mxu2 }
 0x5c7   : > { %v1869_v61 = vpop.f32.mrf.mxu0 }
 0x5c8   : > { %4399 = vmatmul.msk.bf16.vlgmr.msrb.gmra.mxu1 %vm1265_vm13, %v1874_v60 }
 0x5cd   : > { %v2034_v62 = vpop.f32.mrf.mxu3 }
 0x5ce   : > { %v2035_v14 = vadd.f32 %v5101_v9, %v2034_v62 }
 0x5cf   : > { %v1871_v63 = vpop.f32.mrf.mxu0 }
 0x5d0   : > { %v1875_v5 = vpack.c.bf16 %v1871_v63, %v1869_v61  ;;  %v2222_v22 = vmul.f32 0.17677669, %v2035_v14  ;;  %v1952_v61 = vpop.f32.mrf.mxu2 }
 0x5d2   : > { %v2226_v29 = vpack.c.bf16 %v2222_v22, %v2222_v22 }
 0x5d4   : > { %v2240_v33 = vunpack.c.l.b16 %v2226_v29 }
 0x5d5   : > { %v2036_v4 = vpop.f32.mrf.mxu3 }
 0x5d6   : > { %v2037_v12 = vadd.f32 %v5101_v9, %v2036_v4  ;;  %v5103_v4 = vld [vmem:[%s6907_s11 + $0x2] ss:$0 sm:$0xff] }
 0x5d7   : > { %v2123_v6 = vpop.f32.mrf.mxu0 }
 0x5d8   : > { %4400 = vmatmul.msk.bf16.gmra.mxu1 %vm1265_vm13, %v1875_v5  ;;  %v2124_v11 = vadd.f32 %v5102_v7, %v2123_v6  ;;  %v2223_v20 = vmul.f32 0.17677669, %v2037_v12 }
 0x5da   : > { %v2230_v17 = vpack.c.bf16 %v2124_v11, %v2124_v11  ;;  %v2227_v27 = vpack.c.bf16 %v2223_v20, %v2223_v20 }
 0x5dc   : > { %v2245_v25 = vunpack.c.l.b16 %v2230_v17  ;;  %v2241_v31 = vunpack.c.l.b16 %v2227_v27 }
 0x5dd   : > { %v2039_v19 = vpop.f32.mrf.mxu3 }
 0x5de   : > { %v2242_v1 = vpack.c.b16 %v2241_v31, %v2240_v33  ;;  %v2040_v37 = vadd.f32 %v5101_v9, %v2039_v19 }
 0x5df   : > { %v2125_v13 = vpop.f32.mrf.mxu0 }
 0x5e0   : > { %v2126_v18 = vadd.f32 %v5102_v7, %v2125_v13  ;;  %v2224_v3 = vmul.f32 0.17677669, %v2040_v37 }
 0x5e2   : > { %v2231_v21 = vpack.c.bf16 %v2126_v18, %v2126_v18  ;;  %v2228_v24 = vpack.c.bf16 %v2224_v3, %v2224_v3 }
 0x5e4   : > { %v2246_v26 = vunpack.c.l.b16 %v2231_v21  ;;  %v2270_v48 = vunpack.c.l.b16 %v2228_v24 }
 0x5e5   : > { %v2041_v32 = vpop.f32.mrf.mxu3 }
 0x5e6   : > { %v2247_v28 = vpack.c.b16 %v2246_v26, %v2245_v25  ;;  %v2042_v35 = vadd.f32 %v5101_v9, %v2041_v32 }
 0x5e7   : > { %v2128_v8 = vpop.f32.mrf.mxu0 }
 0x5e8   : > { %2211 = vmatmul.bf16.vlgmr.msra.gmra.mxu1 %v5732_v45  ;;  %v2252_v30 = vsel %vm1265_vm13, %v2247_v28, 0  ;;  %v2129_v34 = vadd.f32 %v5102_v7, %v2128_v8  ;;  %v2225_v16 = vmul.f32 0.17677669, %v2042_v35 }
 0x5e9   : > { %2261 = vmatpush.bf16.xpose.msra.mxu2 %v2252_v30 }
 0x5ea   : > { %v2232_v38 = vpack.c.bf16 %v2129_v34, %v2129_v34  ;;  %v2229_v43 = vpack.c.bf16 %v2225_v16, %v2225_v16 }
 0x5ec   : > { %v2275_v41 = vunpack.c.l.b16 %v2232_v38  ;;  %v2271_v46 = vunpack.c.l.b16 %v2229_v43 }
 0x5ee   : > { %v2272_v49 = vpack.c.b16 %v2271_v46, %v2270_v48 }
 0x5ef   : > { %v2130_v36 = vpop.f32.mrf.mxu0 }
 0x5f0   : > { %v2131_v39 = vadd.f32 %v5102_v7, %v2130_v36  ;;  %4558 = vmatmul.msk.bf16.vlgmr.msra.gmra.mxu2 %vm1265_vm13, %v2242_v1 }
 0x5f2   : > { %v2233_v40 = vpack.c.bf16 %v2131_v39, %v2131_v39 }
 0x5f4   : > { %v2276_v42 = vunpack.c.l.b16 %v2233_v40 }
 0x5f6   : > { %v2277_v44 = vpack.c.b16 %v2276_v42, %v2275_v41 }
 0x5f8   : > { %2216 = vmatmul.bf16.gmra.mxu1 %v5753_v58  ;;  %v2282_v2 = vsel %vm1265_vm13, %v2277_v44, 0 }
 0x5f9   : > { %2291 = vmatpush.bf16.xpose.msrb.mxu2 %v2282_v2 }
 0x600   : > { %4559 = vmatmul.msk.bf16.vlgmr.msrb.gmra.mxu2 %vm1265_vm13, %v2272_v49 }
 0x601   : > { %2520 = vmatpush.bf16.msra.mxu2 %v4983_v0 }
 0x605   : > { %2521 = vmatpush.bf16.msra.mxu2 %v4982_v47 }
 0x609   : > { %2522 = vmatpush.bf16.msra.mxu2 %v4981_v50 }
 0x60d   : > { %2523 = vmatpush.bf16.msra.mxu2 %v4980_v51  ;;  %v4991_v51 = vld [vmem:[%s6901_s8 + $0xf8] sm:$0xff] }
 0x611   : > { %2524 = vmatpush.bf16.msra.mxu2 %v4979_v52  ;;  %v4990_v52 = vld [vmem:[%s6901_s8 + $0xf0] sm:$0xff] }
 0x615   : > { %2525 = vmatpush.bf16.msra.mxu2 %v4978_v53  ;;  %v4989_v53 = vld [vmem:[%s6901_s8 + $0xe8] sm:$0xff] }
 0x619   : > { %2526 = vmatpush.bf16.msra.mxu2 %v4977_v54  ;;  %v4988_v54 = vld [vmem:[%s6901_s8 + $0xe0] sm:$0xff] }
 0x61d   : > { %2527 = vmatpush.bf16.msra.mxu2 %v4976_v23  ;;  %v4987_v23 = vld [vmem:[%s6901_s8 + $0xd8] sm:$0xff] }
 0x620   : > { %2528 = vmatmul.bf16.vlgmr.msra.gmra.mxu2 %v5732_v45 }
 0x630   : > { %2533 = vmatmul.bf16.gmra.mxu2 %v5753_v58 }
 0x645   : > { %v6050_v56 = vpop.f32.mrf.mxu1 }
 0x64d   : > { %v6054_v15 = vpop.f32.mrf.mxu1 }
 0x655   : > { %v6058_v60 = vpop.f32.mrf.mxu1 }
 0x65d   : > { %v1915_v62 = vpop.f32.mrf.mxu1 }
 0x65e   : > { %v6060_v63 = vadd.f32 %v1952_v61, %v1915_v62  ;;  %v4999_v61 = vld [vmem:[%s6902_s10 + $0xf8] sm:$0xff]  ;;  %v4986_v62 = vld [vmem:[%s6901_s8 + $0xd0] sm:$0xff] }
 0x665   : > { %v2212_v5 = vpop.f32.mrf.mxu1 }
 0x666   : > { %v2213_v6 = vadd.f32 %v5103_v4, %v2212_v5  ;;  %v4998_v5 = vld [vmem:[%s6902_s10 + $0xf0] sm:$0xff] }
 0x668   : > { %v2234_v9 = vpack.c.bf16 %v2213_v6, %v2213_v6  ;;  %v4985_v6 = vld [vmem:[%s6901_s8 + $0xc8] sm:$0xff] }
 0x66a   : > { %v2353_v13 = vunpack.c.l.b16 %v2234_v9  ;;  %v4984_v9 = vld [vmem:[%s6901_s8 + $0xc0] sm:$0xff] }
 0x66d   : > { %v2214_v7 = vpop.f32.mrf.mxu1 }
 0x66e   : > { %v2215_v11 = vadd.f32 %v5103_v4, %v2214_v7  ;;  %v4997_v7 = vld [vmem:[%s6902_s10 + $0xe8] sm:$0xff] }
 0x670   : > { %v2235_v12 = vpack.c.bf16 %v2215_v11, %v2215_v11  ;;  %v4996_v11 = vld [vmem:[%s6902_s10 + $0xe0] sm:$0xff] }
 0x672   : > { %v2354_v14 = vunpack.c.l.b16 %v2235_v12 }
 0x673   : > { %v2263_v17 = vpop.f32.mrf.mxu2 }
 0x674   : > { %v2355_v18 = vpack.c.b16 %v2354_v14, %v2353_v13  ;;  %v2298_v19 = vsel %vm1316_vm14, %v2263_v17, -inf  ;;  %v4995_v13 = vld [vmem:[%s6902_s10 + $0xd8] sm:$0xff] }
 0x675   : > { %2299 = vmax.xlane.f32.xlu0 %v2298_v19  ;;  %v2217_v20 = vpop.f32.mrf.mxu1  ;;  %v4993_v19 = vld [vmem:[%s6902_s10 + $0xc8] sm:$0xff] }
 0x676   : > { %2367 = vmatpush.bf16.msra.mxu3 %v2355_v18  ;;  %v2218_v21 = vadd.f32 %v5103_v4, %v2217_v20 }
 0x678   : > { %v2236_v27 = vpack.c.bf16 %v2218_v21, %v2218_v21 }
 0x67a   : > { %v2381_v29 = vunpack.c.l.b16 %v2236_v27  ;;  %2609 = vmatpush.bf16.msrb.mxu3 %v4991_v51  ;;  %v4992_v27 = vld [vmem:[%s6902_s10 + $0xc0] sm:$0xff] }
 0x67b   : > { %v2265_v22 = vpop.f32.mrf.mxu2 }
 0x67c   : > { %v2301_v25 = vsel %vm1316_vm14, %v2265_v22, -inf }
 0x67d   : > { %2302 = vmax.xlane.f32.xlu1 %v2301_v25  ;;  %v2219_v26 = vpop.f32.mrf.mxu1 }
 0x67e   : > { %v2220_v28 = vadd.f32 %v5103_v4, %v2219_v26  ;;  %2610 = vmatpush.bf16.msrb.mxu3 %v4990_v52 }
 0x680   : > { %v2237_v8 = vpack.c.bf16 %v2220_v28, %v2220_v28 }
 0x682   : > { %v2382_v30 = vunpack.c.l.b16 %v2237_v8  ;;  %2611 = vmatpush.bf16.msrb.mxu3 %v4989_v53 }
 0x683   : > { %v2293_v31 = vpop.f32.mrf.mxu2 }
 0x684   : > { %v2383_v32 = vpack.c.b16 %v2382_v30, %v2381_v29  ;;  %v2304_v33 = vsel %vm1316_vm14, %v2293_v31, -inf }
 0x685   : > { %2305 = vmax.xlane.f32.xlu2 %v2304_v33 }
 0x686   : > { %2395 = vmatpush.bf16.msrb.mxu0 %v2383_v32  ;;  %2612 = vmatpush.bf16.msrb.mxu3 %v4988_v54  ;;  %v5106_v54 = vld [vmem:[%s6907_s11 + $0x3] ss:$0 sm:$0xff] }
 0x68a   : > { %2613 = vmatpush.bf16.msrb.mxu3 %v4987_v23  ;;  %2698 = vmatpush.bf16.msra.mxu0 %v4999_v61 }
 0x68b   : > { %v2295_v34 = vpop.f32.mrf.mxu2 }
 0x68c   : > { %v2307_v1 = vsel %vm1316_vm14, %v2295_v34, -inf }
 0x68d   : > { %2308 = vmax.xlane.f32.xlu0 %v2307_v1 }
 0x68e   : > { %2614 = vmatpush.bf16.msrb.mxu3 %v4986_v62  ;;  %2699 = vmatpush.bf16.msra.mxu0 %v4998_v5 }
 0x692   : > { %2615 = vmatpush.bf16.msrb.mxu3 %v4985_v6  ;;  %2700 = vmatpush.bf16.msra.mxu0 %v4997_v7 }
 0x696   : > { %2616 = vmatpush.bf16.msrb.mxu3 %v4984_v9  ;;  %2701 = vmatpush.bf16.msra.mxu0 %v4996_v11 }
 0x69a   : > { %2702 = vmatpush.bf16.msra.mxu0 %v4995_v13 }
 0x6e8   : > { %v2300_v35 = vpop.xlane.xlu0 %2299 }
 0x6e9   : > { %v2310_v36 = vsub.f32 %v2263_v17, %v2300_v35  ;;  %v4994_v17 = vld [vmem:[%s6902_s10 + $0xd0] sm:$0xff] }
 0x6ea   : > { %2703 = vmatpush.bf16.msra.mxu0 %v4994_v17 }
 0x6eb   : > { %v2314_v37 = vmul.f32 1.442695, %v2310_v36 }
 0x6ed   : > { %5154 = vpow2.f32 %v2314_v37 }
 0x6ee   : > { %2704 = vmatpush.bf16.msra.mxu0 %v4993_v19 }
 0x6f0   : > { %v2303_v38 = vpop.xlane.xlu1 %2302 }
 0x6f1   : > { %v2311_v39 = vsub.f32 %v2265_v22, %v2303_v38 }
 0x6f2   : > { %2705 = vmatpush.bf16.msra.mxu0 %v4992_v27 }
 0x6f3   : > { %v5155_v16 = vpop.eup %5154  ;;  %v2316_v40 = vmul.f32 1.442695, %v2311_v39  ;;  %v4975_v39 = vld [vmem:[%s6841_s12 + $0x28] sm:$0xff] }
 0x6f4   : > { %v2322_v3 = vsel %vm1316_vm14, %v5155_v16, 0.0  ;;  %2433 = vmatpush.bf16.msrb.mxu1 %v4975_v39 }
 0x6f5   : > { %5156 = vpow2.f32 %v2316_v40  ;;  %2323 = vadd.xlane.f32.xlu1 %v2322_v3  ;;  %v2529_v3 = vpop.f32.mrf.mxu2 }
 0x6f8   : > { %v2306_v41 = vpop.xlane.xlu2 %2305 }
 0x6f9   : > { %v2312_v42 = vsub.f32 %v2293_v31, %v2306_v41 }
 0x6fb   : > { %v5157_v43 = vpop.eup %5156  ;;  %v2318_v44 = vmul.f32 1.442695, %v2312_v42 }
 0x6fc   : > { %v2325_v0 = vsel %vm1316_vm14, %v5157_v43, 0.0 }
 0x6fd   : > { %5158 = vpow2.f32 %v2318_v44  ;;  %2326 = vadd.xlane.f32.xlu2 %v2325_v0  ;;  %v2531_v44 = vpop.f32.mrf.mxu2 }
 0x700   : > { %v2309_v24 = vpop.xlane.xlu0 %2308 }
 0x701   : > { %v2313_v2 = vsub.f32 %v2295_v34, %v2309_v24 }
 0x703   : > { %v5159_v46 = vpop.eup %5158  ;;  %v2320_v47 = vmul.f32 1.442695, %v2313_v2  ;;  %v5104_v2 = vld [vmem:[%s6908_s7 + $0x3] ss:$0 sm:$0xff] }
 0x704   : > { %v2328_v48 = vsel %vm1316_vm14, %v5159_v46, 0.0  ;;  %v2530_v51 = vadd.f32 %v5104_v2, %v2529_v3 }
 0x705   : > { %5160 = vpow2.f32 %v2320_v47  ;;  %2329 = vadd.xlane.f32.xlu0 %v2328_v48  ;;  %v2534_v61 = vpop.f32.mrf.mxu2 }
 0x70b   : > { %v5161_v49 = vpop.eup %5160 }
 0x70c   : > { %v2331_v50 = vsel %vm1316_vm14, %v5161_v49, 0.0 }
 0x70d   : > { %2332 = vadd.xlane.f32.xlu1 %v2331_v50 }
 0x768   : > { %v2324_v4 = vpop.xlane.xlu1 %2323 }
 0x769   : > { %5162 = vrcp.f32 %v2324_v4  ;;  %v2717_v4 = vmul.f32 0.17677669, %v2530_v51  ;;  %v1948_v51 = vadd.f32 %v6052_v57, %v6054_v15 }
 0x76b   : > { %v2721_v13 = vpack.c.bf16 %v2717_v4, %v2717_v4 }
 0x76f   : > { %v5163_v14 = vpop.eup %5162 }
 0x770   : > { %v2327_v12 = vpop.xlane.xlu2 %2326  ;;  %v2338_v18 = vmul.f32 %v5163_v14, %v5155_v16  ;;  %v4974_v16 = vld [vmem:[%s6841_s12 + $0x20] sm:$0xff] }
 0x771   : > { %5164 = vrcp.f32 %v2327_v12  ;;  %2434 = vmatpush.bf16.msrb.mxu1 %v4974_v16 }
 0x772   : > { %v2342_v21 = vpack.c.bf16 %v2338_v18, %v2338_v18 }
 0x774   : > { %v2348_v28 = vunpack.c.l.b16 %v2342_v21 }
 0x777   : > { %v5165_v20 = vpop.eup %5164 }
 0x778   : > { %v2339_v22 = vmul.f32 %v5165_v20, %v5157_v43  ;;  %v2330_v25 = vpop.xlane.xlu0 %2329 }
 0x779   : > { %5166 = vrcp.f32 %v2330_v25  ;;  %v2536_v25 = vpop.f32.mrf.mxu2 }
 0x77a   : > { %v2343_v26 = vpack.c.bf16 %v2339_v22, %v2339_v22  ;;  %v2735_v22 = vunpack.c.l.b16 %v2721_v13 }
 0x77c   : > { %v2349_v8 = vunpack.c.l.b16 %v2343_v26 }
 0x77e   : > { %v2350_v29 = vpack.c.b16 %v2349_v8, %v2348_v28 }
 0x77f   : > { %v5167_v31 = vpop.eup %5166 }
 0x780   : > { %v2333_v30 = vpop.xlane.xlu1 %2332  ;;  %4560 = vmatmul.msk.bf16.vlgmr.msra.gmra.mxu3 %vm1316_vm14, %v2350_v29  ;;  %v2340_v32 = vmul.f32 %v5167_v31, %v5159_v46  ;;  %v2532_v46 = vadd.f32 %v5104_v2, %v2531_v44  ;;  %v2537_v29 = vadd.f32 %v5104_v2, %v2536_v25 }
 0x781   : > { %5168 = vrcp.f32 %v2333_v30 }
 0x782   : > { %v2344_v34 = vpack.c.bf16 %v2340_v32, %v2340_v32  ;;  %v2718_v23 = vmul.f32 0.17677669, %v2532_v46 }
 0x784   : > { %v2376_v36 = vunpack.c.l.b16 %v2344_v34  ;;  %v2722_v9 = vpack.c.bf16 %v2718_v23, %v2718_v23  ;;  %v2535_v34 = vadd.f32 %v5104_v2, %v2534_v61 }
 0x786   : > { %v2736_v19 = vunpack.c.l.b16 %v2722_v9 }
 0x787   : > { %v5169_v33 = vpop.eup %5168 }
 0x788   : > { %v2341_v1 = vmul.f32 %v5169_v33, %v5161_v49  ;;  %v2737_v28 = vpack.c.b16 %v2736_v19, %v2735_v22 }
 0x78a   : > { %v2345_v35 = vpack.c.bf16 %v2341_v1, %v2341_v1 }
 0x78c   : > { %v2377_v37 = vunpack.c.l.b16 %v2345_v35  ;;  %v2720_v35 = vmul.f32 0.17677669, %v2537_v29 }
 0x78e   : > { %v2378_v38 = vpack.c.b16 %v2377_v37, %v2376_v36 }
 0x790   : > { %4561 = vmatmul.msk.bf16.vlgmr.msrb.gmra.mxu0 %vm1316_vm14, %v2378_v38  ;;  %2617 = vmatmul.bf16.vlgmr.msrb.gmra.mxu3 %v5732_v45  ;;  %v2719_v38 = vmul.f32 0.17677669, %v2535_v34 }
 0x7a0   : > { %2622 = vmatmul.bf16.gmra.mxu3 %v5753_v58  ;;  %2706 = vmatmul.bf16.vlgmr.msra.gmra.mxu0 %v5732_v45 }
 0x7b0   : > { %2711 = vmatmul.bf16.gmra.mxu0 %v5753_v58  ;;  %v5105_v58 = vld [vmem:[%s6906_s9 + $0x3] ss:$0 sm:$0xff] }
 0x803   : > { %v2369_v40 = vpop.f32.mrf.mxu3 }
 0x80b   : > { %v2371_v41 = vpop.f32.mrf.mxu3 }
 0x80c   : > { %v2402_v42 = vpack.c.bf16 %v2371_v41, %v2369_v40  ;;  %v2724_v40 = vpack.c.bf16 %v2720_v35, %v2720_v35 }
 0x80d   : > { %v2397_v43 = vpop.f32.mrf.mxu0 }
 0x80e   : > { %4574 = vmatmul.msk.bf16.vlgmr.msrb.gmra.mxu1 %vm1265_vm13, %v2402_v42  ;;  %v2723_v42 = vpack.c.bf16 %v2719_v38, %v2719_v38 }
 0x813   : > { %v2618_v45 = vpop.f32.mrf.mxu3 }
 0x814   : > { %v2619_v24 = vadd.f32 %v5105_v58, %v2618_v45 }
 0x815   : > { %v2399_v0 = vpop.f32.mrf.mxu0 }
 0x816   : > { %v2725_v48 = vpack.c.bf16 %v2619_v24, %v2619_v24  ;;  %v2403_v49 = vpack.c.bf16 %v2399_v0, %v2397_v43  ;;  %v2765_v0 = vunpack.c.l.b16 %v2723_v42 }
 0x818   : > { %v2740_v62 = vunpack.c.l.b16 %v2725_v48  ;;  %v1946_v48 = vadd.f32 %v6048_v55, %v6050_v56 }
 0x81b   : > { %v2620_v47 = vpop.f32.mrf.mxu3 }
 0x81c   : > { %v2621_v50 = vadd.f32 %v5105_v58, %v2620_v47 }
 0x81d   : > { %v2707_v52 = vpop.f32.mrf.mxu0 }
 0x81e   : > { %v2726_v53 = vpack.c.bf16 %v2621_v50, %v2621_v50  ;;  %4575 = vmatmul.msk.bf16.gmra.mxu1 %vm1265_vm13, %v2403_v49  ;;  %v2708_v7 = vadd.f32 %v5106_v54, %v2707_v52 }
 0x820   : > { %v2741_v5 = vunpack.c.l.b16 %v2726_v53  ;;  %v2729_v17 = vpack.c.bf16 %v2708_v7, %v2708_v7 }
 0x822   : > { %v2742_v6 = vpack.c.b16 %v2741_v5, %v2740_v62  ;;  %v2848_v26 = vunpack.c.l.b16 %v2729_v17 }
 0x823   : > { %v2623_v11 = vpop.f32.mrf.mxu3 }
 0x824   : > { %v2747_v12 = vsel %vm1265_vm13, %v2742_v6, 0  ;;  %v2624_v20 = vadd.f32 %v5105_v58, %v2623_v11 }
 0x825   : > { %v2709_v14 = vpop.f32.mrf.mxu0  ;;  %2756 = vmatpush.bf16.xpose.msra.mxu1 %v2747_v12 }
 0x826   : > { %v2710_v18 = vadd.f32 %v5106_v54, %v2709_v14  ;;  %v2727_v30 = vpack.c.bf16 %v2624_v20, %v2624_v20 }
 0x828   : > { %v2730_v21 = vpack.c.bf16 %v2710_v18, %v2710_v18  ;;  %v2770_v36 = vunpack.c.l.b16 %v2727_v30 }
 0x82a   : > { %v2849_v27 = vunpack.c.l.b16 %v2730_v21 }
 0x82b   : > { %v2625_v8 = vpop.f32.mrf.mxu3 }
 0x82c   : > { %v2850_v31 = vpack.c.b16 %v2849_v27, %v2848_v26  ;;  %v2626_v32 = vadd.f32 %v5105_v58, %v2625_v8  ;;  %v2766_v58 = vunpack.c.l.b16 %v2724_v40 }
 0x82d   : > { %v2712_v33 = vpop.f32.mrf.mxu0 }
 0x82e   : > { %v2728_v1 = vpack.c.bf16 %v2626_v32, %v2626_v32  ;;  %4723 = vmatmul.msk.bf16.vlgmr.msra.gmra.mxu1 %vm1265_vm13, %v2737_v28  ;;  %2862 = vmatpush.bf16.msrb.mxu2 %v2850_v31  ;;  %v2713_v16 = vadd.f32 %v5106_v54, %v2712_v33  ;;  %v2767_v46 = vpack.c.b16 %v2766_v58, %v2765_v0 }
 0x830   : > { %v2771_v37 = vunpack.c.l.b16 %v2728_v1  ;;  %v2731_v43 = vpack.c.bf16 %v2713_v16, %v2713_v16 }
 0x832   : > { %v2772_v39 = vpack.c.b16 %v2771_v37, %v2770_v36  ;;  %v2876_v24 = vunpack.c.l.b16 %v2731_v43 }
 0x834   : > { %v2777_v3 = vsel %vm1265_vm13, %v2772_v39, 0 }
 0x835   : > { %v2714_v41 = vpop.f32.mrf.mxu0  ;;  %2786 = vmatpush.bf16.xpose.msrb.mxu1 %v2777_v3 }
 0x836   : > { %v2715_v45 = vadd.f32 %v5106_v54, %v2714_v41  ;;  %v1951_v54 = vadd.f32 %v6056_v59, %v6058_v60 }
 0x838   : > { %v2732_v44 = vpack.c.bf16 %v2715_v45, %v2715_v45 }
 0x83a   : > { %v2877_v2 = vunpack.c.l.b16 %v2732_v44 }
 0x83c   : > { %v2878_v47 = vpack.c.b16 %v2877_v2, %v2876_v24 }
 0x83e   : > { %4724 = vmatmul.msk.bf16.vlgmr.msrb.gmra.mxu1 %vm1265_vm13, %v2767_v46  ;;  %2890 = vmatpush.bf16.msra.mxu3 %v2878_v47  ;;  %v5001_v46 = vld [vmem:[%s6841_s12 + $0x38] sm:$0xff]  ;;  %v5000_v47 = vld [vmem:[%s6841_s12 + $0x30] sm:$0xff] }
 0x83f   : > { %2928 = vmatpush.bf16.msrb.mxu0 %v5001_v46 }
 0x843   : > { %2929 = vmatpush.bf16.msrb.mxu0 %v5000_v47 }
 0x88b   : > { %v2436_v49 = vpop.f32.mrf.mxu1 }
 0x88c   : > { %v6150_v50 = vadd.f32 %v2436_v49, %v1946_v48 }
 0x893   : > { %v2438_v52 = vpop.f32.mrf.mxu1 }
 0x894   : > { %v6154_v53 = vadd.f32 %v2438_v52, %v1948_v51 }
 0x89b   : > { %v2441_v23 = vpop.f32.mrf.mxu1 }
 0x89c   : > { %v6158_v61 = vadd.f32 %v2441_v23, %v1951_v54 }
 0x8a3   : > { %v2443_v62 = vpop.f32.mrf.mxu1 }
 0x8a4   : > { %v6161_v5 = vadd.f32 %v2443_v62, %v6060_v63 }
 0x8ab   : > { %v2758_v55 = vpop.f32.mrf.mxu1 }
 0x8ac   : > { %v2793_v56 = vsel %vm1316_vm14, %v2758_v55, -inf }
 0x8ad   : > { %2794 = vmax.xlane.f32.xlu2 %v2793_v56  ;;  %v5107_v56 = vld [vmem:[%s6842_s13] ss:$0 sm:$0xff] }
 0x8b3   : > { %v2760_v4 = vpop.f32.mrf.mxu1 }
 0x8b4   : > { %v2796_v57 = vsel %vm1316_vm14, %v2760_v4, -inf }
 0x8b5   : > { %2797 = vmax.xlane.f32.xlu0 %v2796_v57 }
 0x8bb   : > { %v2788_v15 = vpop.f32.mrf.mxu1 }
 0x8bc   : > { %v2799_v6 = vsel %vm1316_vm14, %v2788_v15, -inf }
 0x8bd   : > { %2800 = vmax.xlane.f32.xlu1 %v2799_v6 }
 0x8c3   : > { %v2790_v59 = vpop.f32.mrf.mxu1 }
 0x8c4   : > { %v2802_v60 = vsel %vm1316_vm14, %v2790_v59, -inf }
 0x8c5   : > { %2803 = vmax.xlane.f32.xlu2 %v2802_v60  ;;  %v5226_v60 = vld [vmem:[%s5592_s4] sm:$0xff] }
 0x920   : > { %v2795_v7 = vpop.xlane.xlu2 %2794 }
 0x921   : > { %v2805_v9 = vsub.f32 %v2758_v55, %v2795_v7 }
 0x923   : > { %v2809_v63 = vmul.f32 1.442695, %v2805_v9 }
 0x925   : > { %5170 = vpow2.f32 %v2809_v63  ;;  %v3044_v63 = vld [vmem:[%s6843_s14] sm:$0x7] }
 0x928   : > { %v2798_v11 = vpop.xlane.xlu0 %2797 }
 0x929   : > { %v2806_v12 = vsub.f32 %v2760_v4, %v2798_v11  ;;  %v2957_v4 = vlaneseq }
 0x92b   : > { %v5171_v13 = vpop.eup %5170  ;;  %v2811_v14 = vmul.f32 1.442695, %v2806_v12 }
 0x92c   : > { %v2817_v17 = vsel %vm1316_vm14, %v5171_v13, 0.0 }
 0x92d   : > { %5172 = vpow2.f32 %v2811_v14  ;;  %2818 = vadd.xlane.f32.xlu0 %v2817_v17 }
 0x930   : > { %v2801_v18 = vpop.xlane.xlu1 %2800 }
 0x931   : > { %v2807_v19 = vsub.f32 %v2788_v15, %v2801_v18 }
 0x933   : > { %v5173_v20 = vpop.eup %5172  ;;  %v2813_v21 = vmul.f32 1.442695, %v2807_v19 }
 0x934   : > { %v2820_v22 = vsel %vm1316_vm14, %v5173_v20, 0.0 }
 0x935   : > { %5174 = vpow2.f32 %v2813_v21  ;;  %2821 = vadd.xlane.f32.xlu1 %v2820_v22 }
 0x938   : > { %v2804_v25 = vpop.xlane.xlu2 %2803 }
 0x939   : > { %v2808_v26 = vsub.f32 %v2790_v59, %v2804_v25  ;;  %v6186_v59 = vshrl.u32 %v2957_v4, 7 }
 0x93b   : > { %v5175_v27 = vpop.eup %5174  ;;  %v2815_v28 = vmul.f32 1.442695, %v2808_v26  ;;  %vm3018_vm15 = vcmp.lt.s32.totalorder %v6186_v59, 1  ;;  %v2959_v12 = vadd.s32 8, %v6186_v59  ;;  %vm3035_vm0 = vcmp.lt.s32.totalorder %v6186_v59, 7 }
 0x93c   : > { %v2823_v8 = vsel %vm1316_vm14, %v5175_v27, 0.0 }
 0x93d   : > { %5176 = vpow2.f32 %v2815_v28  ;;  %2824 = vadd.xlane.f32.xlu2 %v2823_v8 }
 0x943   : > { %v5177_v29 = vpop.eup %5176 }
 0x944   : > { %v2826_v30 = vsel %vm1316_vm14, %v5177_v29, 0.0 }
 0x945   : > { %2827 = vadd.xlane.f32.xlu0 %v2826_v30 }
 0x9a0   : > { %v2819_v31 = vpop.xlane.xlu0 %2818 }
 0x9a1   : > { %5178 = vrcp.f32 %v2819_v31 }
 0x9a7   : > { %v5179_v33 = vpop.eup %5178 }
 0x9a8   : > { %v2822_v32 = vpop.xlane.xlu1 %2821  ;;  %v2833_v34 = vmul.f32 %v5179_v33, %v5171_v13  ;;  %v2960_v13 = vadd.s32 16, %v6186_v59 }
 0x9a9   : > { %5180 = vrcp.f32 %v2822_v32  ;;  %v5228_v32 = vld [vmem:[%s5592_s4 + $0x10] sm:$0xff] }
 0x9aa   : > { %v2837_v35 = vpack.c.bf16 %v2833_v34, %v2833_v34  ;;  %v2980_v30 = vand.u32 15, %v2960_v13 }
 0x9ac   : > { %v2843_v39 = vunpack.c.l.b16 %v2837_v35  ;;  %vm3012_vm2 = vcmp.gt.s32.totalorder %v2980_v30, 0  ;;  %v2961_v35 = vadd.s32 24, %v6186_v59 }
 0x9af   : > { %v5181_v1 = vpop.eup %5180 }
 0x9b0   : > { %v2834_v36 = vmul.f32 %v5181_v1, %v5173_v20  ;;  %v2825_v37 = vpop.xlane.xlu2 %2824  ;;  %v3050_v20 = vperm.slane %v3044_v63, 1 }
 0x9b1   : > { %5182 = vrcp.f32 %v2825_v37 }
 0x9b2   : > { %v2838_v38 = vpack.c.bf16 %v2834_v36, %v2834_v36 }
 0x9b4   : > { %v2844_v16 = vunpack.c.l.b16 %v2838_v38 }
 0x9b6   : > { %v2845_v40 = vpack.c.b16 %v2844_v16, %v2843_v39  ;;  %v3059_v39 = vperm.slane %v3044_v63, 2 }
 0x9b7   : > { %v5183_v41 = vpop.eup %5182 }
 0x9b8   : > { %4725 = vmatmul.msk.bf16.vlgmr.msrb.gmra.mxu2 %vm1316_vm14, %v2845_v40  ;;  %v2828_v3 = vpop.xlane.xlu0 %2827  ;;  %v2835_v42 = vmul.f32 %v5183_v41, %v5175_v27 }
 0x9b9   : > { %5184 = vrcp.f32 %v2828_v3  ;;  %v2966_v3 = vand.u32 15, %v6186_v59 }
 0x9ba   : > { %v2839_v45 = vpack.c.bf16 %v2835_v42, %v2835_v42 }
 0x9bb   : > { %vm3010_vm3 = vcmp.gt.s32.totalorder %v2966_v3, 0 }
 0x9bc   : > { %v2871_v0 = vunpack.c.l.b16 %v2839_v45  ;;  %v5108_v45 = vld [vmem:[%s6844_s15] ss:$0 sm:$0xff] }
 0x9bf   : > { %v5185_v43 = vpop.eup %5184 }
 0x9c0   : > { %v2836_v58 = vmul.f32 %v5185_v43, %v5177_v29  ;;  %v2973_v29 = vand.u32 15, %v2959_v12 }
 0x9c2   : > { %v2840_v44 = vpack.c.bf16 %v2836_v58, %v2836_v58  ;;  %vm3028_vm1 = vcmp.lt.s32.totalorder %v2973_v29, 15 }
 0x9c4   : > { %v2872_v24 = vunpack.c.l.b16 %v2840_v44  ;;  %v2987_v44 = vand.u32 15, %v2961_v35 }
 0x9c6   : > { %v2873_v2 = vpack.c.b16 %v2872_v24, %v2871_v0  ;;  %v5229_v0 = vld [vmem:[%s5592_s4 + $0x18] sm:$0xff]  ;;  %vm3030_vm4 = vcmp.lt.s32.totalorder %v2987_v44, 15 }
 0x9c8   : > { %4726 = vmatmul.msk.bf16.vlgmr.msra.gmra.mxu3 %vm1316_vm14, %v2873_v2 }
 0xa3b   : > { %v2864_v48 = vpop.f32.mrf.mxu2 }
 0xa43   : > { %v2866_v49 = vpop.f32.mrf.mxu2 }
 0xa44   : > { %v2897_v51 = vpack.c.bf16 %v2866_v49, %v2864_v48 }
 0xa46   : > { %4739 = vmatmul.msk.bf16.vlgmr.msrb.gmra.mxu0 %vm1265_vm13, %v2897_v51 }
 0xa4b   : > { %v2892_v52 = vpop.f32.mrf.mxu3 }
 0xa53   : > { %v2894_v54 = vpop.f32.mrf.mxu3 }
 0xa54   : > { %v2898_v23 = vpack.c.bf16 %v2894_v54, %v2892_v52 }
 0xa56   : > { %4740 = vmatmul.msk.bf16.gmra.mxu0 %vm1265_vm13, %v2898_v23 }
 0xac3   : > { %v2931_v62 = vpop.f32.mrf.mxu0 }
 0xac4   : > { %v2941_v55 = vadd.f32 %v2931_v62, %v6150_v50  ;;  %v5227_v50 = vld [vmem:[%s5592_s4 + $0x8] sm:$0xff] }
 0xac6   : > { %v2949_v57 = vadd.f32 %v5107_v56, %v2941_v55 }
 0xac8   : > { %v6189_v7 = vadd.f32 %v5226_v60, %v2949_v57 }
 0xaca   : > { %v3014_v14 = vrot.slane %v6189_v7, 7  ;;  %v3031_v17 = vrot.slane %v6189_v7, 1  ;;  %v3051_v57 = vmul.f32 %v3050_v20, %v6189_v7 }
 0xacb   : > { %v2933_v15 = vpop.f32.mrf.mxu0 }
 0xacc   : > { %v2942_v6 = vadd.f32 %v2933_v15, %v6154_v53  ;;  %v3045_v53 = vperm.slane %v3044_v63, 0 }
 0xace   : > { %v2950_v9 = vadd.f32 %v5107_v56, %v2942_v6 }
 0xad0   : > { %v6195_v11 = vadd.f32 %v5227_v50, %v2950_v9 }
 0xad2   : > { %v3015_v18 = vrot.slane %v6195_v11, 7  ;;  %v3032_v19 = vrot.slane %v6195_v11, 1  ;;  %v3052_v27 = vmul.f32 %v3050_v20, %v6195_v11 }
 0xad3   : > { %v2936_v21 = vpop.f32.mrf.mxu0 }
 0xad4   : > { %v2943_v22 = vadd.f32 %v2936_v21, %v6158_v61  ;;  %v3021_v25 = vsel %vm3018_vm15, %v3014_v14, %v3015_v18  ;;  %v3038_v26 = vsel %vm3035_vm0, %v3031_v17, %v3032_v19 }
 0xad5   : > { %v3047_v28 = vmul.f32 %v3045_v53, %v3021_v25  ;;  %v3060_v12 = vmul.f32 %v3059_v39, %v3038_v26 }
 0xad6   : > { %v2951_v8 = vadd.f32 %v5107_v56, %v2943_v22 }
 0xad7   : > { %v3056_v31 = vadd.f32 %v3052_v27, %v3047_v28 }
 0xad8   : > { %v6212_v33 = vadd.f32 %v5228_v32, %v2951_v8 }
 0xada   : > { %v3016_v34 = vrot.slane %v6212_v33, 7  ;;  %v3033_v61 = vrot.slane %v6212_v33, 1  ;;  %v3053_v41 = vmul.f32 %v3050_v20, %v6212_v33 }
 0xadb   : > { %v2938_v1 = vpop.f32.mrf.mxu0 }
 0xadc   : > { %v3020_v36 = vsel %vm3018_vm15, %v3015_v18, %v3016_v34  ;;  %v2944_v37 = vadd.f32 %v2938_v1, %v6161_v5  ;;  %v3037_v38 = vsel %vm3035_vm0, %v3032_v19, %v3033_v61 }
 0xadd   : > { %v3041_v16 = vsel %vm3028_vm1, %v3037_v38, 0.0  ;;  %v3025_v40 = vsel %vm3012_vm2, %v3020_v36, 0.0 }
 0xade   : > { %v2952_v42 = vadd.f32 %v5107_v56, %v2944_v37  ;;  %v3061_v43 = vmul.f32 %v3059_v39, %v3041_v16  ;;  %v3048_v58 = vmul.f32 %v3045_v53, %v3025_v40 }
 0xae0   : > { %v6228_v5 = vadd.f32 %v5229_v0, %v2952_v42  ;;  %v3065_v24 = vadd.f32 %v3061_v43, %v3056_v31  ;;  %v3057_v2 = vadd.f32 %v3053_v41, %v3048_v58 }
 0xae2   : > { %v3017_v46 = vrot.slane %v6228_v5, 7  ;;  %v3034_v47 = vrot.slane %v6228_v5, 1  ;;  %v6232_v48 = vadd.f32 %v5108_v45, %v3065_v24  ;;  %v3054_v49 = vmul.f32 %v3050_v20, %v6228_v5 }
 0xae4   : > { %v3022_v51 = vsel %vm3018_vm15, %v3017_v46, %v3014_v14  ;;  %v4742_v52 = vmul.f32 -1.442695, %v6232_v48  ;;  %v3036_v54 = vsel %vm3035_vm0, %v3033_v61, %v3034_v47  ;;  %v3019_v23 = vsel %vm3018_vm15, %v3016_v34, %v3017_v46 }
 0xae5   : > { %v3062_v62 = vmul.f32 %v3059_v39, %v3036_v54  ;;  %v3023_v55 = vsel %vm3010_vm3, %v3022_v51, 0.0  ;;  %v3039_v56 = vsel %vm3035_vm0, %v3034_v47, %v3031_v17  ;;  %v3049_v4 = vmul.f32 %v3045_v53, %v3019_v23  ;;  %v5230_v23 = vld [vmem:[%s5824_s3 + $0x8] sm:$0xff] }
 0xae6   : > { %5186 = vpow2.f32 %v4742_v52  ;;  %v3046_v15 = vmul.f32 %v3045_v53, %v3023_v55  ;;  %v3043_v6 = vsel %vm3030_vm4, %v3039_v56, 0.0 }
 0xae7   : > { %v3066_v60 = vadd.f32 %v3062_v62, %v3057_v2  ;;  %v3058_v9 = vadd.f32 %v3054_v49, %v3049_v4  ;;  %v3063_v63 = vmul.f32 %v3059_v39, %v3043_v6  ;;  %v4787_v2 = vld [vmem:[%s6847_s18 + $0x50] sm:$0xf] }
 0xae8   : > { %v3055_v50 = vadd.f32 %v3051_v57, %v3046_v15 }
 0xae9   : > { %v6245_v13 = vadd.f32 %v5108_v45, %v3066_v60  ;;  %v3067_v14 = vadd.f32 %v3063_v63, %v3058_v9 }
 0xaea   : > { %v3064_v18 = vadd.f32 %v3060_v12, %v3055_v50 }
 0xaeb   : > { %v4743_v19 = vmul.f32 -1.442695, %v6245_v13  ;;  %v6248_v21 = vadd.f32 %v5108_v45, %v3067_v14 }
 0xaec   : > { %v5187_v59 = vpop.eup %5186  ;;  %v6250_v17 = vadd.f32 %v5108_v45, %v3064_v18 }
 0xaed   : > { %v3089_v20 = vadd.f32 1.0, %v5187_v59  ;;  %5188 = vpow2.f32 %v4743_v19  ;;  %v4744_v53 = vmul.f32 -1.442695, %v6248_v21 }
 0xaee   : > { %v4741_v22 = vmul.f32 -1.442695, %v6250_v17 }
 0xaef   : > { %5190 = vrcp.f32 %v3089_v20  ;;  %v3118_v34 = vand.u32 2147483648, %v3089_v20  ;;  %v3116_v1 = vand.u32 2147483647, %v3089_v20  ;;  %vm3112_vm6 = vweird.f32 %v3089_v20 }
 0xaf0   : > { %5192 = vpow2.f32 %v4741_v22 }
 0xaf1   : > { %5194 = vpow2.f32 %v4744_v53  ;;  %v3119_v37 = vor.u32 1.1754944e-38, %v3118_v34  ;;  %vm3117_vm8 = vcmp.eq.f32.partialorder %v3116_v1, 8.507059e+37 }
 0xaf3   : > { %v5189_v25 = vpop.eup %5188 }
 0xaf4   : > { %v3090_v26 = vadd.f32 1.0, %v5189_v25 }
 0xaf5   : > { %v5191_v27 = vpop.eup %5190 }
 0xaf6   : > { %v5193_v28 = vpop.eup %5192  ;;  %v3108_v8 = vmul.f32 %v5191_v27, %v3089_v20  ;;  %5196 = vrcp.f32 %v3090_v26  ;;  %vm3113_vm5 = vweird.f32 %v5191_v27  ;;  %v3131_v16 = vand.u32 2147483647, %v3090_v26  ;;  %v5231_v20 = vld [vmem:[%s5824_s3 + $0x10] sm:$0xff] }
 0xaf7   : > { %v5195_v29 = vpop.eup %5194  ;;  %v3088_v30 = vadd.f32 1.0, %v5193_v28  ;;  %vm3114_vm7 = vmor %vm3112_vm6, %vm3113_vm5  ;;  %v3133_v40 = vand.u32 2147483648, %v3090_v26  ;;  %vm3127_vm9 = vweird.f32 %v3090_v26 }
 0xaf8   : > { %v3109_v31 = vsub.f32 1.0, %v3108_v8  ;;  %v3091_v32 = vadd.f32 1.0, %v5195_v29  ;;  %vm6256_vm11 = vcmp.eq.f32.partialorder %v3131_v16, 8.507059e+37  ;;  %v5017_v16 = vld [vmem:[%s6847_s18 + $0x74] sm:$0xf0] }
 0xaf9   : > { %5198 = vrcp.f32 %v3088_v30  ;;  %v3134_v46 = vor.u32 1.1754944e-38, %v3133_v40  ;;  %v3101_v51 = vand.u32 2147483647, %v3088_v30  ;;  %v3103_v52 = vand.u32 2147483648, %v3088_v30  ;;  %v5016_v40 = vld [vmem:[%s6847_s18 + $0x74] sm:$0xf] }
 0xafa   : > { %v3110_v61 = vmul.f32 %v5191_v27, %v3109_v31  ;;  %5200 = vrcp.f32 %v3091_v32  ;;  %v3148_v55 = vand.u32 2147483648, %v3091_v32  ;;  %vm3097_vm15 = vweird.f32 %v3088_v30 }
 0xafb   : > { %v3104_v60 = vor.u32 1.1754944e-38, %v3103_v52  ;;  %vm3142_vm1 = vweird.f32 %v3091_v32  ;;  %vm3102_vm2 = vcmp.eq.f32.partialorder %v3101_v51, 8.507059e+37  ;;  %v4789_v51 = vld [vmem:[%s6847_s18 + $0x58] sm:$0xf0] }
 0xafc   : > { %v5197_v35 = vpop.eup %5196  ;;  %v3111_v36 = vadd.f32 %v5191_v27, %v3110_v61  ;;  %v3149_v50 = vor.u32 1.1754944e-38, %v3148_v55 }
 0xafd   : > { %v3123_v38 = vmul.f32 %v5197_v35, %v3090_v26  ;;  %vm3128_vm10 = vweird.f32 %v5197_v35  ;;  %v5232_v26 = vld [vmem:[%s5824_s3] sm:$0xff] }
 0xafe   : > { %v3115_v39 = vsel %vm3114_vm7, %v5191_v27, %v3111_v36  ;;  %vm3129_vm12 = vmor %vm3127_vm9, %vm3128_vm10 }
 0xaff   : > { %v5199_v3 = vpop.eup %5198  ;;  %v3120_v41 = vsel %vm3117_vm8, %v3119_v37, %v3115_v39  ;;  %v3124_v42 = vsub.f32 1.0, %v3123_v38  ;;  %v4803_v39 = vld [vmem:[%s6847_s18 + $0x70] sm:$0xf] }
 0xb00   : > { %v5201_v43 = vpop.eup %5200  ;;  %v3153_v45 = vmul.f32 %v3120_v41, %v6232_v48  ;;  %v3093_v58 = vmul.f32 %v5199_v3, %v3088_v30  ;;  %vm3098_vm13 = vweird.f32 %v5199_v3  ;;  %v4805_v41 = vld [vmem:[%s6847_s18 + $0x78] sm:$0xf0] }
 0xb01   : > { %v3125_v44 = vmul.f32 %v5197_v35, %v3124_v42  ;;  %v3138_v0 = vmul.f32 %v5201_v43, %v3091_v32  ;;  %vm3143_vm14 = vweird.f32 %v5201_v43  ;;  %vm3099_vm0 = vmor %vm3097_vm15, %vm3098_vm13  ;;  %v4808_v42 = vor.u32 %v5016_v40, %v4805_v41 }
 0xb02   : > { %v3157_v24 = vadd.f32 %v3153_v45, %v6195_v11  ;;  %v3094_v47 = vsub.f32 1.0, %v3093_v58  ;;  %v3146_v11 = vand.u32 2147483647, %v3091_v32  ;;  %vm3144_vm3 = vmor %vm3142_vm1, %vm3143_vm14  ;;  %v5015_v45 = vld [vmem:[%s6847_s18 + $0x64] sm:$0xf0] }
 0xb03   : > { %v3126_v49 = vadd.f32 %v5197_v35, %v3125_v44  ;;  %v3139_v54 = vsub.f32 1.0, %v3138_v0  ;;  %3383 = vmatpush.bf16.msra.mxu2 %v4808_v42  ;;  %v5014_v58 = vld [vmem:[%s6847_s18 + $0x64] sm:$0xf]  ;;  %v4797_v0 = vld [vmem:[%s6847_s18 + $0x68] sm:$0xf0] }
 0xb04   : > { %v6261_v62 = vadd.f32 %v5230_v23, %v3157_v24  ;;  %v3095_v48 = vmul.f32 %v5199_v3, %v3094_v47  ;;  %vm3147_vm4 = vcmp.eq.f32.partialorder %v3146_v11, 8.507059e+37  ;;  %v4800_v24 = vor.u32 %v5014_v58, %v4797_v0  ;;  %v5012_v47 = vld [vmem:[%s6847_s18 + $0x54] sm:$0xf]  ;;  %v5011_v23 = vld [vmem:[%s6847_s18 + $0x44] sm:$0xf0] }
 0xb05   : > { %v3130_v56 = vsel %vm3129_vm12, %v5197_v35, %v3126_v49  ;;  %v3140_v4 = vmul.f32 %v5201_v43, %v3139_v54  ;;  %v4792_v52 = vor.u32 %v5012_v47, %v4789_v51  ;;  %v4779_v54 = vld [vmem:[%s6847_s18 + $0x40] sm:$0xf]  ;;  %v4771_v11 = vld [vmem:[%s6847_s18 + $0x30] sm:$0xf] }
 0xb06   : > { %3168 = vadd.xlane.f32.xlu2 %v6261_v62  ;;  %v3135_v57 = vsel %vm6256_vm11, %v3134_v46, %v3130_v56  ;;  %v3096_v15 = vadd.f32 %v5199_v3, %v3095_v48  ;;  %v5013_v46 = vld [vmem:[%s6847_s18 + $0x54] sm:$0xf0]  ;;  %v5010_v48 = vld [vmem:[%s6847_s18 + $0x44] sm:$0xf]  ;;  %v4780_v55 = vor.u32 %v5011_v23, %v4779_v54  ;;  %v4781_v56 = vld [vmem:[%s6847_s18 + $0x48] sm:$0xf0] }
 0xb07   : > { %v3154_v6 = vmul.f32 %v3135_v57, %v6245_v13  ;;  %v3141_v9 = vadd.f32 %v5201_v43, %v3140_v4  ;;  %3384 = vmatpush.bf16.msra.mxu2 %v4800_v24  ;;  %v4788_v49 = vor.u32 %v5013_v46, %v4787_v2  ;;  %v4784_v4 = vor.u32 %v5010_v48, %v4781_v56  ;;  %v5009_v57 = vld [vmem:[%s6847_s18 + $0x34] sm:$0xf0] }
 0xb08   : > { %v3100_v63 = vsel %vm3099_vm0, %v5199_v3, %v3096_v15  ;;  %v4804_v3 = vor.u32 %v5017_v16, %v4803_v39  ;;  %v5008_v15 = vld [vmem:[%s6847_s18 + $0x34] sm:$0xf] }
 0xb09   : > { %v3158_v12 = vadd.f32 %v3154_v6, %v6212_v33  ;;  %v3105_v14 = vsel %vm3102_vm2, %v3104_v60, %v3100_v63  ;;  %v3145_v18 = vsel %vm3144_vm3, %v5201_v43, %v3141_v9  ;;  %v5233_v33 = vld [vmem:[%s5824_s3 + $0x18] sm:$0xff]  ;;  %v4795_v43 = vld [vmem:[%s6847_s18 + $0x60] sm:$0xf]  ;;  %v4772_v6 = vor.u32 %v5009_v57, %v4771_v11  ;;  %s5284_s3 = scalar_lea.hbm %s6925_s26, 64 }
 0xb0a   : > { %v3152_v19 = vmul.f32 %v3105_v14, %v6250_v17  ;;  %v3150_v59 = vsel %vm3147_vm4, %v3149_v50, %v3145_v18  ;;  %3364 = vmatpush.bf16.msra.mxu1 %v4804_v3  ;;  %v4796_v44 = vor.u32 %v5015_v45, %v4795_v43  ;;  %v4773_v60 = vld [vmem:[%s6847_s18 + $0x38] sm:$0xf0]  ;;  %v4763_v63 = vld [vmem:[%s6847_s18 + $0x20] sm:$0xf]  ;;  %v5007_v50 = vld [vmem:[%s6847_s18 + $0x24] sm:$0xf0] }
 0xb0b   : > { %v6270_v13 = vadd.f32 %v5231_v20, %v3158_v12  ;;  %v3155_v53 = vmul.f32 %v3150_v59, %v6248_v21  ;;  %3385 = vmatpush.bf16.msra.mxu2 %v4792_v52  ;;  %v4776_v9 = vor.u32 %v5008_v15, %v4773_v60  ;;  %v5006_v12 = vld [vmem:[%s6847_s18 + $0x24] sm:$0xf]  ;;  %v4764_v14 = vor.u32 %v5007_v50, %v4763_v63  ;;  %v4765_v18 = vld [vmem:[%s6847_s18 + $0x28] sm:$0xf0] }
 0xb0c   : > { %v3156_v22 = vadd.f32 %v3152_v19, %v6189_v7  ;;  %v4768_v59 = vor.u32 %v5006_v12, %v4765_v18 }
 0xb0d   : > { %3170 = vadd.xlane.f32.xlu0 %v6270_v13  ;;  %v3159_v25 = vadd.f32 %v3155_v53, %v6228_v5  ;;  %v4755_v53 = vld [vmem:[%s6847_s18 + $0x10] sm:$0xf] }
 0xb0e   : > { %v6277_v27 = vadd.f32 %v5232_v26, %v3156_v22  ;;  %3365 = vmatpush.bf16.msra.mxu1 %v4796_v44  ;;  %v5005_v22 = vld [vmem:[%s6847_s18 + $0x14] sm:$0xf0] }
 0xb0f   : > { %v6281_v28 = vadd.f32 %v5233_v33, %v3159_v25  ;;  %3386 = vmatpush.bf16.msra.mxu2 %v4784_v4  ;;  %v5004_v25 = vld [vmem:[%s6847_s18 + $0x14] sm:$0xf]  ;;  %v4756_v33 = vor.u32 %v5005_v22, %v4755_v53 }
 0xb10   : > { %3166 = vadd.xlane.f32.xlu1 %v6277_v27 }
 0xb12   : > { %3366 = vmatpush.bf16.msra.mxu1 %v4788_v49 }
 0xb13   : > { %3387 = vmatpush.bf16.msra.mxu2 %v4776_v9 }
 0xb16   : > { %3367 = vmatpush.bf16.msra.mxu1 %v4780_v55 }
 0xb17   : > { %3388 = vmatpush.bf16.msra.mxu2 %v4768_v59 }
 0xb18   : > { %3172 = vadd.xlane.f32.xlu1 %v6281_v28 }
 0xb1a   : > { %3368 = vmatpush.bf16.msra.mxu1 %v4772_v6  ;;  %v5110_v6 = vld [vmem:[%s6846_s17] ss:$0 sm:$0xff] }
 0xb1e   : > { %3369 = vmatpush.bf16.msra.mxu1 %v4764_v14 }
 0xb22   : > { %3370 = vmatpush.bf16.msra.mxu1 %v4756_v33 }
 0xb79   : > { %v3169_v17 = vpop.xlane.xlu2 %3168 }
 0xb7a   : > { %v3175_v8 = vmul.f32 %v3169_v17, %v5610_v10  ;;  %v4757_v17 = vld [vmem:[%s6847_s18 + $0x18] sm:$0xf0] }
 0xb7c   : > { %v6286_v21 = vsub.f32 %v6261_v62, %v3175_v8  ;;  %v4760_v8 = vor.u32 %v5004_v25, %v4757_v17 }
 0xb7e   : > { %v3183_v7 = vmul.f32 %v6286_v21, %v6286_v21  ;;  %3389 = vmatpush.bf16.msra.mxu2 %v4760_v8 }
 0xb80   : > { %3188 = vadd.xlane.f32.xlu0 %v3183_v7  ;;  %v3171_v5 = vpop.xlane.xlu0 %3170  ;;  %v4747_v7 = vld [vmem:[%s6847_s18] sm:$0xf] }
 0xb81   : > { %v3176_v29 = vmul.f32 %v3171_v5, %v5610_v10  ;;  %v5003_v5 = vld [vmem:[%s6847_s18 + $0x4] sm:$0xf0] }
 0xb83   : > { %v6292_v30 = vsub.f32 %v6270_v13, %v3176_v29  ;;  %v3167_v31 = vpop.xlane.xlu1 %3166  ;;  %v5002_v29 = vld [vmem:[%s6847_s18 + $0x4] sm:$0xf] }
 0xb84   : > { %v3174_v32 = vmul.f32 %v3167_v31, %v5610_v10 }
 0xb85   : > { %v3184_v34 = vmul.f32 %v6292_v30, %v6292_v30 }
 0xb86   : > { %v6298_v61 = vsub.f32 %v6277_v27, %v3174_v32  ;;  %v4748_v32 = vor.u32 %v5003_v5, %v4747_v7  ;;  %v3278_v5 = vld [vmem:[%s6912_s0] sm:$0x3]  ;;  %s3973_s0 = sshll.u32 %s3970_s1, 4  ;;  %s3974_s0 = int_to_ptr.hbm [resolvable:$true] %s3973_s0 }
 0xb87   : > { %3190 = vadd.xlane.f32.xlu1 %v3184_v34  ;;  %v4749_v34 = vld [vmem:[%s6847_s18 + $0x8] sm:$0xf0]  ;;  %s5278_s20 = sshra.s32 %s3974_s0, 4  ;;  %s5279_s20 = int_to_ptr.hbm [resolvable:$true] %s5278_s20 }
 0xb88   : > { %v3182_v1 = vmul.f32 %v6298_v61, %v6298_v61  ;;  %3371 = vmatpush.bf16.msra.mxu1 %v4748_v32  ;;  %s5280_s7 = scalar_lea.hbm %s5279_s20, 32  ;;  %p5285_p1 = scmp.lt.s32.totalorder %s5279_s20, %s6925_s26 }
 0xb89   : > { %p5281_p6 = scmp.ne.s32.totalorder %s5279_s20, %s5280_s7  ;;  %p5286_p3 = scmp.lt.s32.totalorder %s5284_s3, %s5280_s7 }
 0xb8a   : > { %3186 = vadd.xlane.f32.xlu2 %v3182_v1 }
 0xb8b   : > { %v3173_v35 = vpop.xlane.xlu1 %3172  ;;  %p5282_p13 = pnand %p5281_p6, %p5539_p11  ;;  %p5287_p4 = por %p5286_p3, %p5285_p1 }
 0xb8c   : > { %v3177_v36 = vmul.f32 %v3173_v35, %v5610_v10  ;;  %v4752_v35 = vor.u32 %v5002_v29, %v4749_v34  ;;  %v6421_v29 = vperm.slane %v3278_v5, 0 }
 0xb8d   : > { %p5283_p0 = pneg %p5282_p13 }
 0xb8e   : > { %v6304_v37 = vsub.f32 %v6281_v28, %v3177_v36  ;;  %3390 = vmatpush.bf16.msra.mxu2 %v4752_v35 }
 0xb8f   : > { %p5288_p7 = pnand %p5287_p4, %p5283_p0 }
 0xb90   : > { %v3185_v38 = vmul.f32 %v6304_v37, %v6304_v37 }
 0xb92   : > { %3192 = vadd.xlane.f32.xlu2 %v3185_v38 }
 0xbf3   : > { %v3189_v19 = vpop.xlane.xlu0 %3188 }
 0xbf4   : > { %v3195_v20 = vmul.f32 %v3189_v19, %v5610_v10 }
 0xbf6   : > { %v3199_v26 = vadd.f32 1e-05, %v3195_v20 }
 0xbf8   : > { %5202 = vrsqrt.f32 %v3199_v26  ;;  %vm3218_vm6 = vweird.f32 %v3199_v26 }
 0xbfa   : > { %v3191_v31 = vpop.xlane.xlu1 %3190 }
 0xbfb   : > { %v3196_v1 = vmul.f32 %v3191_v31, %v5610_v10 }
 0xbfd   : > { %v3200_v36 = vadd.f32 1e-05, %v3196_v1  ;;  %v3187_v38 = vpop.xlane.xlu2 %3186 }
 0xbfe   : > { %v5203_v39 = vpop.eup %5202  ;;  %v3194_v16 = vmul.f32 %v3187_v38, %v5610_v10 }
 0xbff   : > { %v3213_v40 = vmul.f32 %v5203_v39, %v3199_v26  ;;  %5204 = vrsqrt.f32 %v3200_v36  ;;  %vm3219_vm5 = vweird.f32 %v5203_v39  ;;  %vm3228_vm15 = vweird.f32 %v3200_v36 }
 0xc00   : > { %v3198_v3 = vadd.f32 1e-05, %v3194_v16  ;;  %vm3220_vm7 = vmor %vm3218_vm6, %vm3219_vm5 }
 0xc01   : > { %v3214_v41 = vmul.f32 %v5203_v39, %v3213_v40 }
 0xc02   : > { %5206 = vrsqrt.f32 %v3198_v3  ;;  %vm3208_vm9 = vweird.f32 %v3198_v3 }
 0xc03   : > { %v3215_v42 = vmul.f32 0.5, %v3214_v41 }
 0xc05   : > { %v3216_v43 = vsub.f32 1.5, %v3215_v42  ;;  %v3193_v45 = vpop.xlane.xlu2 %3192  ;;  %v5205_v58 = vpop.eup %5204 }
 0xc06   : > { %v3197_v44 = vmul.f32 %v3193_v45, %v5610_v10  ;;  %v3223_v46 = vmul.f32 %v5205_v58, %v3200_v36  ;;  %v5109_v10 = vld [vmem:[%s6845_s16] ss:$0 sm:$0xff]  ;;  %vm3229_vm12 = vweird.f32 %v5205_v58 }
 0xc07   : > { %v3217_v2 = vmul.f32 %v5203_v39, %v3216_v43  ;;  %vm3230_vm0 = vmor %vm3228_vm15, %vm3229_vm12 }
 0xc08   : > { %v5207_v0 = vpop.eup %5206  ;;  %v3201_v24 = vadd.f32 1e-05, %v3197_v44  ;;  %v3224_v52 = vmul.f32 %v5205_v58, %v3223_v46 }
 0xc09   : > { %v3203_v47 = vmul.f32 %v5207_v0, %v3198_v3  ;;  %v3221_v51 = vsel %vm3220_vm7, %v5203_v39, %v3217_v2  ;;  %vm3209_vm8 = vweird.f32 %v5207_v0 }
 0xc0a   : > { %5208 = vrsqrt.f32 %v3201_v24  ;;  %v3243_v55 = vmul.f32 %v3221_v51, %v6286_v21  ;;  %v3225_v56 = vmul.f32 0.5, %v3224_v52  ;;  %vm3210_vm10 = vmor %vm3208_vm9, %vm3209_vm8  ;;  %vm3238_vm13 = vweird.f32 %v3201_v24 }
 0xc0b   : > { %v3204_v49 = vmul.f32 %v5207_v0, %v3203_v47 }
 0xc0c   : > { %v3250_v60 = vmul.f32 %v5109_v10, %v3243_v55  ;;  %v3226_v63 = vsub.f32 1.5, %v3225_v56 }
 0xc0d   : > { %v3205_v54 = vmul.f32 0.5, %v3204_v49 }
 0xc0e   : > { %v3257_v21 = vadd.f32 %v5110_v6, %v3250_v60  ;;  %v3227_v19 = vmul.f32 %v5205_v58, %v3226_v63 }
 0xc0f   : > { %v3206_v23 = vsub.f32 1.5, %v3205_v54 }
 0xc10   : > { %v5209_v48 = vpop.eup %5208  ;;  %v3231_v22 = vsel %vm3230_vm0, %v5205_v58, %v3227_v19 }
 0xc11   : > { %v3207_v4 = vmul.f32 %v5207_v0, %v3206_v23  ;;  %v3233_v11 = vmul.f32 %v5209_v48, %v3201_v24  ;;  %vm3239_vm11 = vweird.f32 %v5209_v48  ;;  %v3244_v25 = vmul.f32 %v3231_v22, %v6292_v30 }
 0xc12   : > { %vm3240_vm14 = vmor %vm3238_vm13, %vm3239_vm11  ;;  %v6429_v30 = vperm.slane %v3278_v5, 1 }
 0xc13   : > { %v3211_v57 = vsel %vm3210_vm10, %v5207_v0, %v3207_v4  ;;  %v3234_v15 = vmul.f32 %v5209_v48, %v3233_v11  ;;  %v3251_v33 = vmul.f32 %v5109_v10, %v3244_v25 }
 0xc14   : > { %v3242_v9 = vmul.f32 %v3211_v57, %v6298_v61 }
 0xc15   : > { %v3235_v50 = vmul.f32 0.5, %v3234_v15  ;;  %v3258_v8 = vadd.f32 %v5110_v6, %v3251_v33 }
 0xc16   : > { %v3249_v12 = vmul.f32 %v5109_v10, %v3242_v9 }
 0xc17   : > { %v3236_v14 = vsub.f32 1.5, %v3235_v50 }
 0xc18   : > { %v3256_v18 = vadd.f32 %v5110_v6, %v3249_v12 }
 0xc19   : > { %v3237_v59 = vmul.f32 %v5209_v48, %v3236_v14 }
 0xc1a   : > { %v3276_v20 = vpack.c.bf16 %v3257_v21, %v3256_v18 }
 0xc1b   : > { %v3241_v53 = vsel %vm3240_vm14, %v5209_v48, %v3237_v59 }
 0xc1c   : > { %3372 = vmatmul.bf16.vlgmr.msra.gmra.mxu1 %v3276_v20  ;;  %3391 = vmatmul.bf16.vlgmr.msra.gmra.mxu2 %v3276_v20  ;;  %v3245_v61 = vmul.f32 %v3241_v53, %v6304_v37 }
 0xc1e   : > { %v3252_v26 = vmul.f32 %v5109_v10, %v3245_v61 }
 0xc20   : > { %v3259_v17 = vadd.f32 %v5110_v6, %v3252_v26 }
 0xc22   : > { %v3277_v7 = vpack.c.bf16 %v3259_v17, %v3258_v8 }
 0xc2c   : > { %3377 = vmatmul.bf16.gmra.mxu1 %v3277_v7  ;;  %3396 = vmatmul.bf16.gmra.mxu2 %v3277_v7 }
 0xc99   : > { %v3373_v31 = vpop.f32.mrf.mxu1 }
 0xc9a   : > { %v6424_v32 = vadd.f32 %v3373_v31, %v6421_v29 }
 0xc9c   : > { %v6427_v37 = vmul.f32 0.70710677, %v6424_v32 }
 0xc9e   : > { %v3418_v34 = vmul.f32 %v6427_v37, %v6427_v37 }
 0xc9f   : > { %v3392_v1 = vpop.f32.mrf.mxu2 }
 0xca0   : > { %v6433_v35 = vmin.f32 %v3418_v34, 16.0  ;;  %v6436_v36 = vadd.f32 %v3392_v1, %v6429_v30 }
 0xca1   : > { %v3375_v38 = vpop.f32.mrf.mxu1 }
 0xca2   : > { %v3420_v39 = vmul.f32 2.1237322e-06, %v6433_v35  ;;  %v3431_v16 = vmul.f32 3.8918573e-05, %v6433_v35  ;;  %v6441_v40 = vadd.f32 %v3375_v38, %v6421_v29  ;;  %v6444_v3 = vmul.f32 0.70710677, %v6436_v36 }
 0xca4   : > { %v3421_v41 = vadd.f32 0.00028619796, %v3420_v39  ;;  %v3432_v42 = vadd.f32 0.001143296, %v3431_v16  ;;  %v3458_v43 = vmul.f32 %v6444_v3, %v6444_v3  ;;  %v6449_v45 = vmul.f32 0.70710677, %v6441_v40 }
 0xca6   : > { %v3422_v58 = vmul.f32 %v3421_v41, %v6433_v35  ;;  %v3433_v44 = vmul.f32 %v3432_v42, %v6433_v35  ;;  %v6453_v0 = vmin.f32 %v3458_v43, 16.0  ;;  %v3498_v24 = vmul.f32 %v6449_v45, %v6449_v45 }
 0xca7   : > { %v3394_v2 = vpop.f32.mrf.mxu2 }
 0xca8   : > { %v3423_v46 = vadd.f32 0.0036580483, %v3422_v58  ;;  %v3434_v47 = vadd.f32 0.014752088, %v3433_v44  ;;  %v6458_v49 = vadd.f32 %v3394_v2, %v6429_v30  ;;  %v3460_v51 = vmul.f32 2.1237322e-06, %v6453_v0 }
 0xca9   : > { %v3471_v52 = vmul.f32 3.8918573e-05, %v6453_v0  ;;  %v6462_v54 = vmin.f32 %v3498_v24, 16.0  ;;  %v3378_v61 = vpop.f32.mrf.mxu1 }
 0xcaa   : > { %v3424_v23 = vmul.f32 %v3423_v46, %v6433_v35  ;;  %v3435_v48 = vmul.f32 %v3434_v47, %v6433_v35  ;;  %v6467_v10 = vmul.f32 0.70710677, %v6458_v49  ;;  %v3461_v55 = vadd.f32 0.00028619796, %v3460_v51 }
 0xcab   : > { %v3472_v56 = vadd.f32 0.001143296, %v3471_v52  ;;  %v3500_v4 = vmul.f32 2.1237322e-06, %v6462_v54  ;;  %v3511_v15 = vmul.f32 3.8918573e-05, %v6462_v54  ;;  %v6487_v38 = vadd.f32 %v3378_v61, %v6421_v29 }
 0xcac   : > { %v3425_v11 = vadd.f32 0.05243302, %v3424_v23  ;;  %v3436_v57 = vadd.f32 0.112945676, %v3435_v48  ;;  %v3538_v6 = vmul.f32 %v6467_v10, %v6467_v10  ;;  %v3462_v60 = vmul.f32 %v3461_v55, %v6453_v0 }
 0xcad   : > { %v3473_v9 = vmul.f32 %v3472_v56, %v6453_v0  ;;  %v3501_v63 = vadd.f32 0.00028619796, %v3500_v4  ;;  %v3512_v12 = vadd.f32 0.001143296, %v3511_v15  ;;  %v6496_v46 = vmul.f32 0.70710677, %v6487_v38 }
 0xcae   : > { %v3437_v50 = vmul.f32 %v3436_v57, %v6433_v35  ;;  %v6476_v14 = vmin.f32 %v3538_v6, 16.0  ;;  %v3463_v21 = vadd.f32 0.0036580483, %v3462_v60  ;;  %v3426_v59 = vmul.f32 %v3425_v11, %v6433_v35 }
 0xcaf   : > { %v3474_v18 = vadd.f32 0.014752088, %v3473_v9  ;;  %v3502_v19 = vmul.f32 %v3501_v63, %v6462_v54  ;;  %v3513_v53 = vmul.f32 %v3512_v12, %v6462_v54  ;;  %v3578_v15 = vmul.f32 %v6496_v46, %v6496_v46  ;;  %v3397_v12 = vpop.f32.mrf.mxu2 }
 0xcb0   : > { %v3438_v20 = vadd.f32 0.4994258, %v3437_v50  ;;  %v3540_v22 = vmul.f32 2.1237322e-06, %v6476_v14  ;;  %v3464_v25 = vmul.f32 %v3463_v21, %v6453_v0  ;;  %v3551_v17 = vmul.f32 3.8918573e-05, %v6476_v14 }
 0xcb1   : > { %v3475_v26 = vmul.f32 %v3474_v18, %v6453_v0  ;;  %v3503_v33 = vadd.f32 0.0036580483, %v3502_v19  ;;  %v3514_v7 = vadd.f32 0.014752088, %v3513_v53  ;;  %v3427_v43 = vadd.f32 0.18741608, %v3426_v59 }
 0xcb2   : > { %v3439_v8 = vmul.f32 %v3438_v20, %v6433_v35  ;;  %v3541_v5 = vadd.f32 0.00028619796, %v3540_v22  ;;  %v3465_v31 = vadd.f32 0.05243302, %v3464_v25  ;;  %v3552_v1 = vadd.f32 0.001143296, %v3551_v17 }
 0xcb3   : > { %v3476_v34 = vadd.f32 0.112945676, %v3475_v26  ;;  %v3504_v16 = vmul.f32 %v3503_v33, %v6462_v54  ;;  %v3515_v41 = vmul.f32 %v3514_v7, %v6462_v54  ;;  %v3428_v23 = vmul.f32 %v3427_v43, %v6433_v35  ;;  %v5025_v21 = vld [vmem:[%s6913_s23 + $0x38] sm:$0xff] }
 0xcb4   : > { %v3440_v39 = vadd.f32 1.0, %v3439_v8  ;;  %v3542_v42 = vmul.f32 %v3541_v5, %v6476_v14  ;;  %v3466_v44 = vmul.f32 %v3465_v31, %v6453_v0  ;;  %v3553_v24 = vmul.f32 %v3552_v1, %v6476_v14  ;;  %3890 = vmatpush.bf16.msrb.mxu3 %v5025_v21  ;;  %v5024_v5 = vld [vmem:[%s6913_s23 + $0x30] sm:$0xff] }
 0xcb5   : > { %v3477_v58 = vmul.f32 %v3476_v34, %v6453_v0  ;;  %v3505_v47 = vadd.f32 0.05243302, %v3504_v16  ;;  %v3516_v51 = vadd.f32 0.112945676, %v3515_v41  ;;  %v3429_v18 = vadd.f32 1.1283791, %v3428_v23 }
 0xcb6   : > { %5210 = vrcp.f32 %v3440_v39  ;;  %v3543_v52 = vadd.f32 0.0036580483, %v3542_v42  ;;  %v3467_v55 = vadd.f32 0.18741608, %v3466_v44  ;;  %v3554_v11 = vadd.f32 0.014752088, %v3553_v24 }
 0xcb7   : > { %v3478_v2 = vadd.f32 0.4994258, %v3477_v58  ;;  %v3517_v56 = vmul.f32 %v3516_v51, %v6462_v54  ;;  %v3506_v60 = vmul.f32 %v3505_v47, %v6462_v54  ;;  %v3450_v19 = vand.u32 2147483647, %v3440_v39  ;;  %v5023_v47 = vld [vmem:[%s6913_s23 + $0x28] sm:$0xff] }
 0xcb8   : > { %v3544_v4 = vmul.f32 %v3543_v52, %v6476_v14  ;;  %v3555_v63 = vmul.f32 %v3554_v11, %v6476_v14  ;;  %v3468_v59 = vmul.f32 %v3467_v55, %v6453_v0  ;;  %v6514_v61 = vmin.f32 %v3578_v15, 16.0  ;;  %3891 = vmatpush.bf16.msrb.mxu3 %v5024_v5 }
 0xcb9   : > { %v3479_v48 = vmul.f32 %v3478_v2, %v6453_v0  ;;  %v3518_v9 = vadd.f32 0.4994258, %v3517_v56  ;;  %v3452_v25 = vand.u32 2147483648, %v3440_v39  ;;  %v3507_v26 = vadd.f32 0.18741608, %v3506_v60 }
 0xcba   : > { %v3545_v50 = vadd.f32 0.05243302, %v3544_v4  ;;  %v3556_v22 = vadd.f32 0.112945676, %v3555_v63  ;;  %v6517_v33 = vadd.f32 %v3397_v12, %v6429_v30  ;;  %v6527_v31 = vmul.f32 0.5, %v6424_v32  ;;  %v5033_v32 = vld [vmem:[%s6913_s23 + $0x78] sm:$0xff] }
 0xcbb   : > { %v6502_v57 = vadd.f32 1.0, %v3479_v48  ;;  %v3519_v53 = vmul.f32 %v3518_v9, %v6462_v54  ;;  %v3430_v34 = vmul.f32 %v3429_v18, %v6427_v37  ;;  %vm3446_vm2 = vweird.f32 %v3440_v39  ;;  %3909 = vmatpush.bf16.msra.mxu0 %v5033_v32  ;;  %v5032_v4 = vld [vmem:[%s6913_s23 + $0x70] sm:$0xff]  ;;  %v5022_v12 = vld [vmem:[%s6913_s23 + $0x20] sm:$0xff] }
 0xcbc   : > { %v5211_v6 = vpop.eup %5210  ;;  %v3546_v7 = vmul.f32 %v3545_v50, %v6476_v14  ;;  %v3557_v0 = vmul.f32 %v3556_v22, %v6476_v14  ;;  %v6531_v1 = vmul.f32 0.5, %v6441_v40  ;;  %v3469_v42 = vadd.f32 1.1283791, %v3468_v59  ;;  %3892 = vmatpush.bf16.msrb.mxu3 %v5023_v47  ;;  %v5031_v22 = vld [vmem:[%s6913_s23 + $0x68] sm:$0xff] }
 0xcbd   : > { %v3442_v35 = vmul.f32 %v5211_v6, %v3440_v39  ;;  %5212 = vrcp.f32 %v6502_v57  ;;  %vm3447_vm1 = vweird.f32 %v5211_v6  ;;  %v6519_v8 = vadd.f32 1.0, %v3519_v53 }
 0xcbe   : > { %v3591_v43 = vmul.f32 3.8918573e-05, %v6514_v61  ;;  %vm3448_vm3 = vmor %vm3446_vm2, %vm3447_vm1  ;;  %vm3451_vm4 = vcmp.eq.f32.partialorder %v3450_v19, 8.507059e+37  ;;  %v3453_v37 = vor.u32 1.1754944e-38, %v3452_v25  ;;  %v6544_v39 = vmul.f32 0.70710677, %v6517_v33 }
 0xcbf   : > { %v3443_v20 = vsub.f32 1.0, %v3442_v35  ;;  %5214 = vrcp.f32 %v6519_v8  ;;  %v3508_v44 = vmul.f32 %v3507_v26, %v6462_v54  ;;  %v3547_v24 = vadd.f32 0.18741608, %v3546_v7  ;;  %3910 = vmatpush.bf16.msra.mxu0 %v5032_v4 }
 0xcc0   : > { %v3558_v2 = vadd.f32 0.4994258, %v3557_v0  ;;  %v3490_v23 = vand.u32 2147483647, %v6502_v57  ;;  %v3580_v48 = vmul.f32 2.1237322e-06, %v6514_v61  ;;  %v6553_v55 = vmul.f32 %v3469_v42, %v6444_v3  ;;  %3893 = vmatpush.bf16.msrb.mxu3 %v5022_v12 }
 0xcc1   : > { %v3444_v17 = vmul.f32 %v5211_v6, %v3443_v20  ;;  %vm3486_vm5 = vweird.f32 %v6502_v57  ;;  %v3592_v56 = vadd.f32 0.001143296, %v3591_v43  ;;  %v3618_v60 = vmul.f32 %v6544_v39, %v6544_v39  ;;  %v3380_v20 = vpop.f32.mrf.mxu1  ;;  %v5021_v42 = vld [vmem:[%s6913_s23 + $0x18] sm:$0xff] }
 0xcc2   : > { %v3559_v54 = vmul.f32 %v3558_v2, %v6476_v14  ;;  %v3509_v9 = vadd.f32 1.1283791, %v3508_v44  ;;  %v3548_v63 = vmul.f32 %v3547_v24, %v6476_v14  ;;  %vm6571_vm6 = vcmp.eq.f32.partialorder %v3490_v23, 8.507059e+37 }
 0xcc3   : > { %v6533_v16 = vpop.eup %5212  ;;  %v3445_v41 = vadd.f32 %v5211_v6, %v3444_v17  ;;  %v3593_v50 = vmul.f32 %v3592_v56, %v6514_v61  ;;  %v3530_v19 = vand.u32 2147483647, %v6519_v8  ;;  %v3581_v59 = vadd.f32 0.00028619796, %v3580_v48  ;;  %3911 = vmatpush.bf16.msra.mxu0 %v5031_v22 }
 0xcc4   : > { %v3482_v40 = vmul.f32 %v6533_v16, %v6502_v57  ;;  %v6565_v35 = vadd.f32 1.0, %v3559_v54  ;;  %vm3487_vm7 = vweird.f32 %v6533_v16  ;;  %v6580_v53 = vmin.f32 %v3618_v60, 16.0  ;;  %3894 = vmatpush.bf16.msrb.mxu3 %v5021_v42 }
 0xcc5   : > { %v3449_v58 = vsel %vm3448_vm3, %v5211_v6, %v3445_v41  ;;  %v3492_v6 = vand.u32 2147483648, %v6502_v57  ;;  %v5215_v3 = vpop.eup %5214  ;;  %v3532_v7 = vand.u32 2147483648, %v6519_v8  ;;  %v3510_v0 = vmul.f32 %v3509_v9, %v6449_v45  ;;  %vm6597_vm8 = vmor %vm3486_vm5, %vm3487_vm7 }
 0xcc6   : > { %v3454_v51 = vsel %vm3451_vm4, %v3453_v37, %v3449_v58  ;;  %v3483_v52 = vsub.f32 1.0, %v3482_v40  ;;  %v3522_v18 = vmul.f32 %v5215_v3, %v6519_v8  ;;  %5216 = vrcp.f32 %v6565_v35  ;;  %v5030_v58 = vld [vmem:[%s6913_s23 + $0x60] sm:$0xff] }
 0xcc7   : > { %v3455_v11 = vmul.f32 %v3454_v51, %v3430_v34  ;;  %v3493_v26 = vor.u32 1.1754944e-38, %v3492_v6  ;;  %v3549_v5 = vadd.f32 1.1283791, %v3548_v63  ;;  %v3594_v34 = vadd.f32 0.014752088, %v3593_v50  ;;  %v3399_v51 = vpop.f32.mrf.mxu2  ;;  %3912 = vmatpush.bf16.msra.mxu0 %v5030_v58  ;;  %v5018_v37 = vld [vmem:[%s6913_s23] sm:$0xff] }
 0xcc8   : > { %v3484_v15 = vmul.f32 %v6533_v16, %v3483_v52  ;;  %v3523_v17 = vsub.f32 1.0, %v3522_v18  ;;  %v6588_v41 = vadd.f32 %v3380_v20, %v6421_v29  ;;  %vm3526_vm9 = vweird.f32 %v6519_v8  ;;  %v5020_v8 = vld [vmem:[%s6913_s23 + $0x10] sm:$0xff] }
 0xcc9   : > { %v4809_v25 = vclamps-f32 %v3455_v11, 1.0  ;;  %vm3527_vm10 = vweird.f32 %v5215_v3  ;;  %v6603_v29 = vmul.f32 %v3581_v59, %v6514_v61  ;;  %vm6608_vm11 = vcmp.eq.f32.partialorder %v3530_v19, 8.507059e+37  ;;  %3895 = vmatpush.bf16.msrb.mxu3 %v5020_v8 }
 0xcca   : > { %v3485_v14 = vadd.f32 %v6533_v16, %v3484_v15  ;;  %v3524_v32 = vmul.f32 %v5215_v3, %v3523_v17  ;;  %v3595_v57 = vmul.f32 %v3594_v34, %v6514_v61  ;;  %v3631_v40 = vmul.f32 3.8918573e-05, %v6580_v53  ;;  %vm3528_vm12 = vmor %vm3526_vm9, %vm3527_vm10  ;;  %v5028_v17 = vld [vmem:[%s6913_s23 + $0x50] sm:$0xff] }
 0xccb   : > { %v3738_v44 = vadd.f32 1.0, %v4809_v25  ;;  %v3533_v2 = vor.u32 1.1754944e-38, %v3532_v7  ;;  %v3570_v47 = vand.u32 2147483647, %v6565_v35  ;;  %v3550_v52 = vmul.f32 %v3549_v5, %v6467_v10 }
 0xccc   : > { %v3489_v45 = vsel %vm6597_vm8, %v6533_v16, %v3485_v14  ;;  %v3525_v24 = vadd.f32 %v5215_v3, %v3524_v32  ;;  %v5217_v16 = vpop.eup %5216  ;;  %v3596_v23 = vadd.f32 0.112945676, %v3595_v57  ;;  %v3632_v48 = vadd.f32 0.001143296, %v3631_v40 }
 0xccd   : > { %v6622_v54 = vmul.f32 0.70710677, %v6588_v41  ;;  %v3494_v56 = vsel %vm6571_vm6, %v3493_v26, %v3489_v45  ;;  %v3562_v11 = vmul.f32 %v5217_v16, %v6565_v35  ;;  %vm3566_vm13 = vweird.f32 %v6565_v35 }
 0xcce   : > { %v3529_v4 = vsel %vm3528_vm12, %v5215_v3, %v3525_v24  ;;  %v3572_v15 = vand.u32 2147483648, %v6565_v35  ;;  %v3597_v6 = vmul.f32 %v3596_v23, %v6514_v61  ;;  %v6636_v60 = vadd.f32 %v3399_v51, %v6429_v30  ;;  %v5029_v3 = vld [vmem:[%s6913_s23 + $0x58] sm:$0xff] }
 0xccf   : > { %v3534_v10 = vsel %vm6608_vm11, %v3533_v2, %v3529_v4  ;;  %v3746_v9 = vmul.f32 %v3738_v44, %v6527_v31  ;;  %v3563_v50 = vsub.f32 1.0, %v3562_v11  ;;  %v3633_v12 = vmul.f32 %v3632_v48, %v6580_v53  ;;  %3913 = vmatpush.bf16.msra.mxu0 %v5029_v3  ;;  %v5019_v31 = vld [vmem:[%s6913_s23 + $0x8] sm:$0xff] }
 0xcd0   : > { %v3535_v63 = vmul.f32 %v3534_v10, %v3510_v0  ;;  %v3495_v21 = vmul.f32 %v3494_v56, %v6553_v55  ;;  %vm6644_vm14 = vcmp.eq.f32.partialorder %v3570_v47, 8.507059e+37  ;;  %v3598_v19 = vadd.f32 0.4994258, %v3597_v6  ;;  %3896 = vmatpush.bf16.msrb.mxu3 %v5019_v31  ;;  %v5027_v2 = vld [vmem:[%s6913_s23 + $0x48] sm:$0xff] }
 0xcd1   : > { %v3658_v30 = vmul.f32 %v6622_v54, %v6622_v54  ;;  %v3564_v20 = vmul.f32 %v5217_v16, %v3563_v50  ;;  %vm3567_vm15 = vweird.f32 %v5217_v16  ;;  %v3634_v14 = vadd.f32 0.014752088, %v3633_v12 }
 0xcd2   : > { %v4811_v59 = vclamps-f32 %v3535_v63, 1.0  ;;  %v3573_v22 = vor.u32 1.1754944e-38, %v3572_v15  ;;  %v3599_v55 = vmul.f32 %v3598_v19, %v6514_v61  ;;  %v6657_v26 = vmul.f32 0.70710677, %v6636_v60  ;;  %vm3568_vm0 = vmor %vm3566_vm13, %vm3567_vm15 }
 0xcd3   : > { %v6654_v25 = vmin.f32 %v3658_v30, 16.0  ;;  %v3565_v0 = vadd.f32 %v5217_v16, %v3564_v20  ;;  %v3620_v5 = vmul.f32 2.1237322e-06, %v6580_v53  ;;  %v3635_v34 = vmul.f32 %v3634_v14, %v6580_v53  ;;  %3914 = vmatpush.bf16.msra.mxu0 %v5028_v17 }
 0xcd4   : > { %v3740_v7 = vadd.f32 1.0, %v4811_v59  ;;  %v4810_v42 = vclamps-f32 %v3495_v21, 1.0  ;;  %v6666_v43 = vadd.f32 1.0, %v3599_v55  ;;  %v3698_v45 = vmul.f32 %v6657_v26, %v6657_v26  ;;  %3897 = vmatpush.bf16.msrb.mxu3 %v5018_v37 }
 0xcd5   : > { %v3660_v32 = vmul.f32 2.1237322e-06, %v6654_v25  ;;  %v3569_v40 = vsel %vm3568_vm0, %v5217_v16, %v3565_v0  ;;  %v3636_v58 = vadd.f32 0.112945676, %v3635_v34  ;;  %v3671_v44 = vmul.f32 3.8918573e-05, %v6654_v25 }
 0xcd6   : > { %v3748_v57 = vmul.f32 %v3740_v7, %v6531_v1  ;;  %v3574_v35 = vsel %vm6644_vm14, %v3573_v22, %v3569_v40  ;;  %v3583_v24 = vadd.f32 0.0036580483, %v6603_v29  ;;  %5218 = vrcp.f32 %v6666_v43 }
 0xcd7   : > { %v3575_v51 = vmul.f32 %v3574_v35, %v3550_v52  ;;  %v3621_v23 = vadd.f32 0.00028619796, %v3620_v5  ;;  %v3403_v1 = vmul.f32 0.5, %v6436_v36  ;;  %v3637_v16 = vmul.f32 %v3636_v58, %v6580_v53  ;;  %3915 = vmatpush.bf16.msra.mxu0 %v5027_v2  ;;  %v5026_v36 = vld [vmem:[%s6913_s23 + $0x40] sm:$0xff] }
 0xcd8   : > { %v3786_v47 = vpack.c.bf16 %v3748_v57, %v3746_v9  ;;  %v3661_v48 = vadd.f32 0.00028619796, %v3660_v32  ;;  %v3672_v56 = vadd.f32 0.001143296, %v3671_v44  ;;  %v3739_v4 = vadd.f32 1.0, %v4810_v42 }
 0xcd9   : > { %v3405_v29 = vmul.f32 0.5, %v6458_v49  ;;  %v4812_v11 = vclamps-f32 %v3575_v51, 1.0  ;;  %v6686_v8 = vmin.f32 %v3698_v45, 16.0  ;;  %v3584_v10 = vmul.f32 %v3583_v24, %v6514_v61 }
 0xcda   : > { %v3638_v52 = vadd.f32 0.4994258, %v3637_v16  ;;  %v3662_v15 = vmul.f32 %v3661_v48, %v6654_v25  ;;  %v3673_v6 = vmul.f32 %v3672_v56, %v6654_v25  ;;  %3898 = vmatmul.bf16.vlgmr.msrb.gmra.mxu3 %v3786_v47  ;;  %v3622_v9 = vmul.f32 %v3621_v23, %v6580_v53 }
 0xcdb   : > { %v3741_v3 = vadd.f32 1.0, %v4812_v11  ;;  %v3700_v49 = vmul.f32 2.1237322e-06, %v6686_v8  ;;  %v3711_v63 = vmul.f32 3.8918573e-05, %v6686_v8  ;;  %3916 = vmatpush.bf16.msra.mxu0 %v5026_v36  ;;  %v3747_v18 = vmul.f32 %v3739_v4, %v3403_v1 }
 0xcdc   : > { %v3639_v50 = vmul.f32 %v3638_v52, %v6580_v53  ;;  %v3674_v12 = vadd.f32 0.014752088, %v3673_v6  ;;  %v6698_v21 = vpop.eup %5218  ;;  %v3663_v31 = vadd.f32 0.0036580483, %v3662_v15  ;;  %v3585_v22 = vadd.f32 0.05243302, %v3584_v10 }
 0xcdd   : > { %v3749_v19 = vmul.f32 %v3741_v3, %v3405_v29  ;;  %v3701_v20 = vadd.f32 0.00028619796, %v3700_v49  ;;  %v3623_v55 = vadd.f32 0.0036580483, %v3622_v9  ;;  %v3712_v17 = vadd.f32 0.001143296, %v3711_v63 }
 0xcde   : > { %v6700_v30 = vadd.f32 1.0, %v3639_v50  ;;  %v3675_v59 = vmul.f32 %v3674_v12, %v6654_v25  ;;  %v3602_v7 = vmul.f32 %v6698_v21, %v6666_v43  ;;  %v3664_v5 = vmul.f32 %v3663_v31, %v6654_v25 }
 0xcdf   : > { %v3787_v14 = vpack.c.bf16 %v3749_v19, %v3747_v18  ;;  %v3702_v34 = vmul.f32 %v3701_v20, %v6686_v8  ;;  %v3713_v42 = vmul.f32 %v3712_v17, %v6686_v8  ;;  %v3586_v32 = vmul.f32 %v3585_v22, %v6514_v61 }
 0xce0   : > { %5220 = vrcp.f32 %v6700_v30  ;;  %v3676_v0 = vadd.f32 0.112945676, %v3675_v59  ;;  %v3624_v45 = vmul.f32 %v3623_v55, %v6580_v53  ;;  %v3603_v57 = vsub.f32 1.0, %v3602_v7 }
 0xce1   : > { %3917 = vmatmul.bf16.vlgmr.msra.gmra.mxu0 %v3787_v14  ;;  %v3714_v40 = vadd.f32 0.014752088, %v3713_v42  ;;  %v3665_v35 = vadd.f32 0.05243302, %v3664_v5  ;;  %v3703_v24 = vadd.f32 0.0036580483, %v3702_v34  ;;  %vm3607_vm1 = vweird.f32 %v6698_v21 }
 0xce2   : > { %v3677_v37 = vmul.f32 %v3676_v0, %v6654_v25  ;;  %v3587_v47 = vadd.f32 0.18741608, %v3586_v32  ;;  %v3625_v51 = vadd.f32 0.05243302, %v3624_v45  ;;  %v3604_v23 = vmul.f32 %v6698_v21, %v3603_v57 }
 0xce3   : > { %v3715_v2 = vmul.f32 %v3714_v40, %v6686_v8  ;;  %v3666_v56 = vmul.f32 %v3665_v35, %v6654_v25  ;;  %v3704_v29 = vmul.f32 %v3703_v24, %v6686_v8  ;;  %v3612_v36 = vand.u32 2147483648, %v6666_v43 }
 0xce4   : > { %v3678_v58 = vadd.f32 0.4994258, %v3677_v37  ;;  %v3588_v10 = vmul.f32 %v3587_v47, %v6514_v61  ;;  %v3626_v52 = vmul.f32 %v3625_v51, %v6580_v53  ;;  %v3605_v15 = vadd.f32 %v6698_v21, %v3604_v23 }
 0xce5   : > { %v3716_v48 = vadd.f32 0.112945676, %v3715_v2  ;;  %vm3606_vm2 = vweird.f32 %v6666_v43  ;;  %v3610_v9 = vand.u32 2147483647, %v6666_v43  ;;  %v3667_v49 = vadd.f32 0.18741608, %v3666_v56 }
 0xce6   : > { %v6712_v44 = vpop.eup %5220  ;;  %v3679_v16 = vmul.f32 %v3678_v58, %v6654_v25  ;;  %v3705_v63 = vadd.f32 0.05243302, %v3704_v29  ;;  %v3589_v50 = vadd.f32 1.1283791, %v3588_v10  ;;  %vm3608_vm3 = vmor %vm3606_vm2, %vm3607_vm1  ;;  %v3627_v18 = vadd.f32 0.18741608, %v3626_v52 }
 0xce7   : > { %v3642_v1 = vmul.f32 %v6712_v44, %v6700_v30  ;;  %v3717_v11 = vmul.f32 %v3716_v48, %v6686_v8  ;;  %v3609_v12 = vsel %vm3608_vm3, %v6698_v21, %v3605_v15  ;;  %v3613_v31 = vor.u32 1.1754944e-38, %v3612_v36 }
 0xce8   : > { %v3680_v4 = vadd.f32 1.0, %v3679_v16  ;;  %vm3611_vm4 = vcmp.eq.f32.partialorder %v3610_v9, 8.507059e+37  ;;  %v3668_v14 = vmul.f32 %v3667_v49, %v6654_v25  ;;  %v3706_v43 = vmul.f32 %v3705_v63, %v6686_v8 }
 0xce9   : > { %v3643_v6 = vsub.f32 1.0, %v3642_v1  ;;  %v3718_v3 = vadd.f32 0.4994258, %v3717_v11  ;;  %v3590_v22 = vmul.f32 %v3589_v50, %v6496_v46  ;;  %v3614_v55 = vsel %vm3611_vm4, %v3613_v31, %v3609_v12 }
 0xcea   : > { %5222 = vrcp.f32 %v3680_v4  ;;  %v3628_v7 = vmul.f32 %v3627_v18, %v6580_v53  ;;  %vm3647_vm5 = vweird.f32 %v6712_v44  ;;  %vm3646_vm6 = vweird.f32 %v6700_v30 }
 0xceb   : > { %v3719_v61 = vmul.f32 %v3718_v3, %v6686_v8  ;;  %v3644_v19 = vmul.f32 %v6712_v44, %v3643_v6  ;;  %v3650_v0 = vand.u32 2147483647, %v6700_v30  ;;  %v3652_v25 = vand.u32 2147483648, %v6700_v30  ;;  %vm6744_vm7 = vmor %vm3646_vm6, %vm3647_vm5 }
 0xcec   : > { %v3615_v34 = vmul.f32 %v3614_v55, %v3590_v22  ;;  %v3669_v42 = vadd.f32 1.1283791, %v3668_v14  ;;  %v3692_v46 = vand.u32 2147483648, %v3680_v4  ;;  %v3707_v32 = vadd.f32 0.18741608, %v3706_v43 }
 0xced   : > { %v6732_v59 = vadd.f32 1.0, %v3719_v61  ;;  %v3645_v21 = vadd.f32 %v6712_v44, %v3644_v19  ;;  %v3690_v37 = vand.u32 2147483647, %v3680_v4  ;;  %v3629_v57 = vadd.f32 1.1283791, %v3628_v7 }
 0xcee   : > { %vm3651_vm9 = vcmp.eq.f32.partialorder %v3650_v0, 8.507059e+37  ;;  %v3653_v58 = vor.u32 1.1754944e-38, %v3652_v25  ;;  %vm3686_vm10 = vweird.f32 %v3680_v4  ;;  %v4813_v24 = vclamps-f32 %v3615_v34, 1.0 }
 0xcef   : > { %5224 = vrcp.f32 %v6732_v59  ;;  %v3649_v40 = vsel %vm6744_vm7, %v6712_v44, %v3645_v21  ;;  %v3670_v2 = vmul.f32 %v3669_v42, %v6622_v54  ;;  %v3693_v47 = vor.u32 1.1754944e-38, %v3692_v46 }
 0xcf0   : > { %v5223_v20 = vpop.eup %5222  ;;  %v3708_v51 = vmul.f32 %v3707_v32, %v6686_v8  ;;  %v3654_v23 = vsel %vm3651_vm9, %v3653_v58, %v3649_v40  ;;  %vm3691_vm12 = vcmp.eq.f32.partialorder %v3690_v37, 8.507059e+37  ;;  %v3630_v48 = vmul.f32 %v3629_v57, %v6544_v39 }
 0xcf1   : > { %v3682_v17 = vmul.f32 %v5223_v20, %v3680_v4  ;;  %vm3687_vm8 = vweird.f32 %v5223_v20  ;;  %v3742_v11 = vadd.f32 1.0, %v4813_v24  ;;  %v3732_v52 = vand.u32 2147483648, %v6732_v59 }
 0xcf2   : > { %vm3688_vm11 = vmor %vm3686_vm10, %vm3687_vm8  ;;  %v3655_v4 = vmul.f32 %v3654_v23, %v3630_v48  ;;  %v3709_v10 = vadd.f32 1.1283791, %v3708_v51  ;;  %v3730_v8 = vand.u32 2147483647, %v6732_v59  ;;  %v3406_v6 = vmul.f32 0.5, %v6487_v38 }
 0xcf3   : > { %v3683_v5 = vsub.f32 1.0, %v3682_v17  ;;  %v3408_v36 = vmul.f32 0.5, %v6588_v41  ;;  %vm3726_vm14 = vweird.f32 %v6732_v59  ;;  %v3733_v63 = vor.u32 1.1754944e-38, %v3732_v52 }
 0xcf4   : > { %v3750_v39 = vmul.f32 %v3742_v11, %v3406_v6  ;;  %v4814_v49 = vclamps-f32 %v3655_v4, 1.0  ;;  %v3710_v61 = vmul.f32 %v3709_v10, %v6657_v26  ;;  %vm3731_vm0 = vcmp.eq.f32.partialorder %v3730_v8, 8.507059e+37 }
 0xcf5   : > { %v3684_v53 = vmul.f32 %v5223_v20, %v3683_v5  ;;  %v5225_v35 = vpop.eup %5224 }
 0xcf6   : > { %v3722_v16 = vmul.f32 %v5225_v35, %v6732_v59  ;;  %vm3727_vm13 = vweird.f32 %v5225_v35  ;;  %v3743_v41 = vadd.f32 1.0, %v4814_v49  ;;  %v3407_v59 = vmul.f32 0.5, %v6517_v33 }
 0xcf7   : > { %v3685_v30 = vadd.f32 %v5223_v20, %v3684_v53  ;;  %vm3728_vm15 = vmor %vm3726_vm14, %vm3727_vm13 }
 0xcf8   : > { %v3723_v29 = vsub.f32 1.0, %v3722_v16  ;;  %v3751_v43 = vmul.f32 %v3743_v41, %v3407_v59 }
 0xcf9   : > { %v3689_v1 = vsel %vm3688_vm11, %v5223_v20, %v3685_v30  ;;  %v3409_v20 = vmul.f32 0.5, %v6636_v60 }
 0xcfa   : > { %v3694_v44 = vsel %vm3691_vm12, %v3693_v47, %v3689_v1  ;;  %v3724_v15 = vmul.f32 %v5225_v35, %v3723_v29 }
 0xcfb   : > { %v3695_v56 = vmul.f32 %v3694_v44, %v3670_v2 }
 0xcfc   : > { %v3725_v9 = vadd.f32 %v5225_v35, %v3724_v15 }
 0xcfd   : > { %v4815_v54 = vclamps-f32 %v3695_v56, 1.0 }
 0xcfe   : > { %v3729_v12 = vsel %vm3728_vm15, %v5225_v35, %v3725_v9 }
 0xcff   : > { %v3744_v3 = vadd.f32 1.0, %v4815_v54  ;;  %v3734_v18 = vsel %vm3731_vm0, %v3733_v63, %v3729_v12 }
 0xd00   : > { %v3735_v38 = vmul.f32 %v3734_v18, %v3710_v61 }
 0xd01   : > { %v3752_v50 = vmul.f32 %v3744_v3, %v3408_v36 }
 0xd02   : > { %v4816_v31 = vclamps-f32 %v3735_v38, 1.0 }
 0xd03   : > { %v3788_v19 = vpack.c.bf16 %v3752_v50, %v3750_v39 }
 0xd04   : > { %v3745_v14 = vadd.f32 1.0, %v4816_v31 }
 0xd05   : > { %3903 = vmatmul.bf16.gmra.mxu3 %v3788_v19 }
 0xd06   : > { %v3753_v26 = vmul.f32 %v3745_v14, %v3409_v20 }
 0xd08   : > { %v3789_v22 = vpack.c.bf16 %v3753_v26, %v3751_v43 }
 0xd0a   : > { %3922 = vmatmul.bf16.gmra.mxu0 %v3789_v22 }
 0xd0b   : > { %5291 = shalt.err (!%p5288_p7)
}
 0xd0c   : > { %s5367_s4 = smov 128   ;;  %s5368_s28 = smov 8  }
 0xd0d   : > { %5039 = dma.vmem_to_hbm [thread:$0]  (%p5539_p11), %s3972_s19, 512, %s3974_s0, %s3942_s2, %s5367_s4, %s5367_s4, %s5368_s28  }
 0xd0e   : > { %s6926_s9 = sld [smem:[#allocation31_spill]]  ;;  %s750_s10 = scalar_lea.vmem [#allocation5], %s5578_s29 }
 0xd0f   : > { %s6927_s29 = sld [smem:[#allocation32_spill]]  ;;  %s3954_s0 = sshll.u32 %s750_s10, 4  ;;  %s3955_s0 = int_to_ptr.vmem [resolvable:$true] %s3954_s0 }
 0xd10   : > { %s3937_s20 = scalar_lea.sflag [#allocation4], %s5575_s6 }
 0xd14   : > { %v5111_v33 = vld [vmem:[%s6926_s9] ss:$0 sm:$0xff] }
 0xd15   : > { %s3953_s19 = scalar_lea.hbm %s6927_s29, %s5034_s21  ;;  %s5312_s8 = scalar_lea.hbm %s6927_s29, 64 }
 0xd16   : > { %s3956_s2 = sshll.u32 %s3953_s19, 4  ;;  %s3957_s2 = int_to_ptr.hbm [resolvable:$true] %s3956_s2 }
 0xd17   : > { %s5306_s3 = sshra.s32 %s3957_s2, 4  ;;  %s5307_s3 = int_to_ptr.hbm [resolvable:$true] %s5306_s3 }
 0xd18   : > { %s5308_s5 = scalar_lea.hbm %s5307_s3, 32  ;;  %p5313_p2 = scmp.lt.s32.totalorder %s5307_s3, %s6927_s29 }
 0xd19   : > { %p5309_p5 = scmp.ne.s32.totalorder %s5307_s3, %s5308_s5  ;;  %p5314_p9 = scmp.lt.s32.totalorder %s5312_s8, %s5308_s5 }
 0xd1b   : > { %p5310_p8 = pnand %p5309_p5, %p5539_p11  ;;  %p5315_p6 = por %p5314_p9, %p5313_p2 }
 0xd1d   : > { %p5311_p10 = pneg %p5310_p8 }
 0xd1f   : > { %p5316_p13 = pnand %p5315_p6, %p5311_p10 }
 0xd5d   : > { %v3899_v60 = vpop.f32.mrf.mxu3 }
 0xd5e   : > { %v3900_v55 = vadd.f32 %v5111_v33, %v3899_v60  ;;  %v3918_v17 = vpop.f32.mrf.mxu0 }
 0xd60   : > { %v3919_v7 = vadd.f32 %v3918_v17, %v3900_v55 }
 0xd62   : > { %v3928_v21 = vadd.f32 %v3919_v7, %v6277_v27 }
 0xd64   : > { %3932 = vst [vmem:[%s750_s10] sm:$0xff] %v3928_v21 }
 0xd65   : > { %v3901_v0 = vpop.f32.mrf.mxu3 }
 0xd66   : > { %v3902_v25 = vadd.f32 %v5111_v33, %v3901_v0  ;;  %v3920_v5 = vpop.f32.mrf.mxu0 }
 0xd68   : > { %v3921_v34 = vadd.f32 %v3920_v5, %v3902_v25 }
 0xd6a   : > { %v3929_v42 = vadd.f32 %v3921_v34, %v6261_v62 }
 0xd6c   : > { %3933 = vst [vmem:[%s750_s10 + $0x8] sm:$0xff] %v3929_v42 }
 0xd87   : > { %v3923_v45 = vpop.f32.mrf.mxu0 }
 0xd88   : > { %v3904_v46 = vpop.f32.mrf.mxu3 }
 0xd89   : > { %v3905_v32 = vadd.f32 %v5111_v33, %v3904_v46 }
 0xd8b   : > { %v3924_v53 = vadd.f32 %v3923_v45, %v3905_v32 }
 0xd8d   : > { %v3930_v37 = vadd.f32 %v3924_v53, %v6270_v13 }
 0xd8f   : > { %3934 = vst [vmem:[%s750_s10 + $0x10] sm:$0xff] %v3930_v37  ;;  %v3925_v40 = vpop.f32.mrf.mxu0 }
 0xd90   : > { %v3906_v27 = vpop.f32.mrf.mxu3 }
 0xd91   : > { %v3907_v57 = vadd.f32 %v5111_v33, %v3906_v27 }
 0xd93   : > { %v3926_v62 = vadd.f32 %v3925_v40, %v3907_v57 }
 0xd95   : > { %v3931_v58 = vadd.f32 %v3926_v62, %v6281_v28 }
 0xd97   : > { %3935 = vst [vmem:[%s750_s10 + $0x18] sm:$0xff] %v3931_v58 }
 0xd98   : > { %5319 = shalt.err (!%p5316_p13)
}
 0xd99   : > { %5038 = dma.vmem_to_hbm [thread:$0]  (%p5539_p11), %s3955_s0, 512, %s3957_s2, %s3937_s20, %s5367_s4, %s5367_s4, %s5368_s28  }
 0xd9a PF: > { %s6928_s6 = sld [smem:[#allocation11_spill]]  ;;  %p6930_p0 = scmp.ge.s32.totalorder %s5362_s25, 2 }
 0xd9c   : > { %p5047_p1 = pnand %p6930_p0, %p5543_p12 }
 0xd9e   : > { %p5048_p3 = pneg %p5047_p1 }
 0xda0   : > { %s3988_s7 = sand.u32 1, %s6928_s6  }
 0xda1   : > { %s3989_s19 = scalar_lea.sflag [#allocation4], %s3988_s7 }
 0xda2   : > { %5341 = dma.done.wait (%p5048_p3), %s3989_s19, 512  }
 0xda3   : > { %5343 = vsyncadd (%p5048_p3), %s3989_s19, 4294966784  ;;  %s3999_s3 = scalar_lea.sflag [#allocation7], %s3988_s7 }
 0xda4   : > { %5345 = dma.done.wait (%p5048_p3), %s3999_s3, 512  }
 0xda5   : > { %5347 = vsyncadd (%p5048_p3), %s3999_s3, 4294966784  ;;  %s6931_s25 = sld [smem:[#allocation13_spill]]  ;;  %s6934_s4 = smov %s5354_s30 }
 0xda6   : > { %s6932_s24 = sld [smem:[#allocation12_spill]] }
 0xda7   : > { %s6933_s5 = sld [smem:[#allocation14_spill]] }
 0xdab   : > { %p40_p11 = scmp.ge.s32.totalorder %s6931_s25, 4  }
 0xdac   : > { %s6935_s30 = smov %s6932_s24 }
 0xdad   : > { %s6936_s24 = smov %s6933_s5  ;;  %42 = sbr.rel (!%p40_p11) target bundleno = 25 (0x19), region = 194 }
 0xdb2   :  { %4005 = vsyncpa [#allocation3], 1 }
 0xdb3   :  { %4007 = vsyncpa [#allocation3 + $0x1], 1 }
 0xdb4   :  { %4008 = vsyncpa [#allocation4], 1 }
 0xdb5   :  { %4010 = vsyncpa [#allocation4 + $0x1], 1 }
 0xdb6   :  { %4011 = vsyncpa [#allocation7], 1 }
 0xdb7   :  { %4013 = vsyncpa [#allocation7 + $0x1], 1 }

</bundles_post_ra>
